<compile_context>
chip_gen: v6e
topology: v6e:2x2x1
jax: 0.10.0
libtpu: 0.0.40
codegen_flags: <defaults>
</compile_context>

<pallas_src>
import functools
import math

import jax
import jax.numpy as jnp
from jax.experimental import pallas as pl
from jax.experimental.pallas import tpu as pltpu


def _gelu_tanh(x):
    # tanh-form GELU: tanh issues on the otherwise-idle EUP slot.
    # TODO(synk): PyTorch F.gelu default is the exact erf form; the tanh form
    # differs by <~1e-3 abs in f32 (erf has no guaranteed Mosaic lowering).
    c = math.sqrt(2.0 / math.pi)
    return 0.5 * x * (1.0 + jnp.tanh(c * (x + 0.044715 * x * x * x)))


def _layer_norm(x, gamma, beta, eps=1e-5):
    mu = jnp.mean(x, axis=-1, keepdims=True)
    var = jnp.mean((x - mu) ** 2, axis=-1, keepdims=True)
    return (x - mu) * jax.lax.rsqrt(var + eps) * gamma + beta


def _mm(a, w):
    # MXU matmul with f32 accumulation; activations are cast to the weight
    # dtype (bf16 by default) so the MXU runs single-pass.
    return jnp.dot(a.astype(w.dtype), w, preferred_element_type=jnp.float32)


def _encoder_kernel(x_ref, we_ref, be_ref, wqkv_ref, bqkv_ref, wo_ref, bo_ref,
                    ln1g_ref, ln1b_ref, w1_ref, b1_ref, w2_ref, b2_ref,
                    ln2g_ref, ln2b_ref, out_ref, *,
                    num_layers, num_heads, bblk, seq_len, dot_dtype):
    D = we_ref.shape[1]
    H = num_heads
    hd = D // H
    rows = bblk * seq_len

    x = x_ref[0]                                            # (rows, F)
    # PoseEncoder: Linear(input_feats -> latent_dim), batched over all rows.
    h = _mm(x, we_ref[...]) + be_ref[...]                   # (rows, D) f32

    for l in range(num_layers):                             # static unroll (2)
        # ---- multi-head self-attention (post-norm encoder layer) ----
        # 1/sqrt(hd) is pre-folded into the Q columns of wqkv by the wrapper.
        qkv = _mm(h, wqkv_ref[l]) + bqkv_ref[l]             # (rows, 3D) f32
        q3 = qkv[:, 0:D].reshape(bblk, seq_len, D)
        k3 = qkv[:, D:2 * D].reshape(bblk, seq_len, D)
        v3 = qkv[:, 2 * D:3 * D].reshape(bblk, seq_len, D)

        # Stack heads along the leading (batch) axis: one batched dot_general
        # per layer for QK^T and one for PV (2 MXU calls instead of 2H), and
        # no lane-axis concatenate anywhere.  Operands cast to bf16 for the
        # MXU; softmax stays f32.
        def head_stack(t):
            return jnp.concatenate(
                [t[:, :, i * hd:(i + 1) * hd] for i in range(H)],
                axis=0).astype(dot_dtype)                   # (H*bblk, T, hd)

        qs, ks, vs = head_stack(q3), head_stack(k3), head_stack(v3)

        s = jax.lax.dot_general(                            # (H*bblk, T, T)
            qs, ks, (((2,), (2,)), ((0,), (0,))),
            preferred_element_type=jnp.float32)
        s = s - jnp.max(s, axis=-1, keepdims=True)
        p = jnp.exp(s)                                                  # EUP
        p = p * pl.reciprocal(jnp.sum(p, axis=-1, keepdims=True),
                              approx=True)                              # EUP
        pv = jax.lax.dot_general(                           # (H*bblk, T, hd)
            p.astype(dot_dtype), vs, (((2,), (1,)), ((0,), (0,))),
            preferred_element_type=jnp.float32)

        # Output projection with a head-major (H, hd, D) weight: a batched dot
        # over heads + a leading-axis sum lands directly in (rows, D) row
        # order — no lane concatenate, no relayout transpose.
        pv = pv.reshape(H, rows, hd).astype(dot_dtype)
        attn = jax.lax.dot_general(                         # (H, rows, D)
            pv, wo_ref[l], (((2,), (1,)), ((0,), (0,))),
            preferred_element_type=jnp.float32)
        attn = jnp.sum(attn, axis=0) + bo_ref[l]            # (rows, D)
        h = _layer_norm(h + attn, ln1g_ref[l], ln1b_ref[l])

        # ---- feed-forward: linear -> gelu -> linear ----
        ff = _gelu_tanh(_mm(h, w1_ref[l]) + b1_ref[l])
        ff = _mm(ff, w2_ref[l]) + b2_ref[l]
        h = _layer_norm(h + ff, ln2g_ref[l], ln2b_ref[l])

    # disfluent_context = x_enc.mean(dim=1): one dense (bblk, D) block store.
    out_ref[0] = jnp.mean(h.reshape(bblk, seq_len, D), axis=1)


def disfluent_context_encoder(x, params, *, num_heads=4,
                              matmul_dtype=jnp.bfloat16, block_batch=None):
    B, T, F = x.shape
    D = params["we"].shape[1]
    L = params["wqkv"].shape[0]
    Dff = params["w1"].shape[2]
    H = num_heads
    assert D % H == 0, "latent_dim must be divisible by num_heads"
    hd = D // H
    # TODO(synk): production sizes should keep D / hd / Dff multiples of 128
    # (lane-dense vregs, unmasked stores); padding them here would change the
    # LayerNorm / softmax statistics unless masked, so it is not done.

    wdt = jnp.dtype(matmul_dtype)

    # Fold the 1/sqrt(hd) attention scale into the Q columns (and Q bias) of
    # the in-projection: removes a VPU multiply over the full score tensor.
    qscale = jnp.concatenate(
        [jnp.full((1, D), 1.0 / math.sqrt(hd), jnp.float32),
         jnp.ones((1, 2 * D), jnp.float32)], axis=1)
    wqkv = params["wqkv"] * qscale                          # (L, D, 3D)
    bqkv = params["bqkv"] * qscale                          # (L, 1, 3D)

    # Head-major out-projection weight: (L, D, D) -> (L, H, hd, D) so the
    # kernel's output projection is one batched dot over heads.
    wo_hm = params["wo"].reshape(L, H, hd, D)

    weight_args = (
        params["we"].astype(wdt), params["be"],
        wqkv.astype(wdt), bqkv,
        wo_hm.astype(wdt), params["bo"],
        params["ln1g"], params["ln1b"],
        params["w1"].astype(wdt), params["b1"],
        params["w2"].astype(wdt), params["b2"],
        params["ln2g"], params["ln2b"],
    )
    weight_bytes = sum(int(a.size) * a.dtype.itemsize for a in weight_args)

    # ---- generation-aware VMEM budget & block sizing ----
    try:
        vmem_cap = int(pltpu.get_tpu_info().vmem_capacity_bytes)
    except Exception:
        vmem_cap = 64 * 2 ** 20          # conservative (v7x-sized) fallback
    if vmem_cap <= 64 * 2 ** 20:         # v7x: leave headroom for scratch/sems
        vmem_budget, rows_target = 48 * 2 ** 20, 256
    else:                                # v5e / v6e: 128 MiB physical VMEM
        vmem_budget, rows_target = 100 * 2 ** 20, 512
    itm = wdt.itemsize

    def est_vmem(bb):
        rows = bb * T
        io = rows * F * 4 + bb * D * 4                      # x block + pooled out
        act = (6 * rows * D * 4                             # h / residual / LN temps
               + rows * 3 * D * (4 + itm)                   # qkv f32 + bf16 head stacks
               + 2 * H * bb * T * T * 4 + H * bb * T * T * itm   # scores, probs (+bf16)
               + rows * D * 4 + H * rows * D * 4            # pv + per-head out-proj
               + rows * Dff * (4 + itm))                    # FFN hidden (+bf16 copy)
        return weight_bytes + 2 * io + act                  # weights single-buffered

    if block_batch is None:
        bblk = max(1, min(B, rows_target // max(T, 1)))
        while bblk > 1 and est_vmem(bblk) > vmem_budget:
            bblk -= 1
        if B >= 2 and pl.cdiv(B, bblk) < 2:                 # >=2 grid steps
            bblk = pl.cdiv(B, 2)
    else:
        bblk = max(1, min(B, block_batch))
    G = pl.cdiv(B, bblk)
    # v7x has 2 TensorCores sharing the single "parallel" grid axis; keep G
    # even so neither core idles (gated on the 64 MiB-VMEM proxy — on 1-TC
    # v5e/v6e an extra padded step would be pure waste).
    if B >= 2 and G > 1 and G % 2 == 1 and vmem_cap <= 64 * 2 ** 20:
        G += 1
    Bpad = G * bblk

    x = x.astype(jnp.float32)
    if Bpad != B:
        x = jnp.concatenate(
            [x, jnp.zeros((Bpad - B, T, F), jnp.float32)], axis=0)
    x_blocks = x.reshape(G, bblk * T, F)

    vmem_limit = int(min(vmem_budget,
                         max(int(est_vmem(bblk) * 1.25), 32 * 2 ** 20)))

    flops = 2 * Bpad * T * F * D + L * (
        2 * Bpad * T * D * 3 * D          # qkv projection
        + 4 * Bpad * T * T * D            # QK^T and PV
        + 2 * Bpad * T * D * D            # out projection
        + 4 * Bpad * T * D * Dff)         # two FFN matmuls
    transcendentals = L * (Bpad * H * T * T + Bpad * T * Dff + 4 * Bpad * T)
    bytes_accessed = int(x_blocks.size) * 4 + Bpad * D * 4 + weight_bytes

    kernel = functools.partial(_encoder_kernel, num_layers=L, num_heads=H,
                               bblk=bblk, seq_len=T, dot_dtype=wdt)
    out_spec = pl.BlockSpec((1, bblk, D), lambda b: (b, 0, 0))

    def run(single_buffer_weights):
        in_specs = [pl.BlockSpec((1, bblk * T, F), lambda b: (b, 0, 0))]
        for a in weight_args:
            nd = a.ndim
            if single_buffer_weights:
                # Constant index_map across the grid -> fetched once; single
                # buffering halves the resident weight footprint.
                spec = pl.BlockSpec(tuple(a.shape),
                                    lambda b, _nd=nd: (0,) * _nd,
                                    pipeline_mode=pl.Buffered(1))
            else:
                spec = pl.BlockSpec(tuple(a.shape),
                                    lambda b, _nd=nd: (0,) * _nd)
            in_specs.append(spec)
        return pl.pallas_call(
            kernel,
            out_shape=jax.ShapeDtypeStruct((G, bblk, D), jnp.float32),
            grid=(G,),
            in_specs=in_specs,
            out_specs=out_spec,
            compiler_params=pltpu.CompilerParams(
                dimension_semantics=("parallel",),
                vmem_limit_bytes=vmem_limit),
            cost_estimate=pl.CostEstimate(flops=int(flops),
                                          transcendentals=int(transcendentals),
                                          bytes_accessed=int(bytes_accessed)),
        )(x_blocks, *weight_args)

    try:
        out = run(True)
    except Exception:
        out = run(False)     # fallback: default double-buffered weights

    return out.reshape(Bpad, D)[:B]                         # (B, D)


def init_params(key, input_feats, latent_dim, num_layers=2):
    D = latent_dim
    Dff = 4 * D                                 # dim_feedforward = 4 * latent_dim
    ks = jax.random.split(key, 5)

    def w(k, shape, scale=0.02):
        return (scale * jax.random.normal(k, shape)).astype(jnp.float32)

    return {
        "we": w(ks[0], (input_feats, D)),
        "be": jnp.zeros((1, D), jnp.float32),
        "wqkv": w(ks[1], (num_layers, D, 3 * D)),
        "bqkv": jnp.zeros((num_layers, 1, 3 * D), jnp.float32),
        "wo": w(ks[2], (num_layers, D, D)),
        "bo": jnp.zeros((num_layers, 1, D), jnp.float32),
        "ln1g": jnp.ones((num_layers, 1, D), jnp.float32),
        "ln1b": jnp.zeros((num_layers, 1, D), jnp.float32),
        "w1": w(ks[3], (num_layers, D, Dff)),
        "b1": jnp.zeros((num_layers, 1, Dff), jnp.float32),
        "w2": w(ks[4], (num_layers, Dff, D)),
        "b2": jnp.zeros((num_layers, 1, D), jnp.float32),
        "ln2g": jnp.ones((num_layers, 1, D), jnp.float32),
        "ln2b": jnp.zeros((num_layers, 1, D), jnp.float32),
    }


if __name__ == "__main__":
    B, T, F, D, L, H = 2, 8, 16, 32, 2, 4   # batch, seq, input_feats, latent, layers, heads
    key = jax.random.PRNGKey(0)
    kx, kp = jax.random.split(key)
    x = jax.random.normal(kx, (B, T, F), dtype=jnp.float32)
    params = init_params(kp, F, D, num_layers=L)

    # TODO(synk): production callers with padded sequences need a key-padding
    # mask in attention / mean pooling; the PyTorch module does not use one.
    out = disfluent_context_encoder(x, params, num_heads=H)
    out = jax.block_until_ready(out)
    assert out.shape == (B, D) and out.dtype == jnp.float32
    assert bool(jnp.all(jnp.isfinite(out)))
    print("KERNEL_OK")
</pallas_src>

<mosaic_0001>
module attributes {stable_mosaic.version = 11 : i64} {
  func.func @_encoder_kernel(%arg0: i32, %arg1: memref<1x8x16xf32, #tpu.memory_space<vmem>>, %arg2: memref<16x32xbf16, #tpu.memory_space<vmem>>, %arg3: memref<1x32xf32, #tpu.memory_space<vmem>>, %arg4: memref<2x32x96xbf16, #tpu.memory_space<vmem>>, %arg5: memref<2x1x96xf32, #tpu.memory_space<vmem>>, %arg6: memref<2x4x8x32xbf16, #tpu.memory_space<vmem>>, %arg7: memref<2x1x32xf32, #tpu.memory_space<vmem>>, %arg8: memref<2x1x32xf32, #tpu.memory_space<vmem>>, %arg9: memref<2x1x32xf32, #tpu.memory_space<vmem>>, %arg10: memref<2x32x128xbf16, #tpu.memory_space<vmem>>, %arg11: memref<2x1x128xf32, #tpu.memory_space<vmem>>, %arg12: memref<2x128x32xbf16, #tpu.memory_space<vmem>>, %arg13: memref<2x1x32xf32, #tpu.memory_space<vmem>>, %arg14: memref<2x1x32xf32, #tpu.memory_space<vmem>>, %arg15: memref<2x1x32xf32, #tpu.memory_space<vmem>>, %arg16: memref<1x1x32xf32, #tpu.memory_space<vmem>>) attributes {dimension_semantics = [#tpu.dimension_semantics<parallel>], iteration_bounds = array<i64: 2>, scalar_prefetch = 0 : i64, scratch_operands = 0 : i64, tpu.core_type = #tpu.core_type<tc>, window_params = [{transform_indices = @transform_0, window_bounds = array<i64: 1, 8, 16>}, {pipeline_mode = #tpu.pipeline_mode<synchronous>, transform_indices = @transform_1, window_bounds = array<i64: 16, 32>}, {pipeline_mode = #tpu.pipeline_mode<synchronous>, transform_indices = @transform_2, window_bounds = array<i64: 1, 32>}, {pipeline_mode = #tpu.pipeline_mode<synchronous>, transform_indices = @transform_3, window_bounds = array<i64: 2, 32, 96>}, {pipeline_mode = #tpu.pipeline_mode<synchronous>, transform_indices = @transform_4, window_bounds = array<i64: 2, 1, 96>}, {pipeline_mode = #tpu.pipeline_mode<synchronous>, transform_indices = @transform_5, window_bounds = array<i64: 2, 4, 8, 32>}, {pipeline_mode = #tpu.pipeline_mode<synchronous>, transform_indices = @transform_6, window_bounds = array<i64: 2, 1, 32>}, {pipeline_mode = #tpu.pipeline_mode<synchronous>, transform_indices = @transform_7, window_bounds = array<i64: 2, 1, 32>}, {pipeline_mode = #tpu.pipeline_mode<synchronous>, transform_indices = @transform_8, window_bounds = array<i64: 2, 1, 32>}, {pipeline_mode = #tpu.pipeline_mode<synchronous>, transform_indices = @transform_9, window_bounds = array<i64: 2, 32, 128>}, {pipeline_mode = #tpu.pipeline_mode<synchronous>, transform_indices = @transform_10, window_bounds = array<i64: 2, 1, 128>}, {pipeline_mode = #tpu.pipeline_mode<synchronous>, transform_indices = @transform_11, window_bounds = array<i64: 2, 128, 32>}, {pipeline_mode = #tpu.pipeline_mode<synchronous>, transform_indices = @transform_12, window_bounds = array<i64: 2, 1, 32>}, {pipeline_mode = #tpu.pipeline_mode<synchronous>, transform_indices = @transform_13, window_bounds = array<i64: 2, 1, 32>}, {pipeline_mode = #tpu.pipeline_mode<synchronous>, transform_indices = @transform_14, window_bounds = array<i64: 2, 1, 32>}, {transform_indices = @transform_15, window_bounds = array<i64: 1, 1, 32>}]} {
    %c0 = arith.constant 0 : index
    %c0_0 = arith.constant 0 : index
    %c0_1 = arith.constant 0 : index
    %0 = vector.load %arg1[%c0, %c0_0, %c0_1] : memref<1x8x16xf32, #tpu.memory_space<vmem>>, vector<1x8x16xf32>
    %1 = vector.shape_cast %0 : vector<1x8x16xf32> to vector<8x16xf32>
    %c0_2 = arith.constant 0 : index
    %c0_3 = arith.constant 0 : index
    %2 = vector.load %arg2[%c0_2, %c0_3] : memref<16x32xbf16, #tpu.memory_space<vmem>>, vector<16x32xbf16>
    %3 = arith.truncf %1 : vector<8x16xf32> to vector<8x16xbf16>
    %cst = arith.constant dense<0.000000e+00> : vector<8x32xf32>
    %4 = tpu.matmul %3, %2, %cst {dimension_numbers = #tpu.dot_dimension_numbers<[1], [0], [0], [1], [0, 0, 1, 1], [], []>} : vector<8x16xbf16>, vector<16x32xbf16>, vector<8x32xf32> -> vector<8x32xf32>
    %c0_4 = arith.constant 0 : index
    %c0_5 = arith.constant 0 : index
    %5 = vector.load %arg3[%c0_4, %c0_5] : memref<1x32xf32, #tpu.memory_space<vmem>>, vector<1x32xf32>
    %6 = vector.broadcast %5 : vector<1x32xf32> to vector<8x32xf32>
    %7 = arith.addf %4, %6 : vector<8x32xf32>
    %c0_6 = arith.constant 0 : index
    %c0_7 = arith.constant 0 : index
    %c0_8 = arith.constant 0 : index
    %8 = vector.load %arg4[%c0_6, %c0_7, %c0_8] : memref<2x32x96xbf16, #tpu.memory_space<vmem>>, vector<1x32x96xbf16>
    %9 = vector.shape_cast %8 : vector<1x32x96xbf16> to vector<32x96xbf16>
    %10 = arith.truncf %7 : vector<8x32xf32> to vector<8x32xbf16>
    %cst_9 = arith.constant dense<0.000000e+00> : vector<8x96xf32>
    %11 = tpu.matmul %10, %9, %cst_9 {dimension_numbers = #tpu.dot_dimension_numbers<[1], [0], [0], [1], [0, 0, 1, 1], [], []>} : vector<8x32xbf16>, vector<32x96xbf16>, vector<8x96xf32> -> vector<8x96xf32>
    %c0_10 = arith.constant 0 : index
    %c0_11 = arith.constant 0 : index
    %c0_12 = arith.constant 0 : index
    %12 = vector.load %arg5[%c0_10, %c0_11, %c0_12] : memref<2x1x96xf32, #tpu.memory_space<vmem>>, vector<1x1x96xf32>
    %13 = vector.shape_cast %12 : vector<1x1x96xf32> to vector<1x96xf32>
    %14 = vector.broadcast %13 : vector<1x96xf32> to vector<8x96xf32>
    %15 = arith.addf %11, %14 : vector<8x96xf32>
    %16 = vector.extract_strided_slice %15 {offsets = [0, 0], sizes = [8, 32], strides = [1, 1]} : vector<8x96xf32> to vector<8x32xf32>
    %17 = vector.shape_cast %16 : vector<8x32xf32> to vector<1x8x32xf32>
    %18 = vector.extract_strided_slice %15 {offsets = [0, 32], sizes = [8, 32], strides = [1, 1]} : vector<8x96xf32> to vector<8x32xf32>
    %19 = vector.shape_cast %18 : vector<8x32xf32> to vector<1x8x32xf32>
    %20 = vector.extract_strided_slice %15 {offsets = [0, 64], sizes = [8, 32], strides = [1, 1]} : vector<8x96xf32> to vector<8x32xf32>
    %21 = vector.shape_cast %20 : vector<8x32xf32> to vector<1x8x32xf32>
    %22 = vector.extract_strided_slice %17 {offsets = [0, 0, 0], sizes = [1, 8, 8], strides = [1, 1, 1]} : vector<1x8x32xf32> to vector<1x8x8xf32>
    %23 = vector.extract_strided_slice %17 {offsets = [0, 0, 8], sizes = [1, 8, 8], strides = [1, 1, 1]} : vector<1x8x32xf32> to vector<1x8x8xf32>
    %24 = vector.extract_strided_slice %17 {offsets = [0, 0, 16], sizes = [1, 8, 8], strides = [1, 1, 1]} : vector<1x8x32xf32> to vector<1x8x8xf32>
    %25 = vector.extract_strided_slice %17 {offsets = [0, 0, 24], sizes = [1, 8, 8], strides = [1, 1, 1]} : vector<1x8x32xf32> to vector<1x8x8xf32>
    %26 = tpu.concatenate %22, %23, %24, %25 in 0 : vector<1x8x8xf32>, vector<1x8x8xf32>, vector<1x8x8xf32>, vector<1x8x8xf32> -> vector<4x8x8xf32>
    %27 = arith.truncf %26 : vector<4x8x8xf32> to vector<4x8x8xbf16>
    %28 = vector.extract_strided_slice %19 {offsets = [0, 0, 0], sizes = [1, 8, 8], strides = [1, 1, 1]} : vector<1x8x32xf32> to vector<1x8x8xf32>
    %29 = vector.extract_strided_slice %19 {offsets = [0, 0, 8], sizes = [1, 8, 8], strides = [1, 1, 1]} : vector<1x8x32xf32> to vector<1x8x8xf32>
    %30 = vector.extract_strided_slice %19 {offsets = [0, 0, 16], sizes = [1, 8, 8], strides = [1, 1, 1]} : vector<1x8x32xf32> to vector<1x8x8xf32>
    %31 = vector.extract_strided_slice %19 {offsets = [0, 0, 24], sizes = [1, 8, 8], strides = [1, 1, 1]} : vector<1x8x32xf32> to vector<1x8x8xf32>
    %32 = tpu.concatenate %28, %29, %30, %31 in 0 : vector<1x8x8xf32>, vector<1x8x8xf32>, vector<1x8x8xf32>, vector<1x8x8xf32> -> vector<4x8x8xf32>
    %33 = arith.truncf %32 : vector<4x8x8xf32> to vector<4x8x8xbf16>
    %34 = vector.extract_strided_slice %21 {offsets = [0, 0, 0], sizes = [1, 8, 8], strides = [1, 1, 1]} : vector<1x8x32xf32> to vector<1x8x8xf32>
    %35 = vector.extract_strided_slice %21 {offsets = [0, 0, 8], sizes = [1, 8, 8], strides = [1, 1, 1]} : vector<1x8x32xf32> to vector<1x8x8xf32>
    %36 = vector.extract_strided_slice %21 {offsets = [0, 0, 16], sizes = [1, 8, 8], strides = [1, 1, 1]} : vector<1x8x32xf32> to vector<1x8x8xf32>
    %37 = vector.extract_strided_slice %21 {offsets = [0, 0, 24], sizes = [1, 8, 8], strides = [1, 1, 1]} : vector<1x8x32xf32> to vector<1x8x8xf32>
    %38 = tpu.concatenate %34, %35, %36, %37 in 0 : vector<1x8x8xf32>, vector<1x8x8xf32>, vector<1x8x8xf32>, vector<1x8x8xf32> -> vector<4x8x8xf32>
    %39 = arith.truncf %38 : vector<4x8x8xf32> to vector<4x8x8xbf16>
    %cst_13 = arith.constant dense<0.000000e+00> : vector<4x8x8xf32>
    %40 = tpu.matmul %27, %33, %cst_13 {dimension_numbers = #tpu.dot_dimension_numbers<[2], [2], [1], [1], [0, 0, 0, 1, 1, 1], [0], [0]>} : vector<4x8x8xbf16>, vector<4x8x8xbf16>, vector<4x8x8xf32> -> vector<4x8x8xf32>
    %cst_14 = arith.constant dense<0xFF800000> : vector<4x8xf32>
    %41 = vector.multi_reduction <maximumf>, %40, %cst_14 [2] : vector<4x8x8xf32> to vector<4x8xf32>
    %42 = vector.shape_cast %41 : vector<4x8xf32> to vector<4x8x1xf32>
    %43 = vector.broadcast %42 : vector<4x8x1xf32> to vector<4x8x8xf32>
    %44 = arith.subf %40, %43 : vector<4x8x8xf32>
    %45 = math.exp %44 : vector<4x8x8xf32>
    %cst_15 = arith.constant dense<0.000000e+00> : vector<4x8xf32>
    %46 = vector.multi_reduction <add>, %45, %cst_15 [2] : vector<4x8x8xf32> to vector<4x8xf32>
    %47 = vector.shape_cast %46 : vector<4x8xf32> to vector<4x8x1xf32>
    %48 = tpu.reciprocal %47 {approx = true} : vector<4x8x1xf32> -> vector<4x8x1xf32>
    %49 = vector.broadcast %48 : vector<4x8x1xf32> to vector<4x8x8xf32>
    %50 = arith.mulf %45, %49 : vector<4x8x8xf32>
    %51 = arith.truncf %50 : vector<4x8x8xf32> to vector<4x8x8xbf16>
    %cst_16 = arith.constant dense<0.000000e+00> : vector<4x8x8xf32>
    %52 = tpu.matmul %51, %39, %cst_16 {dimension_numbers = #tpu.dot_dimension_numbers<[2], [1], [1], [2], [0, 0, 0, 1, 1, 2], [0], [0]>} : vector<4x8x8xbf16>, vector<4x8x8xbf16>, vector<4x8x8xf32> -> vector<4x8x8xf32>
    %53 = arith.truncf %52 : vector<4x8x8xf32> to vector<4x8x8xbf16>
    %c0_17 = arith.constant 0 : index
    %c0_18 = arith.constant 0 : index
    %c0_19 = arith.constant 0 : index
    %c0_20 = arith.constant 0 : index
    %54 = vector.load %arg6[%c0_17, %c0_18, %c0_19, %c0_20] : memref<2x4x8x32xbf16, #tpu.memory_space<vmem>>, vector<1x4x8x32xbf16>
    %55 = vector.shape_cast %54 : vector<1x4x8x32xbf16> to vector<4x8x32xbf16>
    %cst_21 = arith.constant dense<0.000000e+00> : vector<4x8x32xf32>
    %56 = tpu.matmul %53, %55, %cst_21 {dimension_numbers = #tpu.dot_dimension_numbers<[2], [1], [1], [2], [0, 0, 0, 1, 1, 2], [0], [0]>} : vector<4x8x8xbf16>, vector<4x8x32xbf16>, vector<4x8x32xf32> -> vector<4x8x32xf32>
    %cst_22 = arith.constant dense<0.000000e+00> : vector<8x32xf32>
    %57 = vector.multi_reduction <add>, %56, %cst_22 [0] : vector<4x8x32xf32> to vector<8x32xf32>
    %c0_23 = arith.constant 0 : index
    %c0_24 = arith.constant 0 : index
    %c0_25 = arith.constant 0 : index
    %58 = vector.load %arg7[%c0_23, %c0_24, %c0_25] : memref<2x1x32xf32, #tpu.memory_space<vmem>>, vector<1x1x32xf32>
    %59 = vector.shape_cast %58 : vector<1x1x32xf32> to vector<1x32xf32>
    %60 = vector.broadcast %59 : vector<1x32xf32> to vector<8x32xf32>
    %61 = arith.addf %57, %60 : vector<8x32xf32>
    %62 = arith.addf %7, %61 : vector<8x32xf32>
    %c0_26 = arith.constant 0 : index
    %c0_27 = arith.constant 0 : index
    %c0_28 = arith.constant 0 : index
    %63 = vector.load %arg8[%c0_26, %c0_27, %c0_28] : memref<2x1x32xf32, #tpu.memory_space<vmem>>, vector<1x1x32xf32>
    %64 = vector.shape_cast %63 : vector<1x1x32xf32> to vector<1x32xf32>
    %c0_29 = arith.constant 0 : index
    %c0_30 = arith.constant 0 : index
    %c0_31 = arith.constant 0 : index
    %65 = vector.load %arg9[%c0_29, %c0_30, %c0_31] : memref<2x1x32xf32, #tpu.memory_space<vmem>>, vector<1x1x32xf32>
    %66 = vector.shape_cast %65 : vector<1x1x32xf32> to vector<1x32xf32>
    %cst_32 = arith.constant dense<0.000000e+00> : vector<8xf32>
    %67 = vector.multi_reduction <add>, %62, %cst_32 [1] : vector<8x32xf32> to vector<8xf32>
    %68 = vector.shape_cast %67 : vector<8xf32> to vector<8x1xf32>
    %cst_33 = arith.constant 3.200000e+01 : f32
    %69 = vector.broadcast %cst_33 : f32 to vector<8x1xf32>
    %70 = arith.divf %68, %69 : vector<8x1xf32>
    %71 = vector.broadcast %70 : vector<8x1xf32> to vector<8x32xf32>
    %72 = arith.subf %62, %71 : vector<8x32xf32>
    %73 = arith.mulf %72, %72 : vector<8x32xf32>
    %cst_34 = arith.constant dense<0.000000e+00> : vector<8xf32>
    %74 = vector.multi_reduction <add>, %73, %cst_34 [1] : vector<8x32xf32> to vector<8xf32>
    %75 = vector.shape_cast %74 : vector<8xf32> to vector<8x1xf32>
    %cst_35 = arith.constant 3.200000e+01 : f32
    %76 = vector.broadcast %cst_35 : f32 to vector<8x1xf32>
    %77 = arith.divf %75, %76 : vector<8x1xf32>
    %78 = vector.broadcast %70 : vector<8x1xf32> to vector<8x32xf32>
    %79 = arith.subf %62, %78 : vector<8x32xf32>
    %cst_36 = arith.constant 9.99999974E-6 : f32
    %80 = vector.broadcast %cst_36 : f32 to vector<8x1xf32>
    %81 = arith.addf %77, %80 : vector<8x1xf32>
    %82 = math.rsqrt %81 : vector<8x1xf32>
    %83 = vector.broadcast %82 : vector<8x1xf32> to vector<8x32xf32>
    %84 = arith.mulf %79, %83 : vector<8x32xf32>
    %85 = vector.broadcast %64 : vector<1x32xf32> to vector<8x32xf32>
    %86 = arith.mulf %84, %85 : vector<8x32xf32>
    %87 = vector.broadcast %66 : vector<1x32xf32> to vector<8x32xf32>
    %88 = arith.addf %86, %87 : vector<8x32xf32>
    %c0_37 = arith.constant 0 : index
    %c0_38 = arith.constant 0 : index
    %c0_39 = arith.constant 0 : index
    %89 = vector.load %arg10[%c0_37, %c0_38, %c0_39] : memref<2x32x128xbf16, #tpu.memory_space<vmem>>, vector<1x32x128xbf16>
    %90 = vector.shape_cast %89 : vector<1x32x128xbf16> to vector<32x128xbf16>
    %91 = arith.truncf %88 : vector<8x32xf32> to vector<8x32xbf16>
    %cst_40 = arith.constant dense<0.000000e+00> : vector<8x128xf32>
    %92 = tpu.matmul %91, %90, %cst_40 {dimension_numbers = #tpu.dot_dimension_numbers<[1], [0], [0], [1], [0, 0, 1, 1], [], []>} : vector<8x32xbf16>, vector<32x128xbf16>, vector<8x128xf32> -> vector<8x128xf32>
    %c0_41 = arith.constant 0 : index
    %c0_42 = arith.constant 0 : index
    %c0_43 = arith.constant 0 : index
    %93 = vector.load %arg11[%c0_41, %c0_42, %c0_43] : memref<2x1x128xf32, #tpu.memory_space<vmem>>, vector<1x1x128xf32>
    %94 = vector.shape_cast %93 : vector<1x1x128xf32> to vector<1x128xf32>
    %95 = vector.broadcast %94 : vector<1x128xf32> to vector<8x128xf32>
    %96 = arith.addf %92, %95 : vector<8x128xf32>
    %cst_44 = arith.constant 5.000000e-01 : f32
    %97 = vector.broadcast %cst_44 : f32 to vector<8x128xf32>
    %98 = arith.mulf %97, %96 : vector<8x128xf32>
    %cst_45 = arith.constant 4.471500e-02 : f32
    %99 = vector.broadcast %cst_45 : f32 to vector<8x128xf32>
    %100 = arith.mulf %99, %96 : vector<8x128xf32>
    %101 = arith.mulf %100, %96 : vector<8x128xf32>
    %102 = arith.mulf %101, %96 : vector<8x128xf32>
    %103 = arith.addf %96, %102 : vector<8x128xf32>
    %cst_46 = arith.constant 0.797884583 : f32
    %104 = vector.broadcast %cst_46 : f32 to vector<8x128xf32>
    %105 = arith.mulf %104, %103 : vector<8x128xf32>
    %106 = math.tanh %105 : vector<8x128xf32>
    %cst_47 = arith.constant 1.000000e+00 : f32
    %107 = vector.broadcast %cst_47 : f32 to vector<8x128xf32>
    %108 = arith.addf %107, %106 : vector<8x128xf32>
    %109 = arith.mulf %98, %108 : vector<8x128xf32>
    %c0_48 = arith.constant 0 : index
    %c0_49 = arith.constant 0 : index
    %c0_50 = arith.constant 0 : index
    %110 = vector.load %arg12[%c0_48, %c0_49, %c0_50] : memref<2x128x32xbf16, #tpu.memory_space<vmem>>, vector<1x128x32xbf16>
    %111 = vector.shape_cast %110 : vector<1x128x32xbf16> to vector<128x32xbf16>
    %112 = arith.truncf %109 : vector<8x128xf32> to vector<8x128xbf16>
    %cst_51 = arith.constant dense<0.000000e+00> : vector<8x32xf32>
    %113 = tpu.matmul %112, %111, %cst_51 {dimension_numbers = #tpu.dot_dimension_numbers<[1], [0], [0], [1], [0, 0, 1, 1], [], []>} : vector<8x128xbf16>, vector<128x32xbf16>, vector<8x32xf32> -> vector<8x32xf32>
    %c0_52 = arith.constant 0 : index
    %c0_53 = arith.constant 0 : index
    %c0_54 = arith.constant 0 : index
    %114 = vector.load %arg13[%c0_52, %c0_53, %c0_54] : memref<2x1x32xf32, #tpu.memory_space<vmem>>, vector<1x1x32xf32>
    %115 = vector.shape_cast %114 : vector<1x1x32xf32> to vector<1x32xf32>
    %116 = vector.broadcast %115 : vector<1x32xf32> to vector<8x32xf32>
    %117 = arith.addf %113, %116 : vector<8x32xf32>
    %118 = arith.addf %88, %117 : vector<8x32xf32>
    %c0_55 = arith.constant 0 : index
    %c0_56 = arith.constant 0 : index
    %c0_57 = arith.constant 0 : index
    %119 = vector.load %arg14[%c0_55, %c0_56, %c0_57] : memref<2x1x32xf32, #tpu.memory_space<vmem>>, vector<1x1x32xf32>
    %120 = vector.shape_cast %119 : vector<1x1x32xf32> to vector<1x32xf32>
    %c0_58 = arith.constant 0 : index
    %c0_59 = arith.constant 0 : index
    %c0_60 = arith.constant 0 : index
    %121 = vector.load %arg15[%c0_58, %c0_59, %c0_60] : memref<2x1x32xf32, #tpu.memory_space<vmem>>, vector<1x1x32xf32>
    %122 = vector.shape_cast %121 : vector<1x1x32xf32> to vector<1x32xf32>
    %cst_61 = arith.constant dense<0.000000e+00> : vector<8xf32>
    %123 = vector.multi_reduction <add>, %118, %cst_61 [1] : vector<8x32xf32> to vector<8xf32>
    %124 = vector.shape_cast %123 : vector<8xf32> to vector<8x1xf32>
    %cst_62 = arith.constant 3.200000e+01 : f32
    %125 = vector.broadcast %cst_62 : f32 to vector<8x1xf32>
    %126 = arith.divf %124, %125 : vector<8x1xf32>
    %127 = vector.broadcast %126 : vector<8x1xf32> to vector<8x32xf32>
    %128 = arith.subf %118, %127 : vector<8x32xf32>
    %129 = arith.mulf %128, %128 : vector<8x32xf32>
    %cst_63 = arith.constant dense<0.000000e+00> : vector<8xf32>
    %130 = vector.multi_reduction <add>, %129, %cst_63 [1] : vector<8x32xf32> to vector<8xf32>
    %131 = vector.shape_cast %130 : vector<8xf32> to vector<8x1xf32>
    %cst_64 = arith.constant 3.200000e+01 : f32
    %132 = vector.broadcast %cst_64 : f32 to vector<8x1xf32>
    %133 = arith.divf %131, %132 : vector<8x1xf32>
    %134 = vector.broadcast %126 : vector<8x1xf32> to vector<8x32xf32>
    %135 = arith.subf %118, %134 : vector<8x32xf32>
    %cst_65 = arith.constant 9.99999974E-6 : f32
    %136 = vector.broadcast %cst_65 : f32 to vector<8x1xf32>
    %137 = arith.addf %133, %136 : vector<8x1xf32>
    %138 = math.rsqrt %137 : vector<8x1xf32>
    %139 = vector.broadcast %138 : vector<8x1xf32> to vector<8x32xf32>
    %140 = arith.mulf %135, %139 : vector<8x32xf32>
    %141 = vector.broadcast %120 : vector<1x32xf32> to vector<8x32xf32>
    %142 = arith.mulf %140, %141 : vector<8x32xf32>
    %143 = vector.broadcast %122 : vector<1x32xf32> to vector<8x32xf32>
    %144 = arith.addf %142, %143 : vector<8x32xf32>
    %c1 = arith.constant 1 : index
    %c0_66 = arith.constant 0 : index
    %c0_67 = arith.constant 0 : index
    %145 = vector.load %arg4[%c1, %c0_66, %c0_67] : memref<2x32x96xbf16, #tpu.memory_space<vmem>>, vector<1x32x96xbf16>
    %146 = vector.shape_cast %145 : vector<1x32x96xbf16> to vector<32x96xbf16>
    %147 = arith.truncf %144 : vector<8x32xf32> to vector<8x32xbf16>
    %cst_68 = arith.constant dense<0.000000e+00> : vector<8x96xf32>
    %148 = tpu.matmul %147, %146, %cst_68 {dimension_numbers = #tpu.dot_dimension_numbers<[1], [0], [0], [1], [0, 0, 1, 1], [], []>} : vector<8x32xbf16>, vector<32x96xbf16>, vector<8x96xf32> -> vector<8x96xf32>
    %c1_69 = arith.constant 1 : index
    %c0_70 = arith.constant 0 : index
    %c0_71 = arith.constant 0 : index
    %149 = vector.load %arg5[%c1_69, %c0_70, %c0_71] : memref<2x1x96xf32, #tpu.memory_space<vmem>>, vector<1x1x96xf32>
    %150 = vector.shape_cast %149 : vector<1x1x96xf32> to vector<1x96xf32>
    %151 = vector.broadcast %150 : vector<1x96xf32> to vector<8x96xf32>
    %152 = arith.addf %148, %151 : vector<8x96xf32>
    %153 = vector.extract_strided_slice %152 {offsets = [0, 0], sizes = [8, 32], strides = [1, 1]} : vector<8x96xf32> to vector<8x32xf32>
    %154 = vector.shape_cast %153 : vector<8x32xf32> to vector<1x8x32xf32>
    %155 = vector.extract_strided_slice %152 {offsets = [0, 32], sizes = [8, 32], strides = [1, 1]} : vector<8x96xf32> to vector<8x32xf32>
    %156 = vector.shape_cast %155 : vector<8x32xf32> to vector<1x8x32xf32>
    %157 = vector.extract_strided_slice %152 {offsets = [0, 64], sizes = [8, 32], strides = [1, 1]} : vector<8x96xf32> to vector<8x32xf32>
    %158 = vector.shape_cast %157 : vector<8x32xf32> to vector<1x8x32xf32>
    %159 = vector.extract_strided_slice %154 {offsets = [0, 0, 0], sizes = [1, 8, 8], strides = [1, 1, 1]} : vector<1x8x32xf32> to vector<1x8x8xf32>
    %160 = vector.extract_strided_slice %154 {offsets = [0, 0, 8], sizes = [1, 8, 8], strides = [1, 1, 1]} : vector<1x8x32xf32> to vector<1x8x8xf32>
    %161 = vector.extract_strided_slice %154 {offsets = [0, 0, 16], sizes = [1, 8, 8], strides = [1, 1, 1]} : vector<1x8x32xf32> to vector<1x8x8xf32>
    %162 = vector.extract_strided_slice %154 {offsets = [0, 0, 24], sizes = [1, 8, 8], strides = [1, 1, 1]} : vector<1x8x32xf32> to vector<1x8x8xf32>
    %163 = tpu.concatenate %159, %160, %161, %162 in 0 : vector<1x8x8xf32>, vector<1x8x8xf32>, vector<1x8x8xf32>, vector<1x8x8xf32> -> vector<4x8x8xf32>
    %164 = arith.truncf %163 : vector<4x8x8xf32> to vector<4x8x8xbf16>
    %165 = vector.extract_strided_slice %156 {offsets = [0, 0, 0], sizes = [1, 8, 8], strides = [1, 1, 1]} : vector<1x8x32xf32> to vector<1x8x8xf32>
    %166 = vector.extract_strided_slice %156 {offsets = [0, 0, 8], sizes = [1, 8, 8], strides = [1, 1, 1]} : vector<1x8x32xf32> to vector<1x8x8xf32>
    %167 = vector.extract_strided_slice %156 {offsets = [0, 0, 16], sizes = [1, 8, 8], strides = [1, 1, 1]} : vector<1x8x32xf32> to vector<1x8x8xf32>
    %168 = vector.extract_strided_slice %156 {offsets = [0, 0, 24], sizes = [1, 8, 8], strides = [1, 1, 1]} : vector<1x8x32xf32> to vector<1x8x8xf32>
    %169 = tpu.concatenate %165, %166, %167, %168 in 0 : vector<1x8x8xf32>, vector<1x8x8xf32>, vector<1x8x8xf32>, vector<1x8x8xf32> -> vector<4x8x8xf32>
    %170 = arith.truncf %169 : vector<4x8x8xf32> to vector<4x8x8xbf16>
    %171 = vector.extract_strided_slice %158 {offsets = [0, 0, 0], sizes = [1, 8, 8], strides = [1, 1, 1]} : vector<1x8x32xf32> to vector<1x8x8xf32>
    %172 = vector.extract_strided_slice %158 {offsets = [0, 0, 8], sizes = [1, 8, 8], strides = [1, 1, 1]} : vector<1x8x32xf32> to vector<1x8x8xf32>
    %173 = vector.extract_strided_slice %158 {offsets = [0, 0, 16], sizes = [1, 8, 8], strides = [1, 1, 1]} : vector<1x8x32xf32> to vector<1x8x8xf32>
    %174 = vector.extract_strided_slice %158 {offsets = [0, 0, 24], sizes = [1, 8, 8], strides = [1, 1, 1]} : vector<1x8x32xf32> to vector<1x8x8xf32>
    %175 = tpu.concatenate %171, %172, %173, %174 in 0 : vector<1x8x8xf32>, vector<1x8x8xf32>, vector<1x8x8xf32>, vector<1x8x8xf32> -> vector<4x8x8xf32>
    %176 = arith.truncf %175 : vector<4x8x8xf32> to vector<4x8x8xbf16>
    %cst_72 = arith.constant dense<0.000000e+00> : vector<4x8x8xf32>
    %177 = tpu.matmul %164, %170, %cst_72 {dimension_numbers = #tpu.dot_dimension_numbers<[2], [2], [1], [1], [0, 0, 0, 1, 1, 1], [0], [0]>} : vector<4x8x8xbf16>, vector<4x8x8xbf16>, vector<4x8x8xf32> -> vector<4x8x8xf32>
    %cst_73 = arith.constant dense<0xFF800000> : vector<4x8xf32>
    %178 = vector.multi_reduction <maximumf>, %177, %cst_73 [2] : vector<4x8x8xf32> to vector<4x8xf32>
    %179 = vector.shape_cast %178 : vector<4x8xf32> to vector<4x8x1xf32>
    %180 = vector.broadcast %179 : vector<4x8x1xf32> to vector<4x8x8xf32>
    %181 = arith.subf %177, %180 : vector<4x8x8xf32>
    %182 = math.exp %181 : vector<4x8x8xf32>
    %cst_74 = arith.constant dense<0.000000e+00> : vector<4x8xf32>
    %183 = vector.multi_reduction <add>, %182, %cst_74 [2] : vector<4x8x8xf32> to vector<4x8xf32>
    %184 = vector.shape_cast %183 : vector<4x8xf32> to vector<4x8x1xf32>
    %185 = tpu.reciprocal %184 {approx = true} : vector<4x8x1xf32> -> vector<4x8x1xf32>
    %186 = vector.broadcast %185 : vector<4x8x1xf32> to vector<4x8x8xf32>
    %187 = arith.mulf %182, %186 : vector<4x8x8xf32>
    %188 = arith.truncf %187 : vector<4x8x8xf32> to vector<4x8x8xbf16>
    %cst_75 = arith.constant dense<0.000000e+00> : vector<4x8x8xf32>
    %189 = tpu.matmul %188, %176, %cst_75 {dimension_numbers = #tpu.dot_dimension_numbers<[2], [1], [1], [2], [0, 0, 0, 1, 1, 2], [0], [0]>} : vector<4x8x8xbf16>, vector<4x8x8xbf16>, vector<4x8x8xf32> -> vector<4x8x8xf32>
    %190 = arith.truncf %189 : vector<4x8x8xf32> to vector<4x8x8xbf16>
    %c1_76 = arith.constant 1 : index
    %c0_77 = arith.constant 0 : index
    %c0_78 = arith.constant 0 : index
    %c0_79 = arith.constant 0 : index
    %191 = vector.load %arg6[%c1_76, %c0_77, %c0_78, %c0_79] : memref<2x4x8x32xbf16, #tpu.memory_space<vmem>>, vector<1x4x8x32xbf16>
    %192 = vector.shape_cast %191 : vector<1x4x8x32xbf16> to vector<4x8x32xbf16>
    %cst_80 = arith.constant dense<0.000000e+00> : vector<4x8x32xf32>
    %193 = tpu.matmul %190, %192, %cst_80 {dimension_numbers = #tpu.dot_dimension_numbers<[2], [1], [1], [2], [0, 0, 0, 1, 1, 2], [0], [0]>} : vector<4x8x8xbf16>, vector<4x8x32xbf16>, vector<4x8x32xf32> -> vector<4x8x32xf32>
    %cst_81 = arith.constant dense<0.000000e+00> : vector<8x32xf32>
    %194 = vector.multi_reduction <add>, %193, %cst_81 [0] : vector<4x8x32xf32> to vector<8x32xf32>
    %c1_82 = arith.constant 1 : index
    %c0_83 = arith.constant 0 : index
    %c0_84 = arith.constant 0 : index
    %195 = vector.load %arg7[%c1_82, %c0_83, %c0_84] : memref<2x1x32xf32, #tpu.memory_space<vmem>>, vector<1x1x32xf32>
    %196 = vector.shape_cast %195 : vector<1x1x32xf32> to vector<1x32xf32>
    %197 = vector.broadcast %196 : vector<1x32xf32> to vector<8x32xf32>
    %198 = arith.addf %194, %197 : vector<8x32xf32>
    %199 = arith.addf %144, %198 : vector<8x32xf32>
    %c1_85 = arith.constant 1 : index
    %c0_86 = arith.constant 0 : index
    %c0_87 = arith.constant 0 : index
    %200 = vector.load %arg8[%c1_85, %c0_86, %c0_87] : memref<2x1x32xf32, #tpu.memory_space<vmem>>, vector<1x1x32xf32>
    %201 = vector.shape_cast %200 : vector<1x1x32xf32> to vector<1x32xf32>
    %c1_88 = arith.constant 1 : index
    %c0_89 = arith.constant 0 : index
    %c0_90 = arith.constant 0 : index
    %202 = vector.load %arg9[%c1_88, %c0_89, %c0_90] : memref<2x1x32xf32, #tpu.memory_space<vmem>>, vector<1x1x32xf32>
    %203 = vector.shape_cast %202 : vector<1x1x32xf32> to vector<1x32xf32>
    %cst_91 = arith.constant dense<0.000000e+00> : vector<8xf32>
    %204 = vector.multi_reduction <add>, %199, %cst_91 [1] : vector<8x32xf32> to vector<8xf32>
    %205 = vector.shape_cast %204 : vector<8xf32> to vector<8x1xf32>
    %cst_92 = arith.constant 3.200000e+01 : f32
    %206 = vector.broadcast %cst_92 : f32 to vector<8x1xf32>
    %207 = arith.divf %205, %206 : vector<8x1xf32>
    %208 = vector.broadcast %207 : vector<8x1xf32> to vector<8x32xf32>
    %209 = arith.subf %199, %208 : vector<8x32xf32>
    %210 = arith.mulf %209, %209 : vector<8x32xf32>
    %cst_93 = arith.constant dense<0.000000e+00> : vector<8xf32>
    %211 = vector.multi_reduction <add>, %210, %cst_93 [1] : vector<8x32xf32> to vector<8xf32>
    %212 = vector.shape_cast %211 : vector<8xf32> to vector<8x1xf32>
    %cst_94 = arith.constant 3.200000e+01 : f32
    %213 = vector.broadcast %cst_94 : f32 to vector<8x1xf32>
    %214 = arith.divf %212, %213 : vector<8x1xf32>
    %215 = vector.broadcast %207 : vector<8x1xf32> to vector<8x32xf32>
    %216 = arith.subf %199, %215 : vector<8x32xf32>
    %cst_95 = arith.constant 9.99999974E-6 : f32
    %217 = vector.broadcast %cst_95 : f32 to vector<8x1xf32>
    %218 = arith.addf %214, %217 : vector<8x1xf32>
    %219 = math.rsqrt %218 : vector<8x1xf32>
    %220 = vector.broadcast %219 : vector<8x1xf32> to vector<8x32xf32>
    %221 = arith.mulf %216, %220 : vector<8x32xf32>
    %222 = vector.broadcast %201 : vector<1x32xf32> to vector<8x32xf32>
    %223 = arith.mulf %221, %222 : vector<8x32xf32>
    %224 = vector.broadcast %203 : vector<1x32xf32> to vector<8x32xf32>
    %225 = arith.addf %223, %224 : vector<8x32xf32>
    %c1_96 = arith.constant 1 : index
    %c0_97 = arith.constant 0 : index
    %c0_98 = arith.constant 0 : index
    %226 = vector.load %arg10[%c1_96, %c0_97, %c0_98] : memref<2x32x128xbf16, #tpu.memory_space<vmem>>, vector<1x32x128xbf16>
    %227 = vector.shape_cast %226 : vector<1x32x128xbf16> to vector<32x128xbf16>
    %228 = arith.truncf %225 : vector<8x32xf32> to vector<8x32xbf16>
    %cst_99 = arith.constant dense<0.000000e+00> : vector<8x128xf32>
    %229 = tpu.matmul %228, %227, %cst_99 {dimension_numbers = #tpu.dot_dimension_numbers<[1], [0], [0], [1], [0, 0, 1, 1], [], []>} : vector<8x32xbf16>, vector<32x128xbf16>, vector<8x128xf32> -> vector<8x128xf32>
    %c1_100 = arith.constant 1 : index
    %c0_101 = arith.constant 0 : index
    %c0_102 = arith.constant 0 : index
    %230 = vector.load %arg11[%c1_100, %c0_101, %c0_102] : memref<2x1x128xf32, #tpu.memory_space<vmem>>, vector<1x1x128xf32>
    %231 = vector.shape_cast %230 : vector<1x1x128xf32> to vector<1x128xf32>
    %232 = vector.broadcast %231 : vector<1x128xf32> to vector<8x128xf32>
    %233 = arith.addf %229, %232 : vector<8x128xf32>
    %cst_103 = arith.constant 5.000000e-01 : f32
    %234 = vector.broadcast %cst_103 : f32 to vector<8x128xf32>
    %235 = arith.mulf %234, %233 : vector<8x128xf32>
    %cst_104 = arith.constant 4.471500e-02 : f32
    %236 = vector.broadcast %cst_104 : f32 to vector<8x128xf32>
    %237 = arith.mulf %236, %233 : vector<8x128xf32>
    %238 = arith.mulf %237, %233 : vector<8x128xf32>
    %239 = arith.mulf %238, %233 : vector<8x128xf32>
    %240 = arith.addf %233, %239 : vector<8x128xf32>
    %cst_105 = arith.constant 0.797884583 : f32
    %241 = vector.broadcast %cst_105 : f32 to vector<8x128xf32>
    %242 = arith.mulf %241, %240 : vector<8x128xf32>
    %243 = math.tanh %242 : vector<8x128xf32>
    %cst_106 = arith.constant 1.000000e+00 : f32
    %244 = vector.broadcast %cst_106 : f32 to vector<8x128xf32>
    %245 = arith.addf %244, %243 : vector<8x128xf32>
    %246 = arith.mulf %235, %245 : vector<8x128xf32>
    %c1_107 = arith.constant 1 : index
    %c0_108 = arith.constant 0 : index
    %c0_109 = arith.constant 0 : index
    %247 = vector.load %arg12[%c1_107, %c0_108, %c0_109] : memref<2x128x32xbf16, #tpu.memory_space<vmem>>, vector<1x128x32xbf16>
    %248 = vector.shape_cast %247 : vector<1x128x32xbf16> to vector<128x32xbf16>
    %249 = arith.truncf %246 : vector<8x128xf32> to vector<8x128xbf16>
    %cst_110 = arith.constant dense<0.000000e+00> : vector<8x32xf32>
    %250 = tpu.matmul %249, %248, %cst_110 {dimension_numbers = #tpu.dot_dimension_numbers<[1], [0], [0], [1], [0, 0, 1, 1], [], []>} : vector<8x128xbf16>, vector<128x32xbf16>, vector<8x32xf32> -> vector<8x32xf32>
    %c1_111 = arith.constant 1 : index
    %c0_112 = arith.constant 0 : index
    %c0_113 = arith.constant 0 : index
    %251 = vector.load %arg13[%c1_111, %c0_112, %c0_113] : memref<2x1x32xf32, #tpu.memory_space<vmem>>, vector<1x1x32xf32>
    %252 = vector.shape_cast %251 : vector<1x1x32xf32> to vector<1x32xf32>
    %253 = vector.broadcast %252 : vector<1x32xf32> to vector<8x32xf32>
    %254 = arith.addf %250, %253 : vector<8x32xf32>
    %255 = arith.addf %225, %254 : vector<8x32xf32>
    %c1_114 = arith.constant 1 : index
    %c0_115 = arith.constant 0 : index
    %c0_116 = arith.constant 0 : index
    %256 = vector.load %arg14[%c1_114, %c0_115, %c0_116] : memref<2x1x32xf32, #tpu.memory_space<vmem>>, vector<1x1x32xf32>
    %257 = vector.shape_cast %256 : vector<1x1x32xf32> to vector<1x32xf32>
    %c1_117 = arith.constant 1 : index
    %c0_118 = arith.constant 0 : index
    %c0_119 = arith.constant 0 : index
    %258 = vector.load %arg15[%c1_117, %c0_118, %c0_119] : memref<2x1x32xf32, #tpu.memory_space<vmem>>, vector<1x1x32xf32>
    %259 = vector.shape_cast %258 : vector<1x1x32xf32> to vector<1x32xf32>
    %cst_120 = arith.constant dense<0.000000e+00> : vector<8xf32>
    %260 = vector.multi_reduction <add>, %255, %cst_120 [1] : vector<8x32xf32> to vector<8xf32>
    %261 = vector.shape_cast %260 : vector<8xf32> to vector<8x1xf32>
    %cst_121 = arith.constant 3.200000e+01 : f32
    %262 = vector.broadcast %cst_121 : f32 to vector<8x1xf32>
    %263 = arith.divf %261, %262 : vector<8x1xf32>
    %264 = vector.broadcast %263 : vector<8x1xf32> to vector<8x32xf32>
    %265 = arith.subf %255, %264 : vector<8x32xf32>
    %266 = arith.mulf %265, %265 : vector<8x32xf32>
    %cst_122 = arith.constant dense<0.000000e+00> : vector<8xf32>
    %267 = vector.multi_reduction <add>, %266, %cst_122 [1] : vector<8x32xf32> to vector<8xf32>
    %268 = vector.shape_cast %267 : vector<8xf32> to vector<8x1xf32>
    %cst_123 = arith.constant 3.200000e+01 : f32
    %269 = vector.broadcast %cst_123 : f32 to vector<8x1xf32>
    %270 = arith.divf %268, %269 : vector<8x1xf32>
    %271 = vector.broadcast %263 : vector<8x1xf32> to vector<8x32xf32>
    %272 = arith.subf %255, %271 : vector<8x32xf32>
    %cst_124 = arith.constant 9.99999974E-6 : f32
    %273 = vector.broadcast %cst_124 : f32 to vector<8x1xf32>
    %274 = arith.addf %270, %273 : vector<8x1xf32>
    %275 = math.rsqrt %274 : vector<8x1xf32>
    %276 = vector.broadcast %275 : vector<8x1xf32> to vector<8x32xf32>
    %277 = arith.mulf %272, %276 : vector<8x32xf32>
    %278 = vector.broadcast %257 : vector<1x32xf32> to vector<8x32xf32>
    %279 = arith.mulf %277, %278 : vector<8x32xf32>
    %280 = vector.broadcast %259 : vector<1x32xf32> to vector<8x32xf32>
    %281 = arith.addf %279, %280 : vector<8x32xf32>
    %282 = vector.shape_cast %281 : vector<8x32xf32> to vector<1x8x32xf32>
    %cst_125 = arith.constant dense<0.000000e+00> : vector<1x32xf32>
    %283 = vector.multi_reduction <add>, %282, %cst_125 [1] : vector<1x8x32xf32> to vector<1x32xf32>
    %cst_126 = arith.constant 8.000000e+00 : f32
    %284 = vector.broadcast %cst_126 : f32 to vector<1x32xf32>
    %285 = arith.divf %283, %284 : vector<1x32xf32>
    %c0_127 = arith.constant 0 : index
    %c0_128 = arith.constant 0 : index
    %c0_129 = arith.constant 0 : index
    %286 = vector.load %arg16[%c0_127, %c0_128, %c0_129] : memref<1x1x32xf32, #tpu.memory_space<vmem>>, vector<1x1x32xf32>
    %287 = vector.shape_cast %286 : vector<1x1x32xf32> to vector<1x32xf32>
    %288 = vector.shape_cast %285 : vector<1x32xf32> to vector<1x1x32xf32>
    tpu.vector_store %arg16[%c0_127, %c0_128, %c0_129], %288 {strides = array<i32>} : memref<1x1x32xf32, #tpu.memory_space<vmem>>, vector<1x1x32xf32>,
    return
  }
  func.func @transform_0(%arg0: i32) -> (i32, i32, i32) {
    %c0_i32 = arith.constant 0 : i32
    %c0_i32_0 = arith.constant 0 : i32
    %c0_i32_1 = arith.constant 0 : i32
    return %arg0, %c0_i32, %c0_i32_0 : i32, i32, i32
  }
  func.func @transform_1(%arg0: i32) -> (i32, i32) {
    %c0_i32 = arith.constant 0 : i32
    %c0_i32_0 = arith.constant 0 : i32
    %c0_i32_1 = arith.constant 0 : i32
    return %c0_i32, %c0_i32_0 : i32, i32
  }
  func.func @transform_2(%arg0: i32) -> (i32, i32) {
    %c0_i32 = arith.constant 0 : i32
    %c0_i32_0 = arith.constant 0 : i32
    %c0_i32_1 = arith.constant 0 : i32
    return %c0_i32, %c0_i32_0 : i32, i32
  }
  func.func @transform_3(%arg0: i32) -> (i32, i32, i32) {
    %c0_i32 = arith.constant 0 : i32
    %c0_i32_0 = arith.constant 0 : i32
    %c0_i32_1 = arith.constant 0 : i32
    %c0_i32_2 = arith.constant 0 : i32
    return %c0_i32, %c0_i32_0, %c0_i32_1 : i32, i32, i32
  }
  func.func @transform_4(%arg0: i32) -> (i32, i32, i32) {
    %c0_i32 = arith.constant 0 : i32
    %c0_i32_0 = arith.constant 0 : i32
    %c0_i32_1 = arith.constant 0 : i32
    %c0_i32_2 = arith.constant 0 : i32
    return %c0_i32, %c0_i32_0, %c0_i32_1 : i32, i32, i32
  }
  func.func @transform_5(%arg0: i32) -> (i32, i32, i32, i32) {
    %c0_i32 = arith.constant 0 : i32
    %c0_i32_0 = arith.constant 0 : i32
    %c0_i32_1 = arith.constant 0 : i32
    %c0_i32_2 = arith.constant 0 : i32
    %c0_i32_3 = arith.constant 0 : i32
    return %c0_i32, %c0_i32_0, %c0_i32_1, %c0_i32_2 : i32, i32, i32, i32
  }
  func.func @transform_6(%arg0: i32) -> (i32, i32, i32) {
    %c0_i32 = arith.constant 0 : i32
    %c0_i32_0 = arith.constant 0 : i32
    %c0_i32_1 = arith.constant 0 : i32
    %c0_i32_2 = arith.constant 0 : i32
    return %c0_i32, %c0_i32_0, %c0_i32_1 : i32, i32, i32
  }
  func.func @transform_7(%arg0: i32) -> (i32, i32, i32) {
    %c0_i32 = arith.constant 0 : i32
    %c0_i32_0 = arith.constant 0 : i32
    %c0_i32_1 = arith.constant 0 : i32
    %c0_i32_2 = arith.constant 0 : i32
    return %c0_i32, %c0_i32_0, %c0_i32_1 : i32, i32, i32
  }
  func.func @transform_8(%arg0: i32) -> (i32, i32, i32) {
    %c0_i32 = arith.constant 0 : i32
    %c0_i32_0 = arith.constant 0 : i32
    %c0_i32_1 = arith.constant 0 : i32
    %c0_i32_2 = arith.constant 0 : i32
    return %c0_i32, %c0_i32_0, %c0_i32_1 : i32, i32, i32
  }
  func.func @transform_9(%arg0: i32) -> (i32, i32, i32) {
    %c0_i32 = arith.constant 0 : i32
    %c0_i32_0 = arith.constant 0 : i32
    %c0_i32_1 = arith.constant 0 : i32
    %c0_i32_2 = arith.constant 0 : i32
    return %c0_i32, %c0_i32_0, %c0_i32_1 : i32, i32, i32
  }
  func.func @transform_10(%arg0: i32) -> (i32, i32, i32) {
    %c0_i32 = arith.constant 0 : i32
    %c0_i32_0 = arith.constant 0 : i32
    %c0_i32_1 = arith.constant 0 : i32
    %c0_i32_2 = arith.constant 0 : i32
    return %c0_i32, %c0_i32_0, %c0_i32_1 : i32, i32, i32
  }
  func.func @transform_11(%arg0: i32) -> (i32, i32, i32) {
    %c0_i32 = arith.constant 0 : i32
    %c0_i32_0 = arith.constant 0 : i32
    %c0_i32_1 = arith.constant 0 : i32
    %c0_i32_2 = arith.constant 0 : i32
    return %c0_i32, %c0_i32_0, %c0_i32_1 : i32, i32, i32
  }
  func.func @transform_12(%arg0: i32) -> (i32, i32, i32) {
    %c0_i32 = arith.constant 0 : i32
    %c0_i32_0 = arith.constant 0 : i32
    %c0_i32_1 = arith.constant 0 : i32
    %c0_i32_2 = arith.constant 0 : i32
    return %c0_i32, %c0_i32_0, %c0_i32_1 : i32, i32, i32
  }
  func.func @transform_13(%arg0: i32) -> (i32, i32, i32) {
    %c0_i32 = arith.constant 0 : i32
    %c0_i32_0 = arith.constant 0 : i32
    %c0_i32_1 = arith.constant 0 : i32
    %c0_i32_2 = arith.constant 0 : i32
    return %c0_i32, %c0_i32_0, %c0_i32_1 : i32, i32, i32
  }
  func.func @transform_14(%arg0: i32) -> (i32, i32, i32) {
    %c0_i32 = arith.constant 0 : i32
    %c0_i32_0 = arith.constant 0 : i32
    %c0_i32_1 = arith.constant 0 : i32
    %c0_i32_2 = arith.constant 0 : i32
    return %c0_i32, %c0_i32_0, %c0_i32_1 : i32, i32, i32
  }
  func.func @transform_15(%arg0: i32) -> (i32, i32, i32) {
    %c0_i32 = arith.constant 0 : i32
    %c0_i32_0 = arith.constant 0 : i32
    %c0_i32_1 = arith.constant 0 : i32
    return %arg0, %c0_i32, %c0_i32_0 : i32, i32, i32
  }
}

module attributes {stable_mosaic.version = 11 : i64} {
  func.func @_encoder_kernel(%arg0: i32, %arg1: memref<1x8x16xf32, #tpu.memory_space<vmem>>, %arg2: memref<16x32xbf16, #tpu.memory_space<vmem>>, %arg3: memref<1x32xf32, #tpu.memory_space<vmem>>, %arg4: memref<2x32x96xbf16, #tpu.memory_space<vmem>>, %arg5: memref<2x1x96xf32, #tpu.memory_space<vmem>>, %arg6: memref<2x4x8x32xbf16, #tpu.memory_space<vmem>>, %arg7: memref<2x1x32xf32, #tpu.memory_space<vmem>>, %arg8: memref<2x1x32xf32, #tpu.memory_space<vmem>>, %arg9: memref<2x1x32xf32, #tpu.memory_space<vmem>>, %arg10: memref<2x32x128xbf16, #tpu.memory_space<vmem>>, %arg11: memref<2x1x128xf32, #tpu.memory_space<vmem>>, %arg12: memref<2x128x32xbf16, #tpu.memory_space<vmem>>, %arg13: memref<2x1x32xf32, #tpu.memory_space<vmem>>, %arg14: memref<2x1x32xf32, #tpu.memory_space<vmem>>, %arg15: memref<2x1x32xf32, #tpu.memory_space<vmem>>, %arg16: memref<1x1x32xf32, #tpu.memory_space<vmem>>) attributes {dimension_semantics = [#tpu.dimension_semantics<parallel>], iteration_bounds = array<i64: 2>, scalar_prefetch = 0 : i64, scratch_operands = 0 : i64, tpu.core_type = #tpu.core_type<tc>, window_params = [{transform_indices = @transform_0, window_bounds = array<i64: 1, 8, 16>}, {pipeline_mode = #tpu.pipeline_mode<synchronous>, transform_indices = @transform_1, window_bounds = array<i64: 16, 32>}, {pipeline_mode = #tpu.pipeline_mode<synchronous>, transform_indices = @transform_2, window_bounds = array<i64: 1, 32>}, {pipeline_mode = #tpu.pipeline_mode<synchronous>, transform_indices = @transform_3, window_bounds = array<i64: 2, 32, 96>}, {pipeline_mode = #tpu.pipeline_mode<synchronous>, transform_indices = @transform_4, window_bounds = array<i64: 2, 1, 96>}, {pipeline_mode = #tpu.pipeline_mode<synchronous>, transform_indices = @transform_5, window_bounds = array<i64: 2, 4, 8, 32>}, {pipeline_mode = #tpu.pipeline_mode<synchronous>, transform_indices = @transform_6, window_bounds = array<i64: 2, 1, 32>}, {pipeline_mode = #tpu.pipeline_mode<synchronous>, transform_indices = @transform_7, window_bounds = array<i64: 2, 1, 32>}, {pipeline_mode = #tpu.pipeline_mode<synchronous>, transform_indices = @transform_8, window_bounds = array<i64: 2, 1, 32>}, {pipeline_mode = #tpu.pipeline_mode<synchronous>, transform_indices = @transform_9, window_bounds = array<i64: 2, 32, 128>}, {pipeline_mode = #tpu.pipeline_mode<synchronous>, transform_indices = @transform_10, window_bounds = array<i64: 2, 1, 128>}, {pipeline_mode = #tpu.pipeline_mode<synchronous>, transform_indices = @transform_11, window_bounds = array<i64: 2, 128, 32>}, {pipeline_mode = #tpu.pipeline_mode<synchronous>, transform_indices = @transform_12, window_bounds = array<i64: 2, 1, 32>}, {pipeline_mode = #tpu.pipeline_mode<synchronous>, transform_indices = @transform_13, window_bounds = array<i64: 2, 1, 32>}, {pipeline_mode = #tpu.pipeline_mode<synchronous>, transform_indices = @transform_14, window_bounds = array<i64: 2, 1, 32>}, {transform_indices = @transform_15, window_bounds = array<i64: 1, 1, 32>}]} {
    %c0 = arith.constant 0 : index
    %c0_0 = arith.constant 0 : index
    %c0_1 = arith.constant 0 : index
    %0 = vector.load %arg1[%c0, %c0_0, %c0_1] : memref<1x8x16xf32, #tpu.memory_space<vmem>>, vector<1x8x16xf32>
    %1 = vector.shape_cast %0 : vector<1x8x16xf32> to vector<8x16xf32>
    %c0_2 = arith.constant 0 : index
    %c0_3 = arith.constant 0 : index
    %2 = vector.load %arg2[%c0_2, %c0_3] : memref<16x32xbf16, #tpu.memory_space<vmem>>, vector<16x32xbf16>
    %3 = arith.truncf %1 : vector<8x16xf32> to vector<8x16xbf16>
    %cst = arith.constant dense<0.000000e+00> : vector<8x32xf32>
    %4 = tpu.matmul %3, %2, %cst {dimension_numbers = #tpu.dot_dimension_numbers<[1], [0], [0], [1], [0, 0, 1, 1], [], []>} : vector<8x16xbf16>, vector<16x32xbf16>, vector<8x32xf32> -> vector<8x32xf32>
    %c0_4 = arith.constant 0 : index
    %c0_5 = arith.constant 0 : index
    %5 = vector.load %arg3[%c0_4, %c0_5] : memref<1x32xf32, #tpu.memory_space<vmem>>, vector<1x32xf32>
    %6 = vector.broadcast %5 : vector<1x32xf32> to vector<8x32xf32>
    %7 = arith.addf %4, %6 : vector<8x32xf32>
    %c0_6 = arith.constant 0 : index
    %c0_7 = arith.constant 0 : index
    %c0_8 = arith.constant 0 : index
    %8 = vector.load %arg4[%c0_6, %c0_7, %c0_8] : memref<2x32x96xbf16, #tpu.memory_space<vmem>>, vector<1x32x96xbf16>
    %9 = vector.shape_cast %8 : vector<1x32x96xbf16> to vector<32x96xbf16>
    %10 = arith.truncf %7 : vector<8x32xf32> to vector<8x32xbf16>
    %cst_9 = arith.constant dense<0.000000e+00> : vector<8x96xf32>
    %11 = tpu.matmul %10, %9, %cst_9 {dimension_numbers = #tpu.dot_dimension_numbers<[1], [0], [0], [1], [0, 0, 1, 1], [], []>} : vector<8x32xbf16>, vector<32x96xbf16>, vector<8x96xf32> -> vector<8x96xf32>
    %c0_10 = arith.constant 0 : index
    %c0_11 = arith.constant 0 : index
    %c0_12 = arith.constant 0 : index
    %12 = vector.load %arg5[%c0_10, %c0_11, %c0_12] : memref<2x1x96xf32, #tpu.memory_space<vmem>>, vector<1x1x96xf32>
    %13 = vector.shape_cast %12 : vector<1x1x96xf32> to vector<1x96xf32>
    %14 = vector.broadcast %13 : vector<1x96xf32> to vector<8x96xf32>
    %15 = arith.addf %11, %14 : vector<8x96xf32>
    %16 = vector.extract_strided_slice %15 {offsets = [0, 0], sizes = [8, 32], strides = [1, 1]} : vector<8x96xf32> to vector<8x32xf32>
    %17 = vector.shape_cast %16 : vector<8x32xf32> to vector<1x8x32xf32>
    %18 = vector.extract_strided_slice %15 {offsets = [0, 32], sizes = [8, 32], strides = [1, 1]} : vector<8x96xf32> to vector<8x32xf32>
    %19 = vector.shape_cast %18 : vector<8x32xf32> to vector<1x8x32xf32>
    %20 = vector.extract_strided_slice %15 {offsets = [0, 64], sizes = [8, 32], strides = [1, 1]} : vector<8x96xf32> to vector<8x32xf32>
    %21 = vector.shape_cast %20 : vector<8x32xf32> to vector<1x8x32xf32>
    %22 = vector.extract_strided_slice %17 {offsets = [0, 0, 0], sizes = [1, 8, 8], strides = [1, 1, 1]} : vector<1x8x32xf32> to vector<1x8x8xf32>
    %23 = vector.extract_strided_slice %17 {offsets = [0, 0, 8], sizes = [1, 8, 8], strides = [1, 1, 1]} : vector<1x8x32xf32> to vector<1x8x8xf32>
    %24 = vector.extract_strided_slice %17 {offsets = [0, 0, 16], sizes = [1, 8, 8], strides = [1, 1, 1]} : vector<1x8x32xf32> to vector<1x8x8xf32>
    %25 = vector.extract_strided_slice %17 {offsets = [0, 0, 24], sizes = [1, 8, 8], strides = [1, 1, 1]} : vector<1x8x32xf32> to vector<1x8x8xf32>
    %26 = tpu.concatenate %22, %23, %24, %25 in 0 : vector<1x8x8xf32>, vector<1x8x8xf32>, vector<1x8x8xf32>, vector<1x8x8xf32> -> vector<4x8x8xf32>
    %27 = arith.truncf %26 : vector<4x8x8xf32> to vector<4x8x8xbf16>
    %28 = vector.extract_strided_slice %19 {offsets = [0, 0, 0], sizes = [1, 8, 8], strides = [1, 1, 1]} : vector<1x8x32xf32> to vector<1x8x8xf32>
    %29 = vector.extract_strided_slice %19 {offsets = [0, 0, 8], sizes = [1, 8, 8], strides = [1, 1, 1]} : vector<1x8x32xf32> to vector<1x8x8xf32>
    %30 = vector.extract_strided_slice %19 {offsets = [0, 0, 16], sizes = [1, 8, 8], strides = [1, 1, 1]} : vector<1x8x32xf32> to vector<1x8x8xf32>
    %31 = vector.extract_strided_slice %19 {offsets = [0, 0, 24], sizes = [1, 8, 8], strides = [1, 1, 1]} : vector<1x8x32xf32> to vector<1x8x8xf32>
    %32 = tpu.concatenate %28, %29, %30, %31 in 0 : vector<1x8x8xf32>, vector<1x8x8xf32>, vector<1x8x8xf32>, vector<1x8x8xf32> -> vector<4x8x8xf32>
    %33 = arith.truncf %32 : vector<4x8x8xf32> to vector<4x8x8xbf16>
    %34 = vector.extract_strided_slice %21 {offsets = [0, 0, 0], sizes = [1, 8, 8], strides = [1, 1, 1]} : vector<1x8x32xf32> to vector<1x8x8xf32>
    %35 = vector.extract_strided_slice %21 {offsets = [0, 0, 8], sizes = [1, 8, 8], strides = [1, 1, 1]} : vector<1x8x32xf32> to vector<1x8x8xf32>
    %36 = vector.extract_strided_slice %21 {offsets = [0, 0, 16], sizes = [1, 8, 8], strides = [1, 1, 1]} : vector<1x8x32xf32> to vector<1x8x8xf32>
    %37 = vector.extract_strided_slice %21 {offsets = [0, 0, 24], sizes = [1, 8, 8], strides = [1, 1, 1]} : vector<1x8x32xf32> to vector<1x8x8xf32>
    %38 = tpu.concatenate %34, %35, %36, %37 in 0 : vector<1x8x8xf32>, vector<1x8x8xf32>, vector<1x8x8xf32>, vector<1x8x8xf32> -> vector<4x8x8xf32>
    %39 = arith.truncf %38 : vector<4x8x8xf32> to vector<4x8x8xbf16>
    %cst_13 = arith.constant dense<0.000000e+00> : vector<4x8x8xf32>
    %40 = tpu.matmul %27, %33, %cst_13 {dimension_numbers = #tpu.dot_dimension_numbers<[2], [2], [1], [1], [0, 0, 0, 1, 1, 1], [0], [0]>} : vector<4x8x8xbf16>, vector<4x8x8xbf16>, vector<4x8x8xf32> -> vector<4x8x8xf32>
    %cst_14 = arith.constant dense<0xFF800000> : vector<4x8xf32>
    %41 = vector.multi_reduction <maximumf>, %40, %cst_14 [2] : vector<4x8x8xf32> to vector<4x8xf32>
    %42 = vector.shape_cast %41 : vector<4x8xf32> to vector<4x8x1xf32>
    %43 = vector.broadcast %42 : vector<4x8x1xf32> to vector<4x8x8xf32>
    %44 = arith.subf %40, %43 : vector<4x8x8xf32>
    %45 = math.exp %44 : vector<4x8x8xf32>
    %cst_15 = arith.constant dense<0.000000e+00> : vector<4x8xf32>
    %46 = vector.multi_reduction <add>, %45, %cst_15 [2] : vector<4x8x8xf32> to vector<4x8xf32>
    %47 = vector.shape_cast %46 : vector<4x8xf32> to vector<4x8x1xf32>
    %48 = tpu.reciprocal %47 {approx = true} : vector<4x8x1xf32> -> vector<4x8x1xf32>
    %49 = vector.broadcast %48 : vector<4x8x1xf32> to vector<4x8x8xf32>
    %50 = arith.mulf %45, %49 : vector<4x8x8xf32>
    %51 = arith.truncf %50 : vector<4x8x8xf32> to vector<4x8x8xbf16>
    %cst_16 = arith.constant dense<0.000000e+00> : vector<4x8x8xf32>
    %52 = tpu.matmul %51, %39, %cst_16 {dimension_numbers = #tpu.dot_dimension_numbers<[2], [1], [1], [2], [0, 0, 0, 1, 1, 2], [0], [0]>} : vector<4x8x8xbf16>, vector<4x8x8xbf16>, vector<4x8x8xf32> -> vector<4x8x8xf32>
    %53 = arith.truncf %52 : vector<4x8x8xf32> to vector<4x8x8xbf16>
    %c0_17 = arith.constant 0 : index
    %c0_18 = arith.constant 0 : index
    %c0_19 = arith.constant 0 : index
    %c0_20 = arith.constant 0 : index
    %54 = vector.load %arg6[%c0_17, %c0_18, %c0_19, %c0_20] : memref<2x4x8x32xbf16, #tpu.memory_space<vmem>>, vector<1x4x8x32xbf16>
    %55 = vector.shape_cast %54 : vector<1x4x8x32xbf16> to vector<4x8x32xbf16>
    %cst_21 = arith.constant dense<0.000000e+00> : vector<4x8x32xf32>
    %56 = tpu.matmul %53, %55, %cst_21 {dimension_numbers = #tpu.dot_dimension_numbers<[2], [1], [1], [2], [0, 0, 0, 1, 1, 2], [0], [0]>} : vector<4x8x8xbf16>, vector<4x8x32xbf16>, vector<4x8x32xf32> -> vector<4x8x32xf32>
    %cst_22 = arith.constant dense<0.000000e+00> : vector<8x32xf32>
    %57 = vector.multi_reduction <add>, %56, %cst_22 [0] : vector<4x8x32xf32> to vector<8x32xf32>
    %c0_23 = arith.constant 0 : index
    %c0_24 = arith.constant 0 : index
    %c0_25 = arith.constant 0 : index
    %58 = vector.load %arg7[%c0_23, %c0_24, %c0_25] : memref<2x1x32xf32, #tpu.memory_space<vmem>>, vector<1x1x32xf32>
    %59 = vector.shape_cast %58 : vector<1x1x32xf32> to vector<1x32xf32>
    %60 = vector.broadcast %59 : vector<1x32xf32> to vector<8x32xf32>
    %61 = arith.addf %57, %60 : vector<8x32xf32>
    %62 = arith.addf %7, %61 : vector<8x32xf32>
    %c0_26 = arith.constant 0 : index
    %c0_27 = arith.constant 0 : index
    %c0_28 = arith.constant 0 : index
    %63 = vector.load %arg8[%c0_26, %c0_27, %c0_28] : memref<2x1x32xf32, #tpu.memory_space<vmem>>, vector<1x1x32xf32>
    %64 = vector.shape_cast %63 : vector<1x1x32xf32> to vector<1x32xf32>
    %c0_29 = arith.constant 0 : index
    %c0_30 = arith.constant 0 : index
    %c0_31 = arith.constant 0 : index
    %65 = vector.load %arg9[%c0_29, %c0_30, %c0_31] : memref<2x1x32xf32, #tpu.memory_space<vmem>>, vector<1x1x32xf32>
    %66 = vector.shape_cast %65 : vector<1x1x32xf32> to vector<1x32xf32>
    %cst_32 = arith.constant dense<0.000000e+00> : vector<8xf32>
    %67 = vector.multi_reduction <add>, %62, %cst_32 [1] : vector<8x32xf32> to vector<8xf32>
    %68 = vector.shape_cast %67 : vector<8xf32> to vector<8x1xf32>
    %cst_33 = arith.constant 3.200000e+01 : f32
    %69 = vector.broadcast %cst_33 : f32 to vector<8x1xf32>
    %70 = arith.divf %68, %69 : vector<8x1xf32>
    %71 = vector.broadcast %70 : vector<8x1xf32> to vector<8x32xf32>
    %72 = arith.subf %62, %71 : vector<8x32xf32>
    %73 = arith.mulf %72, %72 : vector<8x32xf32>
    %cst_34 = arith.constant dense<0.000000e+00> : vector<8xf32>
    %74 = vector.multi_reduction <add>, %73, %cst_34 [1] : vector<8x32xf32> to vector<8xf32>
    %75 = vector.shape_cast %74 : vector<8xf32> to vector<8x1xf32>
    %cst_35 = arith.constant 3.200000e+01 : f32
    %76 = vector.broadcast %cst_35 : f32 to vector<8x1xf32>
    %77 = arith.divf %75, %76 : vector<8x1xf32>
    %78 = vector.broadcast %70 : vector<8x1xf32> to vector<8x32xf32>
    %79 = arith.subf %62, %78 : vector<8x32xf32>
    %cst_36 = arith.constant 9.99999974E-6 : f32
    %80 = vector.broadcast %cst_36 : f32 to vector<8x1xf32>
    %81 = arith.addf %77, %80 : vector<8x1xf32>
    %82 = math.rsqrt %81 : vector<8x1xf32>
    %83 = vector.broadcast %82 : vector<8x1xf32> to vector<8x32xf32>
    %84 = arith.mulf %79, %83 : vector<8x32xf32>
    %85 = vector.broadcast %64 : vector<1x32xf32> to vector<8x32xf32>
    %86 = arith.mulf %84, %85 : vector<8x32xf32>
    %87 = vector.broadcast %66 : vector<1x32xf32> to vector<8x32xf32>
    %88 = arith.addf %86, %87 : vector<8x32xf32>
    %c0_37 = arith.constant 0 : index
    %c0_38 = arith.constant 0 : index
    %c0_39 = arith.constant 0 : index
    %89 = vector.load %arg10[%c0_37, %c0_38, %c0_39] : memref<2x32x128xbf16, #tpu.memory_space<vmem>>, vector<1x32x128xbf16>
    %90 = vector.shape_cast %89 : vector<1x32x128xbf16> to vector<32x128xbf16>
    %91 = arith.truncf %88 : vector<8x32xf32> to vector<8x32xbf16>
    %cst_40 = arith.constant dense<0.000000e+00> : vector<8x128xf32>
    %92 = tpu.matmul %91, %90, %cst_40 {dimension_numbers = #tpu.dot_dimension_numbers<[1], [0], [0], [1], [0, 0, 1, 1], [], []>} : vector<8x32xbf16>, vector<32x128xbf16>, vector<8x128xf32> -> vector<8x128xf32>
    %c0_41 = arith.constant 0 : index
    %c0_42 = arith.constant 0 : index
    %c0_43 = arith.constant 0 : index
    %93 = vector.load %arg11[%c0_41, %c0_42, %c0_43] : memref<2x1x128xf32, #tpu.memory_space<vmem>>, vector<1x1x128xf32>
    %94 = vector.shape_cast %93 : vector<1x1x128xf32> to vector<1x128xf32>
    %95 = vector.broadcast %94 : vector<1x128xf32> to vector<8x128xf32>
    %96 = arith.addf %92, %95 : vector<8x128xf32>
    %cst_44 = arith.constant 5.000000e-01 : f32
    %97 = vector.broadcast %cst_44 : f32 to vector<8x128xf32>
    %98 = arith.mulf %97, %96 : vector<8x128xf32>
    %cst_45 = arith.constant 4.471500e-02 : f32
    %99 = vector.broadcast %cst_45 : f32 to vector<8x128xf32>
    %100 = arith.mulf %99, %96 : vector<8x128xf32>
    %101 = arith.mulf %100, %96 : vector<8x128xf32>
    %102 = arith.mulf %101, %96 : vector<8x128xf32>
    %103 = arith.addf %96, %102 : vector<8x128xf32>
    %cst_46 = arith.constant 0.797884583 : f32
    %104 = vector.broadcast %cst_46 : f32 to vector<8x128xf32>
    %105 = arith.mulf %104, %103 : vector<8x128xf32>
    %106 = math.tanh %105 : vector<8x128xf32>
    %cst_47 = arith.constant 1.000000e+00 : f32
    %107 = vector.broadcast %cst_47 : f32 to vector<8x128xf32>
    %108 = arith.addf %107, %106 : vector<8x128xf32>
    %109 = arith.mulf %98, %108 : vector<8x128xf32>
    %c0_48 = arith.constant 0 : index
    %c0_49 = arith.constant 0 : index
    %c0_50 = arith.constant 0 : index
    %110 = vector.load %arg12[%c0_48, %c0_49, %c0_50] : memref<2x128x32xbf16, #tpu.memory_space<vmem>>, vector<1x128x32xbf16>
    %111 = vector.shape_cast %110 : vector<1x128x32xbf16> to vector<128x32xbf16>
    %112 = arith.truncf %109 : vector<8x128xf32> to vector<8x128xbf16>
    %cst_51 = arith.constant dense<0.000000e+00> : vector<8x32xf32>
    %113 = tpu.matmul %112, %111, %cst_51 {dimension_numbers = #tpu.dot_dimension_numbers<[1], [0], [0], [1], [0, 0, 1, 1], [], []>} : vector<8x128xbf16>, vector<128x32xbf16>, vector<8x32xf32> -> vector<8x32xf32>
    %c0_52 = arith.constant 0 : index
    %c0_53 = arith.constant 0 : index
    %c0_54 = arith.constant 0 : index
    %114 = vector.load %arg13[%c0_52, %c0_53, %c0_54] : memref<2x1x32xf32, #tpu.memory_space<vmem>>, vector<1x1x32xf32>
    %115 = vector.shape_cast %114 : vector<1x1x32xf32> to vector<1x32xf32>
    %116 = vector.broadcast %115 : vector<1x32xf32> to vector<8x32xf32>
    %117 = arith.addf %113, %116 : vector<8x32xf32>
    %118 = arith.addf %88, %117 : vector<8x32xf32>
    %c0_55 = arith.constant 0 : index
    %c0_56 = arith.constant 0 : index
    %c0_57 = arith.constant 0 : index
    %119 = vector.load %arg14[%c0_55, %c0_56, %c0_57] : memref<2x1x32xf32, #tpu.memory_space<vmem>>, vector<1x1x32xf32>
    %120 = vector.shape_cast %119 : vector<1x1x32xf32> to vector<1x32xf32>
    %c0_58 = arith.constant 0 : index
    %c0_59 = arith.constant 0 : index
    %c0_60 = arith.constant 0 : index
    %121 = vector.load %arg15[%c0_58, %c0_59, %c0_60] : memref<2x1x32xf32, #tpu.memory_space<vmem>>, vector<1x1x32xf32>
    %122 = vector.shape_cast %121 : vector<1x1x32xf32> to vector<1x32xf32>
    %cst_61 = arith.constant dense<0.000000e+00> : vector<8xf32>
    %123 = vector.multi_reduction <add>, %118, %cst_61 [1] : vector<8x32xf32> to vector<8xf32>
    %124 = vector.shape_cast %123 : vector<8xf32> to vector<8x1xf32>
    %cst_62 = arith.constant 3.200000e+01 : f32
    %125 = vector.broadcast %cst_62 : f32 to vector<8x1xf32>
    %126 = arith.divf %124, %125 : vector<8x1xf32>
    %127 = vector.broadcast %126 : vector<8x1xf32> to vector<8x32xf32>
    %128 = arith.subf %118, %127 : vector<8x32xf32>
    %129 = arith.mulf %128, %128 : vector<8x32xf32>
    %cst_63 = arith.constant dense<0.000000e+00> : vector<8xf32>
    %130 = vector.multi_reduction <add>, %129, %cst_63 [1] : vector<8x32xf32> to vector<8xf32>
    %131 = vector.shape_cast %130 : vector<8xf32> to vector<8x1xf32>
    %cst_64 = arith.constant 3.200000e+01 : f32
    %132 = vector.broadcast %cst_64 : f32 to vector<8x1xf32>
    %133 = arith.divf %131, %132 : vector<8x1xf32>
    %134 = vector.broadcast %126 : vector<8x1xf32> to vector<8x32xf32>
    %135 = arith.subf %118, %134 : vector<8x32xf32>
    %cst_65 = arith.constant 9.99999974E-6 : f32
    %136 = vector.broadcast %cst_65 : f32 to vector<8x1xf32>
    %137 = arith.addf %133, %136 : vector<8x1xf32>
    %138 = math.rsqrt %137 : vector<8x1xf32>
    %139 = vector.broadcast %138 : vector<8x1xf32> to vector<8x32xf32>
    %140 = arith.mulf %135, %139 : vector<8x32xf32>
    %141 = vector.broadcast %120 : vector<1x32xf32> to vector<8x32xf32>
    %142 = arith.mulf %140, %141 : vector<8x32xf32>
    %143 = vector.broadcast %122 : vector<1x32xf32> to vector<8x32xf32>
    %144 = arith.addf %142, %143 : vector<8x32xf32>
    %c1 = arith.constant 1 : index
    %c0_66 = arith.constant 0 : index
    %c0_67 = arith.constant 0 : index
    %145 = vector.load %arg4[%c1, %c0_66, %c0_67] : memref<2x32x96xbf16, #tpu.memory_space<vmem>>, vector<1x32x96xbf16>
    %146 = vector.shape_cast %145 : vector<1x32x96xbf16> to vector<32x96xbf16>
    %147 = arith.truncf %144 : vector<8x32xf32> to vector<8x32xbf16>
    %cst_68 = arith.constant dense<0.000000e+00> : vector<8x96xf32>
    %148 = tpu.matmul %147, %146, %cst_68 {dimension_numbers = #tpu.dot_dimension_numbers<[1], [0], [0], [1], [0, 0, 1, 1], [], []>} : vector<8x32xbf16>, vector<32x96xbf16>, vector<8x96xf32> -> vector<8x96xf32>
    %c1_69 = arith.constant 1 : index
    %c0_70 = arith.constant 0 : index
    %c0_71 = arith.constant 0 : index
    %149 = vector.load %arg5[%c1_69, %c0_70, %c0_71] : memref<2x1x96xf32, #tpu.memory_space<vmem>>, vector<1x1x96xf32>
    %150 = vector.shape_cast %149 : vector<1x1x96xf32> to vector<1x96xf32>
    %151 = vector.broadcast %150 : vector<1x96xf32> to vector<8x96xf32>
    %152 = arith.addf %148, %151 : vector<8x96xf32>
    %153 = vector.extract_strided_slice %152 {offsets = [0, 0], sizes = [8, 32], strides = [1, 1]} : vector<8x96xf32> to vector<8x32xf32>
    %154 = vector.shape_cast %153 : vector<8x32xf32> to vector<1x8x32xf32>
    %155 = vector.extract_strided_slice %152 {offsets = [0, 32], sizes = [8, 32], strides = [1, 1]} : vector<8x96xf32> to vector<8x32xf32>
    %156 = vector.shape_cast %155 : vector<8x32xf32> to vector<1x8x32xf32>
    %157 = vector.extract_strided_slice %152 {offsets = [0, 64], sizes = [8, 32], strides = [1, 1]} : vector<8x96xf32> to vector<8x32xf32>
    %158 = vector.shape_cast %157 : vector<8x32xf32> to vector<1x8x32xf32>
    %159 = vector.extract_strided_slice %154 {offsets = [0, 0, 0], sizes = [1, 8, 8], strides = [1, 1, 1]} : vector<1x8x32xf32> to vector<1x8x8xf32>
    %160 = vector.extract_strided_slice %154 {offsets = [0, 0, 8], sizes = [1, 8, 8], strides = [1, 1, 1]} : vector<1x8x32xf32> to vector<1x8x8xf32>
    %161 = vector.extract_strided_slice %154 {offsets = [0, 0, 16], sizes = [1, 8, 8], strides = [1, 1, 1]} : vector<1x8x32xf32> to vector<1x8x8xf32>
    %162 = vector.extract_strided_slice %154 {offsets = [0, 0, 24], sizes = [1, 8, 8], strides = [1, 1, 1]} : vector<1x8x32xf32> to vector<1x8x8xf32>
    %163 = tpu.concatenate %159, %160, %161, %162 in 0 : vector<1x8x8xf32>, vector<1x8x8xf32>, vector<1x8x8xf32>, vector<1x8x8xf32> -> vector<4x8x8xf32>
    %164 = arith.truncf %163 : vector<4x8x8xf32> to vector<4x8x8xbf16>
    %165 = vector.extract_strided_slice %156 {offsets = [0, 0, 0], sizes = [1, 8, 8], strides = [1, 1, 1]} : vector<1x8x32xf32> to vector<1x8x8xf32>
    %166 = vector.extract_strided_slice %156 {offsets = [0, 0, 8], sizes = [1, 8, 8], strides = [1, 1, 1]} : vector<1x8x32xf32> to vector<1x8x8xf32>
    %167 = vector.extract_strided_slice %156 {offsets = [0, 0, 16], sizes = [1, 8, 8], strides = [1, 1, 1]} : vector<1x8x32xf32> to vector<1x8x8xf32>
    %168 = vector.extract_strided_slice %156 {offsets = [0, 0, 24], sizes = [1, 8, 8], strides = [1, 1, 1]} : vector<1x8x32xf32> to vector<1x8x8xf32>
    %169 = tpu.concatenate %165, %166, %167, %168 in 0 : vector<1x8x8xf32>, vector<1x8x8xf32>, vector<1x8x8xf32>, vector<1x8x8xf32> -> vector<4x8x8xf32>
    %170 = arith.truncf %169 : vector<4x8x8xf32> to vector<4x8x8xbf16>
    %171 = vector.extract_strided_slice %158 {offsets = [0, 0, 0], sizes = [1, 8, 8], strides = [1, 1, 1]} : vector<1x8x32xf32> to vector<1x8x8xf32>
    %172 = vector.extract_strided_slice %158 {offsets = [0, 0, 8], sizes = [1, 8, 8], strides = [1, 1, 1]} : vector<1x8x32xf32> to vector<1x8x8xf32>
    %173 = vector.extract_strided_slice %158 {offsets = [0, 0, 16], sizes = [1, 8, 8], strides = [1, 1, 1]} : vector<1x8x32xf32> to vector<1x8x8xf32>
    %174 = vector.extract_strided_slice %158 {offsets = [0, 0, 24], sizes = [1, 8, 8], strides = [1, 1, 1]} : vector<1x8x32xf32> to vector<1x8x8xf32>
    %175 = tpu.concatenate %171, %172, %173, %174 in 0 : vector<1x8x8xf32>, vector<1x8x8xf32>, vector<1x8x8xf32>, vector<1x8x8xf32> -> vector<4x8x8xf32>
    %176 = arith.truncf %175 : vector<4x8x8xf32> to vector<4x8x8xbf16>
    %cst_72 = arith.constant dense<0.000000e+00> : vector<4x8x8xf32>
    %177 = tpu.matmul %164, %170, %cst_72 {dimension_numbers = #tpu.dot_dimension_numbers<[2], [2], [1], [1], [0, 0, 0, 1, 1, 1], [0], [0]>} : vector<4x8x8xbf16>, vector<4x8x8xbf16>, vector<4x8x8xf32> -> vector<4x8x8xf32>
    %cst_73 = arith.constant dense<0xFF800000> : vector<4x8xf32>
    %178 = vector.multi_reduction <maximumf>, %177, %cst_73 [2] : vector<4x8x8xf32> to vector<4x8xf32>
    %179 = vector.shape_cast %178 : vector<4x8xf32> to vector<4x8x1xf32>
    %180 = vector.broadcast %179 : vector<4x8x1xf32> to vector<4x8x8xf32>
    %181 = arith.subf %177, %180 : vector<4x8x8xf32>
    %182 = math.exp %181 : vector<4x8x8xf32>
    %cst_74 = arith.constant dense<0.000000e+00> : vector<4x8xf32>
    %183 = vector.multi_reduction <add>, %182, %cst_74 [2] : vector<4x8x8xf32> to vector<4x8xf32>
    %184 = vector.shape_cast %183 : vector<4x8xf32> to vector<4x8x1xf32>
    %185 = tpu.reciprocal %184 {approx = true} : vector<4x8x1xf32> -> vector<4x8x1xf32>
    %186 = vector.broadcast %185 : vector<4x8x1xf32> to vector<4x8x8xf32>
    %187 = arith.mulf %182, %186 : vector<4x8x8xf32>
    %188 = arith.truncf %187 : vector<4x8x8xf32> to vector<4x8x8xbf16>
    %cst_75 = arith.constant dense<0.000000e+00> : vector<4x8x8xf32>
    %189 = tpu.matmul %188, %176, %cst_75 {dimension_numbers = #tpu.dot_dimension_numbers<[2], [1], [1], [2], [0, 0, 0, 1, 1, 2], [0], [0]>} : vector<4x8x8xbf16>, vector<4x8x8xbf16>, vector<4x8x8xf32> -> vector<4x8x8xf32>
    %190 = arith.truncf %189 : vector<4x8x8xf32> to vector<4x8x8xbf16>
    %c1_76 = arith.constant 1 : index
    %c0_77 = arith.constant 0 : index
    %c0_78 = arith.constant 0 : index
    %c0_79 = arith.constant 0 : index
    %191 = vector.load %arg6[%c1_76, %c0_77, %c0_78, %c0_79] : memref<2x4x8x32xbf16, #tpu.memory_space<vmem>>, vector<1x4x8x32xbf16>
    %192 = vector.shape_cast %191 : vector<1x4x8x32xbf16> to vector<4x8x32xbf16>
    %cst_80 = arith.constant dense<0.000000e+00> : vector<4x8x32xf32>
    %193 = tpu.matmul %190, %192, %cst_80 {dimension_numbers = #tpu.dot_dimension_numbers<[2], [1], [1], [2], [0, 0, 0, 1, 1, 2], [0], [0]>} : vector<4x8x8xbf16>, vector<4x8x32xbf16>, vector<4x8x32xf32> -> vector<4x8x32xf32>
    %cst_81 = arith.constant dense<0.000000e+00> : vector<8x32xf32>
    %194 = vector.multi_reduction <add>, %193, %cst_81 [0] : vector<4x8x32xf32> to vector<8x32xf32>
    %c1_82 = arith.constant 1 : index
    %c0_83 = arith.constant 0 : index
    %c0_84 = arith.constant 0 : index
    %195 = vector.load %arg7[%c1_82, %c0_83, %c0_84] : memref<2x1x32xf32, #tpu.memory_space<vmem>>, vector<1x1x32xf32>
    %196 = vector.shape_cast %195 : vector<1x1x32xf32> to vector<1x32xf32>
    %197 = vector.broadcast %196 : vector<1x32xf32> to vector<8x32xf32>
    %198 = arith.addf %194, %197 : vector<8x32xf32>
    %199 = arith.addf %144, %198 : vector<8x32xf32>
    %c1_85 = arith.constant 1 : index
    %c0_86 = arith.constant 0 : index
    %c0_87 = arith.constant 0 : index
    %200 = vector.load %arg8[%c1_85, %c0_86, %c0_87] : memref<2x1x32xf32, #tpu.memory_space<vmem>>, vector<1x1x32xf32>
    %201 = vector.shape_cast %200 : vector<1x1x32xf32> to vector<1x32xf32>
    %c1_88 = arith.constant 1 : index
    %c0_89 = arith.constant 0 : index
    %c0_90 = arith.constant 0 : index
    %202 = vector.load %arg9[%c1_88, %c0_89, %c0_90] : memref<2x1x32xf32, #tpu.memory_space<vmem>>, vector<1x1x32xf32>
    %203 = vector.shape_cast %202 : vector<1x1x32xf32> to vector<1x32xf32>
    %cst_91 = arith.constant dense<0.000000e+00> : vector<8xf32>
    %204 = vector.multi_reduction <add>, %199, %cst_91 [1] : vector<8x32xf32> to vector<8xf32>
    %205 = vector.shape_cast %204 : vector<8xf32> to vector<8x1xf32>
    %cst_92 = arith.constant 3.200000e+01 : f32
    %206 = vector.broadcast %cst_92 : f32 to vector<8x1xf32>
    %207 = arith.divf %205, %206 : vector<8x1xf32>
    %208 = vector.broadcast %207 : vector<8x1xf32> to vector<8x32xf32>
    %209 = arith.subf %199, %208 : vector<8x32xf32>
    %210 = arith.mulf %209, %209 : vector<8x32xf32>
    %cst_93 = arith.constant dense<0.000000e+00> : vector<8xf32>
    %211 = vector.multi_reduction <add>, %210, %cst_93 [1] : vector<8x32xf32> to vector<8xf32>
    %212 = vector.shape_cast %211 : vector<8xf32> to vector<8x1xf32>
    %cst_94 = arith.constant 3.200000e+01 : f32
    %213 = vector.broadcast %cst_94 : f32 to vector<8x1xf32>
    %214 = arith.divf %212, %213 : vector<8x1xf32>
    %215 = vector.broadcast %207 : vector<8x1xf32> to vector<8x32xf32>
    %216 = arith.subf %199, %215 : vector<8x32xf32>
    %cst_95 = arith.constant 9.99999974E-6 : f32
    %217 = vector.broadcast %cst_95 : f32 to vector<8x1xf32>
    %218 = arith.addf %214, %217 : vector<8x1xf32>
    %219 = math.rsqrt %218 : vector<8x1xf32>
    %220 = vector.broadcast %219 : vector<8x1xf32> to vector<8x32xf32>
    %221 = arith.mulf %216, %220 : vector<8x32xf32>
    %222 = vector.broadcast %201 : vector<1x32xf32> to vector<8x32xf32>
    %223 = arith.mulf %221, %222 : vector<8x32xf32>
    %224 = vector.broadcast %203 : vector<1x32xf32> to vector<8x32xf32>
    %225 = arith.addf %223, %224 : vector<8x32xf32>
    %c1_96 = arith.constant 1 : index
    %c0_97 = arith.constant 0 : index
    %c0_98 = arith.constant 0 : index
    %226 = vector.load %arg10[%c1_96, %c0_97, %c0_98] : memref<2x32x128xbf16, #tpu.memory_space<vmem>>, vector<1x32x128xbf16>
    %227 = vector.shape_cast %226 : vector<1x32x128xbf16> to vector<32x128xbf16>
    %228 = arith.truncf %225 : vector<8x32xf32> to vector<8x32xbf16>
    %cst_99 = arith.constant dense<0.000000e+00> : vector<8x128xf32>
    %229 = tpu.matmul %228, %227, %cst_99 {dimension_numbers = #tpu.dot_dimension_numbers<[1], [0], [0], [1], [0, 0, 1, 1], [], []>} : vector<8x32xbf16>, vector<32x128xbf16>, vector<8x128xf32> -> vector<8x128xf32>
    %c1_100 = arith.constant 1 : index
    %c0_101 = arith.constant 0 : index
    %c0_102 = arith.constant 0 : index
    %230 = vector.load %arg11[%c1_100, %c0_101, %c0_102] : memref<2x1x128xf32, #tpu.memory_space<vmem>>, vector<1x1x128xf32>
    %231 = vector.shape_cast %230 : vector<1x1x128xf32> to vector<1x128xf32>
    %232 = vector.broadcast %231 : vector<1x128xf32> to vector<8x128xf32>
    %233 = arith.addf %229, %232 : vector<8x128xf32>
    %cst_103 = arith.constant 5.000000e-01 : f32
    %234 = vector.broadcast %cst_103 : f32 to vector<8x128xf32>
    %235 = arith.mulf %234, %233 : vector<8x128xf32>
    %cst_104 = arith.constant 4.471500e-02 : f32
    %236 = vector.broadcast %cst_104 : f32 to vector<8x128xf32>
    %237 = arith.mulf %236, %233 : vector<8x128xf32>
    %238 = arith.mulf %237, %233 : vector<8x128xf32>
    %239 = arith.mulf %238, %233 : vector<8x128xf32>
    %240 = arith.addf %233, %239 : vector<8x128xf32>
    %cst_105 = arith.constant 0.797884583 : f32
    %241 = vector.broadcast %cst_105 : f32 to vector<8x128xf32>
    %242 = arith.mulf %241, %240 : vector<8x128xf32>
    %243 = math.tanh %242 : vector<8x128xf32>
    %cst_106 = arith.constant 1.000000e+00 : f32
    %244 = vector.broadcast %cst_106 : f32 to vector<8x128xf32>
    %245 = arith.addf %244, %243 : vector<8x128xf32>
    %246 = arith.mulf %235, %245 : vector<8x128xf32>
    %c1_107 = arith.constant 1 : index
    %c0_108 = arith.constant 0 : index
    %c0_109 = arith.constant 0 : index
    %247 = vector.load %arg12[%c1_107, %c0_108, %c0_109] : memref<2x128x32xbf16, #tpu.memory_space<vmem>>, vector<1x128x32xbf16>
    %248 = vector.shape_cast %247 : vector<1x128x32xbf16> to vector<128x32xbf16>
    %249 = arith.truncf %246 : vector<8x128xf32> to vector<8x128xbf16>
    %cst_110 = arith.constant dense<0.000000e+00> : vector<8x32xf32>
    %250 = tpu.matmul %249, %248, %cst_110 {dimension_numbers = #tpu.dot_dimension_numbers<[1], [0], [0], [1], [0, 0, 1, 1], [], []>} : vector<8x128xbf16>, vector<128x32xbf16>, vector<8x32xf32> -> vector<8x32xf32>
    %c1_111 = arith.constant 1 : index
    %c0_112 = arith.constant 0 : index
    %c0_113 = arith.constant 0 : index
    %251 = vector.load %arg13[%c1_111, %c0_112, %c0_113] : memref<2x1x32xf32, #tpu.memory_space<vmem>>, vector<1x1x32xf32>
    %252 = vector.shape_cast %251 : vector<1x1x32xf32> to vector<1x32xf32>
    %253 = vector.broadcast %252 : vector<1x32xf32> to vector<8x32xf32>
    %254 = arith.addf %250, %253 : vector<8x32xf32>
    %255 = arith.addf %225, %254 : vector<8x32xf32>
    %c1_114 = arith.constant 1 : index
    %c0_115 = arith.constant 0 : index
    %c0_116 = arith.constant 0 : index
    %256 = vector.load %arg14[%c1_114, %c0_115, %c0_116] : memref<2x1x32xf32, #tpu.memory_space<vmem>>, vector<1x1x32xf32>
    %257 = vector.shape_cast %256 : vector<1x1x32xf32> to vector<1x32xf32>
    %c1_117 = arith.constant 1 : index
    %c0_118 = arith.constant 0 : index
    %c0_119 = arith.constant 0 : index
    %258 = vector.load %arg15[%c1_117, %c0_118, %c0_119] : memref<2x1x32xf32, #tpu.memory_space<vmem>>, vector<1x1x32xf32>
    %259 = vector.shape_cast %258 : vector<1x1x32xf32> to vector<1x32xf32>
    %cst_120 = arith.constant dense<0.000000e+00> : vector<8xf32>
    %260 = vector.multi_reduction <add>, %255, %cst_120 [1] : vector<8x32xf32> to vector<8xf32>
    %261 = vector.shape_cast %260 : vector<8xf32> to vector<8x1xf32>
    %cst_121 = arith.constant 3.200000e+01 : f32
    %262 = vector.broadcast %cst_121 : f32 to vector<8x1xf32>
    %263 = arith.divf %261, %262 : vector<8x1xf32>
    %264 = vector.broadcast %263 : vector<8x1xf32> to vector<8x32xf32>
    %265 = arith.subf %255, %264 : vector<8x32xf32>
    %266 = arith.mulf %265, %265 : vector<8x32xf32>
    %cst_122 = arith.constant dense<0.000000e+00> : vector<8xf32>
    %267 = vector.multi_reduction <add>, %266, %cst_122 [1] : vector<8x32xf32> to vector<8xf32>
    %268 = vector.shape_cast %267 : vector<8xf32> to vector<8x1xf32>
    %cst_123 = arith.constant 3.200000e+01 : f32
    %269 = vector.broadcast %cst_123 : f32 to vector<8x1xf32>
    %270 = arith.divf %268, %269 : vector<8x1xf32>
    %271 = vector.broadcast %263 : vector<8x1xf32> to vector<8x32xf32>
    %272 = arith.subf %255, %271 : vector<8x32xf32>
    %cst_124 = arith.constant 9.99999974E-6 : f32
    %273 = vector.broadcast %cst_124 : f32 to vector<8x1xf32>
    %274 = arith.addf %270, %273 : vector<8x1xf32>
    %275 = math.rsqrt %274 : vector<8x1xf32>
    %276 = vector.broadcast %275 : vector<8x1xf32> to vector<8x32xf32>
    %277 = arith.mulf %272, %276 : vector<8x32xf32>
    %278 = vector.broadcast %257 : vector<1x32xf32> to vector<8x32xf32>
    %279 = arith.mulf %277, %278 : vector<8x32xf32>
    %280 = vector.broadcast %259 : vector<1x32xf32> to vector<8x32xf32>
    %281 = arith.addf %279, %280 : vector<8x32xf32>
    %282 = vector.shape_cast %281 : vector<8x32xf32> to vector<1x8x32xf32>
    %cst_125 = arith.constant dense<0.000000e+00> : vector<1x32xf32>
    %283 = vector.multi_reduction <add>, %282, %cst_125 [1] : vector<1x8x32xf32> to vector<1x32xf32>
    %cst_126 = arith.constant 8.000000e+00 : f32
    %284 = vector.broadcast %cst_126 : f32 to vector<1x32xf32>
    %285 = arith.divf %283, %284 : vector<1x32xf32>
    %c0_127 = arith.constant 0 : index
    %c0_128 = arith.constant 0 : index
    %c0_129 = arith.constant 0 : index
    %286 = vector.load %arg16[%c0_127, %c0_128, %c0_129] : memref<1x1x32xf32, #tpu.memory_space<vmem>>, vector<1x1x32xf32>
    %287 = vector.shape_cast %286 : vector<1x1x32xf32> to vector<1x32xf32>
    %288 = vector.shape_cast %285 : vector<1x32xf32> to vector<1x1x32xf32>
    tpu.vector_store %arg16[%c0_127, %c0_128, %c0_129], %288 {strides = array<i32>} : memref<1x1x32xf32, #tpu.memory_space<vmem>>, vector<1x1x32xf32>,
    return
  }
  func.func @transform_0(%arg0: i32) -> (i32, i32, i32) {
    %c0_i32 = arith.constant 0 : i32
    %c0_i32_0 = arith.constant 0 : i32
    %c0_i32_1 = arith.constant 0 : i32
    return %arg0, %c0_i32, %c0_i32_0 : i32, i32, i32
  }
  func.func @transform_1(%arg0: i32) -> (i32, i32) {
    %c0_i32 = arith.constant 0 : i32
    %c0_i32_0 = arith.constant 0 : i32
    %c0_i32_1 = arith.constant 0 : i32
    return %c0_i32, %c0_i32_0 : i32, i32
  }
  func.func @transform_2(%arg0: i32) -> (i32, i32) {
    %c0_i32 = arith.constant 0 : i32
    %c0_i32_0 = arith.constant 0 : i32
    %c0_i32_1 = arith.constant 0 : i32
    return %c0_i32, %c0_i32_0 : i32, i32
  }
  func.func @transform_3(%arg0: i32) -> (i32, i32, i32) {
    %c0_i32 = arith.constant 0 : i32
    %c0_i32_0 = arith.constant 0 : i32
    %c0_i32_1 = arith.constant 0 : i32
    %c0_i32_2 = arith.constant 0 : i32
    return %c0_i32, %c0_i32_0, %c0_i32_1 : i32, i32, i32
  }
  func.func @transform_4(%arg0: i32) -> (i32, i32, i32) {
    %c0_i32 = arith.constant 0 : i32
    %c0_i32_0 = arith.constant 0 : i32
    %c0_i32_1 = arith.constant 0 : i32
    %c0_i32_2 = arith.constant 0 : i32
    return %c0_i32, %c0_i32_0, %c0_i32_1 : i32, i32, i32
  }
  func.func @transform_5(%arg0: i32) -> (i32, i32, i32, i32) {
    %c0_i32 = arith.constant 0 : i32
    %c0_i32_0 = arith.constant 0 : i32
    %c0_i32_1 = arith.constant 0 : i32
    %c0_i32_2 = arith.constant 0 : i32
    %c0_i32_3 = arith.constant 0 : i32
    return %c0_i32, %c0_i32_0, %c0_i32_1, %c0_i32_2 : i32, i32, i32, i32
  }
  func.func @transform_6(%arg0: i32) -> (i32, i32, i32) {
    %c0_i32 = arith.constant 0 : i32
    %c0_i32_0 = arith.constant 0 : i32
    %c0_i32_1 = arith.constant 0 : i32
    %c0_i32_2 = arith.constant 0 : i32
    return %c0_i32, %c0_i32_0, %c0_i32_1 : i32, i32, i32
  }
  func.func @transform_7(%arg0: i32) -> (i32, i32, i32) {
    %c0_i32 = arith.constant 0 : i32
    %c0_i32_0 = arith.constant 0 : i32
    %c0_i32_1 = arith.constant 0 : i32
    %c0_i32_2 = arith.constant 0 : i32
    return %c0_i32, %c0_i32_0, %c0_i32_1 : i32, i32, i32
  }
  func.func @transform_8(%arg0: i32) -> (i32, i32, i32) {
    %c0_i32 = arith.constant 0 : i32
    %c0_i32_0 = arith.constant 0 : i32
    %c0_i32_1 = arith.constant 0 : i32
    %c0_i32_2 = arith.constant 0 : i32
    return %c0_i32, %c0_i32_0, %c0_i32_1 : i32, i32, i32
  }
  func.func @transform_9(%arg0: i32) -> (i32, i32, i32) {
    %c0_i32 = arith.constant 0 : i32
    %c0_i32_0 = arith.constant 0 : i32
    %c0_i32_1 = arith.constant 0 : i32
    %c0_i32_2 = arith.constant 0 : i32
    return %c0_i32, %c0_i32_0, %c0_i32_1 : i32, i32, i32
  }
  func.func @transform_10(%arg0: i32) -> (i32, i32, i32) {
    %c0_i32 = arith.constant 0 : i32
    %c0_i32_0 = arith.constant 0 : i32
    %c0_i32_1 = arith.constant 0 : i32
    %c0_i32_2 = arith.constant 0 : i32
    return %c0_i32, %c0_i32_0, %c0_i32_1 : i32, i32, i32
  }
  func.func @transform_11(%arg0: i32) -> (i32, i32, i32) {
    %c0_i32 = arith.constant 0 : i32
    %c0_i32_0 = arith.constant 0 : i32
    %c0_i32_1 = arith.constant 0 : i32
    %c0_i32_2 = arith.constant 0 : i32
    return %c0_i32, %c0_i32_0, %c0_i32_1 : i32, i32, i32
  }
  func.func @transform_12(%arg0: i32) -> (i32, i32, i32) {
    %c0_i32 = arith.constant 0 : i32
    %c0_i32_0 = arith.constant 0 : i32
    %c0_i32_1 = arith.constant 0 : i32
    %c0_i32_2 = arith.constant 0 : i32
    return %c0_i32, %c0_i32_0, %c0_i32_1 : i32, i32, i32
  }
  func.func @transform_13(%arg0: i32) -> (i32, i32, i32) {
    %c0_i32 = arith.constant 0 : i32
    %c0_i32_0 = arith.constant 0 : i32
    %c0_i32_1 = arith.constant 0 : i32
    %c0_i32_2 = arith.constant 0 : i32
    return %c0_i32, %c0_i32_0, %c0_i32_1 : i32, i32, i32
  }
  func.func @transform_14(%arg0: i32) -> (i32, i32, i32) {
    %c0_i32 = arith.constant 0 : i32
    %c0_i32_0 = arith.constant 0 : i32
    %c0_i32_1 = arith.constant 0 : i32
    %c0_i32_2 = arith.constant 0 : i32
    return %c0_i32, %c0_i32_0, %c0_i32_1 : i32, i32, i32
  }
  func.func @transform_15(%arg0: i32) -> (i32, i32, i32) {
    %c0_i32 = arith.constant 0 : i32
    %c0_i32_0 = arith.constant 0 : i32
    %c0_i32_1 = arith.constant 0 : i32
    return %arg0, %c0_i32, %c0_i32_0 : i32, i32, i32
  }
}

</mosaic_0001>

<bundles_post_ra>
// kernel: tpu_custom_call.1
= control target key start
LH: loop header
LB: loop body
LE: loop exit
PB: predicated region body
PF: predicated region fallthrough
CT: control target
= control target key end

     0   :  { %s3762_s0 = inlined_call_operand.vmem [shape: f32[2,8,16], index: 0, kind: input, shape index: {}]   ;;  %s3763_s1 = inlined_call_operand.vmem [shape: bf16[16,32], index: 1, kind: input, shape index: {}]   ;;  %s3764_s2 = inlined_call_operand.vmem [shape: f32[1,32], index: 2, kind: input, shape index: {}]   ;;  %s3765_s3 = inlined_call_operand.vmem [shape: bf16[2,32,96], index: 3, kind: input, shape index: {}]   ;;  %s3766_s4 = inlined_call_operand.vmem [shape: f32[2,1,96], index: 4, kind: input, shape index: {}]   ;;  %s3767_s5 = inlined_call_operand.vmem [shape: bf16[2,4,8,32], index: 5, kind: input, shape index: {}]   ;;  %s3768_s6 = inlined_call_operand.vmem [shape: f32[2,1,32], index: 6, kind: input, shape index: {}]   ;;  %s3769_s7 = inlined_call_operand.vmem [shape: f32[2,1,32], index: 7, kind: input, shape index: {}]   ;;  %s3770_s8 = inlined_call_operand.vmem [shape: f32[2,1,32], index: 8, kind: input, shape index: {}]   ;;  %s3771_s9 = inlined_call_operand.vmem [shape: bf16[2,32,128], index: 9, kind: input, shape index: {}]   ;;  %s3772_s10 = inlined_call_operand.vmem [shape: f32[2,1,128], index: 10, kind: input, shape index: {}]   ;;  %s3773_s11 = inlined_call_operand.vmem [shape: bf16[2,128,32], index: 11, kind: input, shape index: {}]   ;;  %s3774_s12 = inlined_call_operand.vmem [shape: f32[2,1,32], index: 12, kind: input, shape index: {}]   ;;  %s3775_s13 = inlined_call_operand.vmem [shape: f32[2,1,32], index: 13, kind: input, shape index: {}]   ;;  %s3776_s14 = inlined_call_operand.vmem [shape: f32[2,1,32], index: 14, kind: input, shape index: {}]   ;;  %s3777_s15 = inlined_call_operand.hbm [shape: f32[2,1,32], index: 15, kind: output, shape index: {}]  }
   0x1   :  { %3785 = sst [smem:[#allocation6_spill]] %s3762_s0 }
   0x2   :  { %3786 = sst [smem:[#allocation7_spill]] %s3763_s1 }
   0x3   :  { %3787 = sst [smem:[#allocation8_spill]] %s3764_s2 }
   0x4   :  { %3788 = sst [smem:[#allocation9_spill]] %s3765_s3 }
   0x5   :  { %3789 = sst [smem:[#allocation10_spill]] %s3766_s4 }
   0x6   :  { %20 = vsyncpa [#allocation3], 0 }
   0x7   :  { %22 = vsyncpa [#allocation3 + $0x1], 0  ;;  %s3272_s18 = smov 0   ;;  %s3274_s19 = smov 0  }
   0x8   :  { %s3276_s20 = smov 0   ;;  %s3278_s21 = smov 0  }
   0x9 LB: > { %s3293_s22 = sadd.s32 4294967295, %s3182_s21   ;;  %s2590_s23 = sadd.s32 4294967294, %s3182_s21   ;;  %s3182_s21 = sphi %s3278_s21, %s3807_s21   ;;  %s3178_s20 = sphi %s3276_s20, %s3806_s20   ;;  %s3174_s19 = sphi %s3274_s19, %s3805_s19   ;;  %s3170_s18 = sphi %s3272_s18, %s3804_s18  }
   0xa   : > { %s3297_s24 = sadd.s32 1, %s3182_s21   ;;  %s355_s25 = sadd.s32 1, %s3178_s20 }
   0xb   : > { %s352_s26 = ssub.s32 %s3182_s21, %s3297_s24  ;;  %p365_p0 = scmp.ne.s32.totalorder %s3178_s20, %s3174_s19 }
   0xc   : > { %p353_p1 = scmp.eq.s32.totalorder %s352_s26, 0  ;;  %p366_p2 = scmp.eq.s32.totalorder %s3293_s22, 1 }
   0xd   : > { %p371_p3 = scmp.ne.s32.totalorder %s3174_s19, %s3170_s18  ;;  %p372_p4 = scmp.eq.s32.totalorder %s2590_s23, 1 }
   0xe   : > { %s3308_s27 = scalar_select %p353_p1, %s3178_s20, %s355_s25  }
   0xf   : > { %p3310_p5 = por %p366_p2, %p365_p0  ;;  %p3314_p6 = por %p372_p4, %p371_p3 }
  0x10   : > { %3790 = sst [smem:[#allocation5_spill]] %s3308_s27  ;;  %p2593_p7 = scmp.ge.s32.totalorder %s3182_s21, 1 }
  0x11   : > { %p439_p8 = scmp.lt.s32.totalorder %s3182_s21, 3 }
  0x13   : > { %p440_p9 = pnand %p2593_p7, %p439_p8 }
  0x14   : > { %s3793_s1 = sld [smem:[#allocation7_spill]] (!%p440_p9)  ;;  %p485_p10 = scmp.lt.s32.totalorder (!%p440_p9), %s3293_s22, 1 }
  0x15   : > { %443 = sbr.rel (%p440_p9) target bundleno = 5036 (0x13ac), region = 80  ;;  %s3794_s3 = sld [smem:[#allocation9_spill]] (!%p440_p9) }
  0x16   : > { %s3795_s0 = sld [smem:[#allocation6_spill]] (!%p440_p9)  ;;  %s3783_s30 = smov (!%p440_p9), 120  }
  0x17   : > { %s3796_s2 = sld [smem:[#allocation8_spill]] (!%p440_p9)  ;;  %s3784_s16 = smov (!%p440_p9), 112  }
  0x18   : > { %s3797_s4 = sld [smem:[#allocation10_spill]] (!%p440_p9)  ;;  %s3778_s25 = smov (!%p440_p9), 64  }
  0x19   : > { %s3799_s26 = smov (!%p440_p9), 120  }
  0x1a   : > { %v3053_v0 = vld [vmem:[%s3793_s1] sm:$0xff]   ;;  %v3184_v1 = vmov 0.0   ;;  %vm3185_vm0 = vmmov 0   ;;  %s486_s17 = scalar_select %p485_p10, %s3293_s22, 1  ;;  %vm507_vm1 = vcmask 130048   ;;  %vm575_vm2 = vcmask 261120  }
  0x1b   : > { %2785 = vmatprep.subr.bf16.mxu0 %v3184_v1  ;;  %2817 = vmatprep.subr.bf16.mxu1 %v3184_v1  ;;  %v3054_v2 = vld [vmem:[%s3794_s3 + $0x8] sm:$0xff]   ;;  %v3055_v5 = vld [vmem:[%s3794_s3] sm:$0xff]   ;;  %vm636_vm3 = vcmask 64512   ;;  %vm883_vm4 = vcmask 1043456   ;;  %vm2520_vm5 = vcmask 253952  }
  0x1c   : > { %2786 = vmatpush3.bf16.msra.mxu0 %v3053_v0  ;;  %2787 = vmatprep.mubr.msk.bf16.mxu0 %vm3185_vm0, %v3184_v1  ;;  %s2594_s23 = sshll.u32 %s486_s17, 3  ;;  %s3780_s17 = smov 96  }
  0x1d   : > { %2791 = vmatprep.subr.bf16.mxu0 %v3184_v1  ;;  %2819 = vmatprep.mubr.msk.bf16.mxu1 %vm3185_vm0, %v3184_v1  ;;  %s488_s1 = scalar_lea.vmem %s3795_s0, %s2594_s23  ;;  %v2595_v6 = vld [vmem:[%s3796_s2] ss:$0 sm:$0xff]  ;;  %s3782_s23 = smov 104  }
  0x1e   : > { %v490_v3 = vld [vmem:[%s488_s1] sm:$0xff]  ;;  %s3801_s1 = smov 96   ;;  %s3191_s2 = smov [#allocation2]  }
  0x1f   : > { %v493_v4 = vpack.c.bf16 %v490_v3, %v490_v3  ;;  %v2598_v13 = vld [vmem:[%s3797_s4] ss:$0 sm:$0xff] }
  0x21   : > { %2788 = vmatmul.mubr.msk.bf16.vlgmr.msra.gmra.mxu0 %vm507_vm1, %v493_v4 }
  0x22   : > { %2792 = vmatpush3.bf16.msra.mxu0 %v3054_v2  ;;  %2795 = vmatprep.mubr.msk.bf16.mxu0 %vm3185_vm0, %v3184_v1 }
  0x23   : > { %2793 = vmatprep.subr.bf16.mxu0 %v3184_v1 }
  0x26   : > { %2794 = vmatpush3.bf16.msra.mxu0 %v3055_v5 }
  0x27   : > { %2799 = vmatprep.subr.bf16.mxu0 %v3184_v1 }
  0xe1   : > { %v545_v7 = vpop.f32.mrf.mxu0 }
  0xe2   : > { %v3348_v8 = vadd.f32 %v2595_v6, %v545_v7 }
  0xe3   : > { %v2789_v9 = vpop.f32.mrf.mxu0 }
  0xe4   : > { %v555_v10 = vpack.c.bf16 %v3348_v8, %v3348_v8 }
  0xe5   : > { %v548_v11 = vpop.f32.mrf.mxu0 }
  0xe6   : > { %2796 = vmatmul.mubr.msk.bf16.vlgmr.msra.gmra.mxu0 %vm575_vm2, %v555_v10 }
  0xe7   : > { %v2790_v12 = vpop.f32.mrf.mxu0  ;;  %2801 = vmatprep.mubr.msk.bf16.mxu0 %vm3185_vm0, %v3184_v1 }
 0x1a6   : > { %v613_v14 = vpop.f32.mrf.mxu0 }
 0x1a7   : > { %v614_v15 = vadd.f32 %v2598_v13, %v613_v14 }
 0x1a8   : > { %v2797_v16 = vpop.f32.mrf.mxu0 }
 0x1a9   : > { %626 = vrot.lane.b32.xlu1 %v614_v15, %s3782_s23  ;;  %620 = vrot.lane.b32.xlu0 %v614_v15, %s3783_s30  ;;  %v3360_v18 = vpack.c.bf16 %v614_v15, %v614_v15  ;;  %s3802_s23 = smov 64   ;;  %s483_s30 = sand.u32 1, %s3174_s19  }
 0x1aa   : > { %v616_v17 = vpop.f32.mrf.mxu0  ;;  %s2523_s27 = scalar_lea.sflag [#allocation3], %s483_s30 }
 0x1ac   : > { %v2798_v19 = vpop.f32.mrf.mxu0 }
 0x1ad   : > { %623 = vrot.lane.b32.xlu0 %v614_v15, %s3784_s16  ;;  %634 = vrot.lane.b32.xlu1 %v3360_v18, %s3780_s17  ;;  %s3798_s16 = smov 112  }
 0x21b   : > { %v627_v20 = vpop.permute.xlu1 %626  ;;  %v621_v21 = vpop.permute.xlu0 %620 }
 0x21c   : > { %v630_v22 = vpack.c.bf16 %v621_v21, %v621_v21  ;;  %v3366_v25 = vpack.c.bf16 %v627_v20, %v627_v20 }
 0x21e   : > { %684 = vrot.lane.b32.xlu0 %v630_v22, %s3780_s17 }
 0x21f   : > { %v624_v23 = vpop.permute.xlu0 %623  ;;  %v635_v24 = vpop.permute.xlu1 %634 }
 0x220   : > { %v3368_v26 = vpack.c.bf16 %v624_v23, %v624_v23  ;;  %v641_v27 = vsel %vm636_vm3, %v635_v24, 0 }
 0x221   : > { %2800 = vmatpush3.bf16.xpose.msra.mxu0 %v641_v27 }
 0x222   : > { %782 = vrot.lane.b32.xlu0 %v3366_v25, %s3780_s17  ;;  %733 = vrot.lane.b32.xlu1 %v3368_v26, %s3780_s17 }
 0x223   : > { %2805 = vmatprep.subr.bf16.mxu0 %v3184_v1 }
 0x228   : > { %2802 = vmatmul.mubr.msk.bf16.vlgmr.msra.gmra.mxu0 %vm636_vm3, %v3360_v18 }
 0x229   : > { %2807 = vmatprep.mubr.msk.bf16.mxu0 %vm3185_vm0, %v3184_v1 }
 0x290   : > { %v685_v28 = vpop.permute.xlu0 %684 }
 0x291   : > { %v690_v29 = vsel %vm636_vm3, %v685_v28, 0 }
 0x292   : > { %2806 = vmatpush3.bf16.xpose.msra.mxu0 %v690_v29 }
 0x293   : > { %2811 = vmatprep.subr.bf16.mxu0 %v3184_v1 }
 0x294   : > { %v783_v30 = vpop.permute.xlu0 %782  ;;  %v734_v32 = vpop.permute.xlu1 %733 }
 0x295   : > { %v788_v31 = vsel %vm636_vm3, %v783_v30, 0  ;;  %v739_v33 = vsel %vm636_vm3, %v734_v32, 0 }
 0x296   : > { %2818 = vmatpush3.bf16.xpose.msra.mxu1 %v788_v31 }
 0x297   : > { %2829 = vmatprep.subr.bf16.mxu1 %v3184_v1 }
 0x299   : > { %2808 = vmatmul.mubr.msk.bf16.vlgmr.msra.gmra.mxu0 %vm636_vm3, %v630_v22 }
 0x29a   : > { %2812 = vmatpush3.bf16.xpose.msra.mxu0 %v739_v33  ;;  %2813 = vmatprep.mubr.msk.bf16.mxu0 %vm3185_vm0, %v3184_v1  ;;  %v1075_v33 = vld [vmem:[%s3767_s5] sm:$0xf] }
 0x29b   : > { %2823 = vmatprep.subr.bf16.mxu0 %v3184_v1 }
 0x29d   : > { %2820 = vmatmul.mubr.msk.bf16.vlgmr.msra.gmra.mxu1 %vm636_vm3, %v3366_v25 }
 0x29e   : > { %2831 = vmatprep.mubr.msk.bf16.mxu1 %vm3185_vm0, %v3184_v1 }
 0x2a1   : > { %2814 = vmatmul.mubr.msk.bf16.vlgmr.msra.gmra.mxu0 %vm636_vm3, %v3368_v26 }
 0x2a2   : > { %2825 = vmatprep.mubr.msk.bf16.mxu0 %vm3185_vm0, %v3184_v1 }
 0x2e8   : > { %v677_v34 = vpop.f32.mrf.mxu0 }
 0x2e9   : > { %v830_v35 = vsel %vm636_vm3, %v677_v34, -inf }
 0x2ea   : > { %831 = vmax.xlane.f32.xlu1 %v830_v35  ;;  %v2803_v36 = vpop.f32.mrf.mxu0 }
 0x2ec   : > { %v680_v37 = vpop.f32.mrf.mxu0 }
 0x2ed   : > { %v1083_v37 = vsel %vm883_vm4, %v1075_v33, 0 }
 0x2ee   : > { %v2804_v38 = vpop.f32.mrf.mxu0 }
 0x2ef   : > { %v1076_v38 = vld [vmem:[%s3767_s5 + $0x4] sm:$0xf] }
 0x359   : > { %v726_v39 = vpop.f32.mrf.mxu0 }
 0x35a   : > { %v833_v40 = vsel %vm636_vm3, %v726_v39, -inf }
 0x35b   : > { %834 = vmax.xlane.f32.xlu0 %v833_v40  ;;  %v2809_v41 = vpop.f32.mrf.mxu0  ;;  %v1077_v40 = vld [vmem:[%s3767_s5 + $0x8] sm:$0xf] }
 0x35d   : > { %v729_v42 = vpop.f32.mrf.mxu0  ;;  %v824_v43 = vpop.f32.mrf.mxu1 }
 0x35e   : > { %v839_v44 = vsel %vm636_vm3, %v824_v43, -inf }
 0x35f   : > { %v2821_v45 = vpop.f32.mrf.mxu1  ;;  %840 = vmax.xlane.f32.xlu1 %v839_v44  ;;  %v2810_v46 = vpop.f32.mrf.mxu0 }
 0x361   : > { %v775_v47 = vpop.f32.mrf.mxu0  ;;  %v827_v48 = vpop.f32.mrf.mxu1 }
 0x362   : > { %v836_v49 = vsel %vm636_vm3, %v775_v47, -inf }
 0x363   : > { %v2822_v50 = vpop.f32.mrf.mxu1  ;;  %837 = vmax.xlane.f32.xlu0 %v836_v49  ;;  %v2815_v51 = vpop.f32.mrf.mxu0 }
 0x365   : > { %v778_v52 = vpop.f32.mrf.mxu0 }
 0x367   : > { %v2816_v53 = vpop.f32.mrf.mxu0 }
 0x370   : > { %927 = vrot.lane.b32.xlu1 %v630_v22, %s3778_s25 }
 0x373   : > { %v832_v54 = vpop.xlane.xlu1 %831 }
 0x374   : > { %v842_v55 = vsub.f32 %v677_v34, %v832_v54 }
 0x376   : > { %v846_v56 = vmul.f32 1.442695, %v842_v55 }
 0x378   : > { %3078 = vpow2.f32 %v846_v56 }
 0x385   : > { %v3079_v57 = vpop.eup %3078 }
 0x386   : > { %v854_v58 = vsel %vm636_vm3, %v3079_v57, 0.0 }
 0x387   : > { %855 = vadd.xlane.f32.xlu0 %v854_v58 }
 0x39d   : > { %878 = vrot.lane.b32.xlu0 %v3360_v18, %s3778_s25 }
 0x3e4   : > { %v835_v59 = vpop.xlane.xlu0 %834 }
 0x3e5   : > { %v843_v60 = vsub.f32 %v726_v39, %v835_v59  ;;  %v1129_v39 = vsel %vm883_vm4, %v1076_v38, 0 }
 0x3e7   : > { %v848_v61 = vmul.f32 1.442695, %v843_v60 }
 0x3e8   : > { %v841_v62 = vpop.xlane.xlu1 %840 }
 0x3e9   : > { %3080 = vpow2.f32 %v848_v61  ;;  %v845_v63 = vsub.f32 %v824_v43, %v841_v62  ;;  %v1175_v43 = vsel %vm883_vm4, %v1077_v40, 0 }
 0x3eb   : > { %v852_v0 = vmul.f32 1.442695, %v845_v63 }
 0x3ec   : > { %v928_v2 = vpop.permute.xlu1 %927  ;;  %v838_v3 = vpop.xlane.xlu0 %837 }
 0x3ed   : > { %3082 = vpow2.f32 %v852_v0  ;;  %v933_v4 = vsel %vm883_vm4, %v928_v2, 0  ;;  %v844_v5 = vsub.f32 %v775_v47, %v838_v3  ;;  %v1078_v47 = vld [vmem:[%s3767_s5 + $0xc] sm:$0xf] }
 0x3ee   : > { %2830 = vmatpush3.bf16.msra.mxu1 %v933_v4  ;;  %v1221_v50 = vsel %vm883_vm4, %v1078_v47, 0  ;;  %v3060_v47 = vld [vmem:[%s3773_s11 + $0x28] sm:$0xff]  }
 0x3ef   : > { %v850_v6 = vmul.f32 1.442695, %v844_v5  ;;  %2841 = vmatprep.subr.bf16.mxu1 %v3184_v1 }
 0x3f1   : > { %3084 = vpow2.f32 %v850_v6 }
 0x3f6   : > { %v3081_v7 = vpop.eup %3080 }
 0x3f7   : > { %v857_v9 = vsel %vm636_vm3, %v3081_v7, 0.0 }
 0x3f8   : > { %858 = vadd.xlane.f32.xlu1 %v857_v9 }
 0x3fa   : > { %v3083_v10 = vpop.eup %3082 }
 0x3fb   : > { %v863_v11 = vsel %vm636_vm3, %v3083_v10, 0.0 }
 0x3fc   : > { %864 = vadd.xlane.f32.xlu1 %v863_v11 }
 0x3fe   : > { %v3085_v12 = vpop.eup %3084 }
 0x3ff   : > { %v860_v13 = vsel %vm636_vm3, %v3085_v12, 0.0 }
 0x400   : > { %861 = vadd.xlane.f32.xlu0 %v860_v13 }
 0x40d   : > { %975 = vrot.lane.b32.xlu1 %v3368_v26, %s3778_s25 }
 0x410   : > { %v856_v14 = vpop.xlane.xlu0 %855 }
 0x411   : > { %3086 = vrcp.f32 %v856_v14 }
 0x414   : > { %v879_v15 = vpop.permute.xlu0 %878 }
 0x415   : > { %v885_v16 = vsel %vm883_vm4, %v879_v15, 0 }
 0x416   : > { %1023 = vrot.lane.b32.xlu0 %v3366_v25, %s3778_s25  ;;  %2824 = vmatpush3.bf16.msra.mxu0 %v885_v16  ;;  %s3800_s25 = smov 104  }
 0x417   : > { %2835 = vmatprep.subr.bf16.mxu0 %v3184_v1 }
 0x41e   : > { %v3087_v17 = vpop.eup %3086 }
 0x41f   : > { %v870_v18 = vmul.f32 %v3087_v17, %v3079_v57 }
 0x421   : > { %v874_v19 = vpack.c.bf16 %v870_v18, %v870_v18 }
 0x423   : > { %2826 = vmatmul.mubr.msk.bf16.vlgmr.msra.gmra.mxu0 %vm636_vm3, %v874_v19 }
 0x424   : > { %2837 = vmatprep.mubr.msk.bf16.mxu0 %vm3185_vm0, %v3184_v1 }
 0x481   : > { %v859_v20 = vpop.xlane.xlu1 %858 }
 0x482   : > { %3088 = vrcp.f32 %v859_v20  ;;  %v2614_v20 = vld [vmem:[%s3768_s6] ss:$0 sm:$0xff] }
 0x485   : > { %v865_v21 = vpop.xlane.xlu1 %864 }
 0x486   : > { %3090 = vrcp.f32 %v865_v21 }
 0x489   : > { %v976_v22 = vpop.permute.xlu1 %975  ;;  %v862_v23 = vpop.xlane.xlu0 %861 }
 0x48a   : > { %v981_v24 = vsel %vm883_vm4, %v976_v22, 0  ;;  %3092 = vrcp.f32 %v862_v23 }
 0x48b   : > { %2836 = vmatpush3.bf16.msra.mxu0 %v981_v24 }
 0x48c   : > { %2847 = vmatprep.subr.bf16.mxu0 %v3184_v1 }
 0x48d   : > { %v1024_v27 = vpop.permute.xlu0 %1023 }
 0x48e   : > { %v1029_v30 = vsel %vm883_vm4, %v1024_v27, 0 }
 0x48f   : > { %v3089_v25 = vpop.eup %3088 }
 0x490   : > { %v871_v26 = vmul.f32 %v3089_v25, %v3081_v7 }
 0x492   : > { %v875_v28 = vpack.c.bf16 %v871_v26, %v871_v26 }
 0x493   : > { %v3091_v29 = vpop.eup %3090 }
 0x494   : > { %2832 = vmatmul.mubr.msk.bf16.vlgmr.msra.gmra.mxu1 %vm636_vm3, %v875_v28  ;;  %v873_v31 = vmul.f32 %v3091_v29, %v3083_v10 }
 0x495   : > { %2842 = vmatpush3.bf16.msra.mxu1 %v1029_v30  ;;  %2843 = vmatprep.mubr.msk.bf16.mxu1 %vm3185_vm0, %v3184_v1 }
 0x496   : > { %2853 = vmatprep.subr.bf16.mxu1 %v3184_v1  ;;  %v877_v36 = vpack.c.bf16 %v873_v31, %v873_v31 }
 0x497   : > { %v3093_v32 = vpop.eup %3092 }
 0x498   : > { %v872_v34 = vmul.f32 %v3093_v32, %v3085_v12 }
 0x49a   : > { %v876_v35 = vpack.c.bf16 %v872_v34, %v872_v34  ;;  %v3056_v34 = vld [vmem:[%s3771_s9 + $0x8] sm:$0xff]  }
 0x49c   : > { %2838 = vmatmul.mubr.msk.bf16.vlgmr.msra.gmra.mxu0 %vm636_vm3, %v876_v35  ;;  %2844 = vmatmul.mubr.msk.bf16.vlgmr.msra.gmra.mxu1 %vm636_vm3, %v877_v36  ;;  %v3057_v35 = vld [vmem:[%s3771_s9] sm:$0xff]  }
 0x49d   : > { %2848 = vmatpush3.bf16.msra.mxu0 %v1083_v37  ;;  %2849 = vmatprep.mubr.msk.bf16.mxu0 %vm3185_vm0, %v3184_v1 }
 0x49e   : > { %2855 = vmatprep.mubr.msk.bf16.mxu1 %vm3185_vm0, %v3184_v1  ;;  %2859 = vmatprep.subr.bf16.mxu0 %v3184_v1 }
 0x49f   : > { %2854 = vmatpush3.bf16.msra.mxu1 %v1129_v39  ;;  %v2615_v39 = vld [vmem:[%s3769_s7] ss:$0 sm:$0xff] }
 0x4a0   : > { %2865 = vmatprep.subr.bf16.mxu1 %v3184_v1 }
 0x4e3   : > { %v921_v41 = vpop.f32.mrf.mxu0 }
 0x4e4   : > { %v1071_v42 = vpack.c.bf16 %v921_v41, %v921_v41  ;;  %v2616_v41 = vld [vmem:[%s3770_s8] ss:$0 sm:$0xff] }
 0x4e5   : > { %v2827_v44 = vpop.f32.mrf.mxu0 }
 0x4e6   : > { %2850 = vmatmul.mubr.msk.bf16.vlgmr.msra.gmra.mxu0 %vm636_vm3, %v1071_v42 }
 0x4e7   : > { %v924_v45 = vpop.f32.mrf.mxu0  ;;  %2860 = vmatpush3.bf16.msra.mxu0 %v1175_v43  ;;  %2861 = vmatprep.mubr.msk.bf16.mxu0 %vm3185_vm0, %v3184_v1 }
 0x4e8   : > { %2871 = vmatprep.subr.bf16.mxu0 %v3184_v1  ;;  %v3058_v45 = vld [vmem:[%s3773_s11 + $0x38] sm:$0xff]  }
 0x4e9   : > { %v2828_v46 = vpop.f32.mrf.mxu0 }
 0x4ea   : > { %v3059_v46 = vld [vmem:[%s3773_s11 + $0x30] sm:$0xff]  }
 0x554   : > { %v969_v48 = vpop.f32.mrf.mxu1 }
 0x555   : > { %v1072_v49 = vpack.c.bf16 %v969_v48, %v969_v48  ;;  %v3061_v48 = vld [vmem:[%s3773_s11 + $0x20] sm:$0xff]  }
 0x556   : > { %v2833_v51 = vpop.f32.mrf.mxu1 }
 0x557   : > { %2856 = vmatmul.mubr.msk.bf16.vlgmr.msra.gmra.mxu1 %vm636_vm3, %v1072_v49  ;;  %v3062_v49 = vld [vmem:[%s3773_s11 + $0x18] sm:$0xff]   ;;  %v3064_v51 = vld [vmem:[%s3773_s11 + $0x8] sm:$0xff]  }
 0x558   : > { %v972_v52 = vpop.f32.mrf.mxu1  ;;  %2866 = vmatpush3.bf16.msra.mxu1 %v1221_v50  ;;  %2867 = vmatprep.mubr.msk.bf16.mxu1 %vm3185_vm0, %v3184_v1  ;;  %v3063_v50 = vld [vmem:[%s3773_s11 + $0x10] sm:$0xff]  }
 0x559   : > { %2879 = vmatprep.subr.bf16.mxu1 %v3184_v1  ;;  %v3065_v52 = vld [vmem:[%s3773_s11] sm:$0xff]  }
 0x55a   : > { %v2834_v53 = vpop.f32.mrf.mxu1 }
 0x55b   : > { %v2617_v53 = vld [vmem:[%s3772_s10] ss:$0 sm:$0xff] }
 0x55c   : > { %v1017_v54 = vpop.f32.mrf.mxu0  ;;  %v1065_v55 = vpop.f32.mrf.mxu1 }
 0x55d   : > { %v1073_v56 = vpack.c.bf16 %v1017_v54, %v1017_v54  ;;  %v1074_v57 = vpack.c.bf16 %v1065_v55, %v1065_v55 }
 0x55e   : > { %v2839_v58 = vpop.f32.mrf.mxu0  ;;  %v2845_v59 = vpop.f32.mrf.mxu1 }
 0x55f   : > { %2862 = vmatmul.mubr.msk.bf16.vlgmr.msra.gmra.mxu0 %vm636_vm3, %v1073_v56  ;;  %2868 = vmatmul.mubr.msk.bf16.vlgmr.msra.gmra.mxu1 %vm636_vm3, %v1074_v57 }
 0x560   : > { %v1020_v60 = vpop.f32.mrf.mxu0  ;;  %v1068_v61 = vpop.f32.mrf.mxu1  ;;  %2875 = vmatprep.mubr.msk.bf16.mxu0 %vm3185_vm0, %v3184_v1  ;;  %2895 = vmatprep.mubr.msk.bf16.mxu1 %vm3185_vm0, %v3184_v1 }
 0x561   : > { %2872 = vmatpush3.bf16.msra.mxu0 %v3056_v34  ;;  %2880 = vmatpush3.bf16.msra.mxu1 %v3058_v45 }
 0x562   : > { %v2840_v62 = vpop.f32.mrf.mxu0  ;;  %v2846_v63 = vpop.f32.mrf.mxu1  ;;  %2873 = vmatprep.subr.bf16.mxu0 %v3184_v1  ;;  %2881 = vmatprep.subr.bf16.mxu1 %v3184_v1 }
 0x565   : > { %2874 = vmatpush3.bf16.msra.mxu0 %v3057_v35  ;;  %2882 = vmatpush3.bf16.msra.mxu1 %v3059_v46 }
 0x566   : > { %2899 = vmatprep.subr.bf16.mxu0 %v3184_v1  ;;  %2883 = vmatprep.subr.bf16.mxu1 %v3184_v1 }
 0x569   : > { %2884 = vmatpush3.bf16.msra.mxu1 %v3060_v47 }
 0x56a   : > { %2885 = vmatprep.subr.bf16.mxu1 %v3184_v1 }
 0x56d   : > { %2886 = vmatpush3.bf16.msra.mxu1 %v3061_v48 }
 0x56e   : > { %2887 = vmatprep.subr.bf16.mxu1 %v3184_v1 }
 0x571   : > { %2888 = vmatpush3.bf16.msra.mxu1 %v3062_v49 }
 0x572   : > { %2889 = vmatprep.subr.bf16.mxu1 %v3184_v1 }
 0x575   : > { %2890 = vmatpush3.bf16.msra.mxu1 %v3063_v50 }
 0x576   : > { %2891 = vmatprep.subr.bf16.mxu1 %v3184_v1 }
 0x579   : > { %2892 = vmatpush3.bf16.msra.mxu1 %v3064_v51 }
 0x57a   : > { %2893 = vmatprep.subr.bf16.mxu1 %v3184_v1 }
 0x57d   : > { %2894 = vmatpush3.bf16.msra.mxu1 %v3065_v52 }
 0x57e   : > { %2925 = vmatprep.subr.bf16.mxu1 %v3184_v1 }
 0x5a6   : > { %v1119_v0 = vpop.f32.mrf.mxu0 }
 0x5a7   : > { %v1263_v11 = vsel %vm575_vm2, %v1119_v0, 0.0 }
 0x5a8   : > { %v2851_v2 = vpop.f32.mrf.mxu0 }
 0x5aa   : > { %v1122_v3 = vpop.f32.mrf.mxu0 }
 0x5ac   : > { %v2852_v4 = vpop.f32.mrf.mxu0 }
 0x617   : > { %v1165_v5 = vpop.f32.mrf.mxu1 }
 0x618   : > { %v1264_v9 = vsel %vm575_vm2, %v1165_v5, 0.0 }
 0x619   : > { %v2857_v6 = vpop.f32.mrf.mxu1  ;;  %v1265_v12 = vadd.f32 %v1264_v9, %v1263_v11 }
 0x61a   : > { %v2621_v6 = vld [vmem:[%s3774_s12] ss:$0 sm:$0xff] }
 0x61b   : > { %v1168_v7 = vpop.f32.mrf.mxu1 }
 0x61d   : > { %v2858_v10 = vpop.f32.mrf.mxu1 }
 0x61f   : > { %v1211_v13 = vpop.f32.mrf.mxu0  ;;  %v1257_v14 = vpop.f32.mrf.mxu1 }
 0x620   : > { %v1266_v15 = vsel %vm575_vm2, %v1211_v13, 0.0  ;;  %v1268_v19 = vsel %vm575_vm2, %v1257_v14, 0.0 }
 0x621   : > { %v1267_v16 = vadd.f32 %v1266_v15, %v1265_v12  ;;  %v2863_v17 = vpop.f32.mrf.mxu0  ;;  %v2869_v18 = vpop.f32.mrf.mxu1 }
 0x623   : > { %v1269_v21 = vadd.f32 %v1268_v19, %v1267_v16  ;;  %v1214_v22 = vpop.f32.mrf.mxu0  ;;  %v1260_v23 = vpop.f32.mrf.mxu1 }
 0x625   : > { %v1277_v24 = vadd.f32 %v2614_v20, %v1269_v21  ;;  %v2864_v25 = vpop.f32.mrf.mxu0  ;;  %v2870_v26 = vpop.f32.mrf.mxu1  ;;  %v3066_v20 = vld [vmem:[%s3794_s3 + $0x18] sm:$0xff]   ;;  %v3067_v21 = vld [vmem:[%s3794_s3 + $0x10] sm:$0xff]   ;;  %s3126_s3 = sshll.u32 %s3191_s2, 4  ;;  %s3127_s3 = int_to_ptr.vmem [resolvable:$false] %s3126_s3 }
 0x626   : > { %v2630_v26 = vld [vmem:[%s3775_s13] ss:$0 sm:$0xff] }
 0x627   : > { %v1278_v27 = vadd.f32 %v1277_v24, %v3348_v8 }
 0x629   : > { %v1281_v28 = vsel %vm575_vm2, %v1278_v27, 0.0 }
 0x62a   : > { %1282 = vadd.xlane.f32.xlu1 %v1281_v28  ;;  %v2631_v28 = vld [vmem:[%s3776_s14] ss:$0 sm:$0xff] }
 0x6b3   : > { %v1283_v29 = vpop.xlane.xlu1 %1282 }
 0x6b4   : > { %v1285_v30 = vmul.f32 0.03125, %v1283_v29 }
 0x6b6   : > { %v1286_v31 = vsub.f32 %v1278_v27, %v1285_v30 }
 0x6b8   : > { %v1287_v32 = vmul.f32 %v1286_v31, %v1286_v31 }
 0x6ba   : > { %v1288_v33 = vsel %vm575_vm2, %v1287_v32, 0.0  ;;  %v2637_v32 = vld [vmem:[%s3797_s4 + $0x1] ss:$0 sm:$0xff] }
 0x6bb   : > { %1289 = vadd.xlane.f32.xlu0 %v1288_v33 }
 0x744   : > { %v1290_v8 = vpop.xlane.xlu0 %1289 }
 0x745   : > { %v1291_v36 = vmul.f32 0.03125, %v1290_v8 }
 0x747   : > { %v1292_v37 = vadd.f32 1e-05, %v1291_v36 }
 0x749   : > { %3094 = vrsqrt.f32 %v1292_v37 }
 0x756   : > { %v3095_v38 = vpop.eup %3094 }
 0x757   : > { %v1294_v40 = vmul.f32 %v3095_v38, %v1286_v31 }
 0x759   : > { %v1301_v42 = vmul.f32 %v2615_v39, %v1294_v40 }
 0x75b   : > { %v1308_v43 = vadd.f32 %v2616_v41, %v1301_v42 }
 0x75d   : > { %v1313_v44 = vpack.c.bf16 %v1308_v43, %v1308_v43 }
 0x75f   : > { %2876 = vmatmul.mubr.msk.bf16.vlgmr.msra.gmra.mxu0 %vm575_vm2, %v1313_v44 }
 0x760   : > { %2903 = vmatprep.mubr.msk.bf16.mxu0 %vm3185_vm0, %v3184_v1  ;;  %2900 = vmatpush3.bf16.msra.mxu0 %v3066_v20 }
 0x761   : > { %2901 = vmatprep.subr.bf16.mxu0 %v3184_v1 }
 0x764   : > { %2902 = vmatpush3.bf16.msra.mxu0 %v3067_v21 }
 0x765   : > { %2907 = vmatprep.subr.bf16.mxu0 %v3184_v1 }
 0x81f   : > { %v1370_v54 = vpop.f32.mrf.mxu0 }
 0x820   : > { %v1371_v55 = vadd.f32 %v2617_v53, %v1370_v54 }
 0x821   : > { %v2877_v56 = vpop.f32.mrf.mxu0 }
 0x822   : > { %v1377_v57 = vmul.f32 0.044715, %v1371_v55  ;;  %v1376_v2 = vmul.f32 0.5, %v1371_v55 }
 0x823   : > { %v1373_v58 = vpop.f32.mrf.mxu0 }
 0x824   : > { %v1378_v59 = vmul.f32 %v1377_v57, %v1371_v55 }
 0x825   : > { %v2878_v60 = vpop.f32.mrf.mxu0 }
 0x826   : > { %v1379_v61 = vmul.f32 %v1378_v59, %v1371_v55 }
 0x828   : > { %v1380_v62 = vadd.f32 %v1379_v61, %v1371_v55 }
 0x82a   : > { %v1381_v63 = vmul.f32 0.7978846, %v1380_v62 }
 0x82c   : > { %3096 = vtanh.f32 %v1381_v63 }
 0x839   : > { %v3097_v0 = vpop.eup %3096 }
 0x83a   : > { %v1383_v3 = vadd.f32 1.0, %v3097_v0 }
 0x83c   : > { %v1384_v4 = vmul.f32 %v1383_v3, %v1376_v2 }
 0x83e   : > { %v1401_v5 = vpack.c.bf16 %v1384_v4, %v1384_v4 }
 0x840   : > { %2896 = vmatmul.mubr.bf16.vlgmr.msra.gmra.mxu1 %v1401_v5 }
 0x841   : > { %2927 = vmatprep.mubr.msk.bf16.mxu1 %vm3185_vm0, %v3184_v1 }
 0x900   : > { %v1491_v7 = vpop.f32.mrf.mxu1 }
 0x901   : > { %v1492_v9 = vadd.f32 %v2621_v6, %v1491_v7 }
 0x902   : > { %v2897_v10 = vpop.f32.mrf.mxu1 }
 0x903   : > { %v1497_v11 = vadd.f32 %v1492_v9, %v1308_v43 }
 0x904   : > { %v1494_v12 = vpop.f32.mrf.mxu1 }
 0x905   : > { %v1500_v13 = vsel %vm575_vm2, %v1497_v11, 0.0 }
 0x906   : > { %1501 = vadd.xlane.f32.xlu0 %v1500_v13  ;;  %v2898_v14 = vpop.f32.mrf.mxu1 }
 0x98f   : > { %v1502_v15 = vpop.xlane.xlu0 %1501 }
 0x990   : > { %v1503_v16 = vmul.f32 0.03125, %v1502_v15 }
 0x992   : > { %v1504_v17 = vsub.f32 %v1497_v11, %v1503_v16 }
 0x994   : > { %v1505_v18 = vmul.f32 %v1504_v17, %v1504_v17 }
 0x996   : > { %v1506_v19 = vsel %vm575_vm2, %v1505_v18, 0.0 }
 0x997   : > { %1507 = vadd.xlane.f32.xlu1 %v1506_v19 }
 0xa20   : > { %v1508_v22 = vpop.xlane.xlu1 %1507 }
 0xa21   : > { %v1509_v23 = vmul.f32 0.03125, %v1508_v22 }
 0xa23   : > { %v1510_v24 = vadd.f32 1e-05, %v1509_v23 }
 0xa25   : > { %3098 = vrsqrt.f32 %v1510_v24 }
 0xa32   : > { %v3099_v25 = vpop.eup %3098 }
 0xa33   : > { %v1512_v27 = vmul.f32 %v3099_v25, %v1504_v17 }
 0xa35   : > { %v1519_v29 = vmul.f32 %v2630_v26, %v1512_v27 }
 0xa37   : > { %v3547_v30 = vadd.f32 %v2631_v28, %v1519_v29 }
 0xa39   : > { %v1532_v31 = vpack.c.bf16 %v3547_v30, %v3547_v30 }
 0xa3b   : > { %2904 = vmatmul.mubr.msk.bf16.vlgmr.msra.gmra.mxu0 %vm575_vm2, %v1532_v31 }
 0xa3c   : > { %2909 = vmatprep.mubr.msk.bf16.mxu0 %vm3185_vm0, %v3184_v1 }
 0xafb   : > { %v1590_v33 = vpop.f32.mrf.mxu0 }
 0xafc   : > { %v1591_v34 = vadd.f32 %v2637_v32, %v1590_v33 }
 0xafd   : > { %v2905_v35 = vpop.f32.mrf.mxu0 }
 0xafe   : > { %1600 = vrot.lane.b32.xlu1 %v1591_v34, %s3798_s16  ;;  %1597 = vrot.lane.b32.xlu0 %v1591_v34, %s3799_s26  ;;  %v1606_v36 = vpack.c.bf16 %v1591_v34, %v1591_v34  ;;  %s2702_s16 = sshll.u32 %s3293_s22, 4  ;;  %s484_s26 = scalar_lea.vmem [#allocation2], %s483_s30 }
 0xaff   : > { %v1593_v8 = vpop.f32.mrf.mxu0  ;;  %s2533_s17 = scalar_lea.hbm %s3777_s15, %s2702_s16  ;;  %s3128_s22 = scalar_lea.vmem %s3127_s3, 32 }
 0xb01   : > { %v2906_v37 = vpop.f32.mrf.mxu0 }
 0xb02   : > { %1603 = vrot.lane.b32.xlu1 %v1591_v34, %s3800_s25  ;;  %1611 = vrot.lane.b32.xlu0 %v1606_v36, %s3801_s1  ;;  %s2535_s25 = sshll.u32 %s484_s26, 4  ;;  %s2536_s25 = int_to_ptr.vmem [resolvable:$true] %s2535_s25 }
 0xb03   : > { %s3122_s0 = scalar_lea.vmem %s2536_s25, 16  ;;  %p3129_p0 = scmp.lt.s32.totalorder %s2536_s25, %s3127_s3 }
 0xb04   : > { %p3123_p11 = scmp.ne.s32.totalorder %s2536_s25, %s3122_s0  ;;  %p3130_p1 = scmp.lt.s32.totalorder %s3128_s22, %s3122_s0 }
 0xb06   : > { %p3124_p12 = pnand %p3123_p11, %p3310_p5  ;;  %p3131_p2 = por %p3130_p1, %p3129_p0 }
 0xb08   : > { %p3125_p13 = pneg %p3124_p12 }
 0xb0a   : > { %p3132_p3 = pnand %p3131_p2, %p3125_p13 }
 0xb70   : > { %v1601_v38 = vpop.permute.xlu1 %1600  ;;  %v1598_v39 = vpop.permute.xlu0 %1597 }
 0xb71   : > { %v1608_v40 = vpack.c.bf16 %v1601_v38, %v1601_v38  ;;  %v3561_v41 = vpack.c.bf16 %v1598_v39, %v1598_v39 }
 0xb73   : > { %1660 = vrot.lane.b32.xlu1 %v3561_v41, %s3801_s1  ;;  %1709 = vrot.lane.b32.xlu0 %v1608_v40, %s3801_s1 }
 0xb74   : > { %v1604_v42 = vpop.permute.xlu1 %1603  ;;  %v1612_v43 = vpop.permute.xlu0 %1611 }
 0xb75   : > { %v3566_v44 = vpack.c.bf16 %v1604_v42, %v1604_v42  ;;  %v1617_v45 = vsel %vm636_vm3, %v1612_v43, 0 }
 0xb76   : > { %2908 = vmatpush3.bf16.xpose.msra.mxu0 %v1617_v45 }
 0xb77   : > { %1758 = vrot.lane.b32.xlu1 %v3566_v44, %s3801_s1  ;;  %2913 = vmatprep.subr.bf16.mxu0 %v3184_v1 }
 0xb7d   : > { %2910 = vmatmul.mubr.msk.bf16.vlgmr.msra.gmra.mxu0 %vm636_vm3, %v1606_v36 }
 0xb7e   : > { %2915 = vmatprep.mubr.msk.bf16.mxu0 %vm3185_vm0, %v3184_v1 }
 0xbe5   : > { %v1661_v46 = vpop.permute.xlu1 %1660  ;;  %v1710_v50 = vpop.permute.xlu0 %1709 }
 0xbe6   : > { %v1666_v47 = vsel %vm636_vm3, %v1661_v46, 0  ;;  %v1715_v51 = vsel %vm636_vm3, %v1710_v50, 0 }
 0xbe7   : > { %2914 = vmatpush3.bf16.xpose.msra.mxu0 %v1666_v47 }
 0xbe8   : > { %2919 = vmatprep.subr.bf16.mxu0 %v3184_v1 }
 0xbe9   : > { %v1759_v48 = vpop.permute.xlu1 %1758 }
 0xbea   : > { %v1764_v49 = vsel %vm636_vm3, %v1759_v48, 0 }
 0xbeb   : > { %2926 = vmatpush3.bf16.xpose.msra.mxu1 %v1764_v49  ;;  %v2649_v49 = vld [vmem:[%s3767_s5 + $0x10] sm:$0xf] }
 0xbec   : > { %2937 = vmatprep.subr.bf16.mxu1 %v3184_v1 }
 0xbee   : > { %2916 = vmatmul.mubr.msk.bf16.vlgmr.msra.gmra.mxu0 %vm636_vm3, %v3561_v41 }
 0xbef   : > { %2920 = vmatpush3.bf16.xpose.msra.mxu0 %v1715_v51  ;;  %2921 = vmatprep.mubr.msk.bf16.mxu0 %vm3185_vm0, %v3184_v1 }
 0xbf0   : > { %2931 = vmatprep.subr.bf16.mxu0 %v3184_v1 }
 0xbf2   : > { %2928 = vmatmul.mubr.msk.bf16.vlgmr.msra.gmra.mxu1 %vm636_vm3, %v3566_v44 }
 0xbf3   : > { %2939 = vmatprep.mubr.msk.bf16.mxu1 %vm3185_vm0, %v3184_v1 }
 0xbf6   : > { %2922 = vmatmul.mubr.msk.bf16.vlgmr.msra.gmra.mxu0 %vm636_vm3, %v1608_v40 }
 0xbf7   : > { %2933 = vmatprep.mubr.msk.bf16.mxu0 %vm3185_vm0, %v3184_v1 }
 0xc3d   : > { %v1653_v52 = vpop.f32.mrf.mxu0 }
 0xc3e   : > { %v1806_v53 = vsel %vm636_vm3, %v1653_v52, -inf }
 0xc3f   : > { %1807 = vmax.xlane.f32.xlu0 %v1806_v53  ;;  %v2911_v54 = vpop.f32.mrf.mxu0 }
 0xc41   : > { %v1656_v55 = vpop.f32.mrf.mxu0 }
 0xc43   : > { %v2912_v56 = vpop.f32.mrf.mxu0 }
 0xc44   : > { %v2650_v56 = vld [vmem:[%s3767_s5 + $0x14] sm:$0xf] }
 0xcae   : > { %v1702_v57 = vpop.f32.mrf.mxu0 }
 0xcaf   : > { %v1809_v58 = vsel %vm636_vm3, %v1702_v57, -inf }
 0xcb0   : > { %1810 = vmax.xlane.f32.xlu1 %v1809_v58  ;;  %v2917_v59 = vpop.f32.mrf.mxu0  ;;  %v2651_v58 = vld [vmem:[%s3767_s5 + $0x18] sm:$0xf] }
 0xcb2   : > { %v1705_v60 = vpop.f32.mrf.mxu0  ;;  %v1800_v61 = vpop.f32.mrf.mxu1 }
 0xcb3   : > { %v1815_v7 = vsel %vm636_vm3, %v1800_v61, -inf }
 0xcb4   : > { %v2918_v62 = vpop.f32.mrf.mxu0  ;;  %v2929_v63 = vpop.f32.mrf.mxu1 }
 0xcb6   : > { %v1751_v0 = vpop.f32.mrf.mxu0  ;;  %v1803_v2 = vpop.f32.mrf.mxu1 }
 0xcb7   : > { %v1812_v3 = vsel %vm636_vm3, %v1751_v0, -inf  ;;  %v2652_v2 = vld [vmem:[%s3767_s5 + $0x1c] sm:$0xf] }
 0xcb8   : > { %v2930_v4 = vpop.f32.mrf.mxu1  ;;  %1813 = vmax.xlane.f32.xlu0 %v1812_v3  ;;  %v2923_v5 = vpop.f32.mrf.mxu0 }
 0xcb9   : > { %v2197_v5 = vsel %vm883_vm4, %v2652_v2, 0  ;;  %v3072_v2 = vld [vmem:[%s3773_s11 + $0x68] sm:$0xff]  }
 0xcba   : > { %v1754_v6 = vpop.f32.mrf.mxu0 }
 0xcbc   : > { %1816 = vmax.xlane.f32.xlu0 %v1815_v7  ;;  %v2924_v9 = vpop.f32.mrf.mxu0 }
 0xcc1   : > { %1854 = vrot.lane.b32.xlu1 %v1606_v36, %s3802_s23 }
 0xcc8   : > { %v1808_v10 = vpop.xlane.xlu0 %1807 }
 0xcc9   : > { %v1818_v11 = vsub.f32 %v1653_v52, %v1808_v10  ;;  %v2059_v52 = vsel %vm883_vm4, %v2649_v49, 0 }
 0xccb   : > { %v1822_v12 = vmul.f32 1.442695, %v1818_v11 }
 0xccd   : > { %3100 = vpow2.f32 %v1822_v12 }
 0xcda   : > { %v3101_v13 = vpop.eup %3100 }
 0xcdb   : > { %v1830_v14 = vsel %vm636_vm3, %v3101_v13, 0.0 }
 0xce5   : > { %1831 = vadd.xlane.f32.xlu1 %v1830_v14 }
 0xcf6   : > { %1950 = vrot.lane.b32.xlu1 %v1608_v40, %s3802_s23 }
 0xd39   : > { %v1811_v15 = vpop.xlane.xlu1 %1810 }
 0xd3a   : > { %v1819_v16 = vsub.f32 %v1702_v57, %v1811_v15  ;;  %v2105_v57 = vsel %vm883_vm4, %v2650_v56, 0 }
 0xd3c   : > { %v1824_v17 = vmul.f32 1.442695, %v1819_v16 }
 0xd3d   : > { %v1855_v18 = vpop.permute.xlu1 %1854 }
 0xd3e   : > { %3102 = vpow2.f32 %v1824_v17  ;;  %v1860_v19 = vsel %vm883_vm4, %v1855_v18, 0 }
 0xd3f   : > { %2932 = vmatpush3.bf16.msra.mxu0 %v1860_v19 }
 0xd40   : > { %2943 = vmatprep.subr.bf16.mxu0 %v3184_v1 }
 0xd41   : > { %v1814_v20 = vpop.xlane.xlu0 %1813 }
 0xd42   : > { %v1820_v21 = vsub.f32 %v1751_v0, %v1814_v20 }
 0xd44   : > { %v1826_v22 = vmul.f32 1.442695, %v1820_v21 }
 0xd45   : > { %v1817_v23 = vpop.xlane.xlu0 %1816 }
 0xd46   : > { %3104 = vpow2.f32 %v1826_v22  ;;  %v1821_v24 = vsub.f32 %v1800_v61, %v1817_v23  ;;  %v2151_v61 = vsel %vm883_vm4, %v2651_v58, 0 }
 0xd48   : > { %v1828_v25 = vmul.f32 1.442695, %v1821_v24 }
 0xd4a   : > { %3106 = vpow2.f32 %v1828_v25 }
 0xd4b   : > { %v3103_v26 = vpop.eup %3102 }
 0xd4c   : > { %v1833_v27 = vsel %vm636_vm3, %v3103_v26, 0.0 }
 0xd4d   : > { %1834 = vadd.xlane.f32.xlu0 %v1833_v27 }
 0xd53   : > { %v3105_v28 = vpop.eup %3104 }
 0xd54   : > { %v1836_v29 = vsel %vm636_vm3, %v3105_v28, 0.0 }
 0xd55   : > { %1837 = vadd.xlane.f32.xlu1 %v1836_v29 }
 0xd57   : > { %v3107_v31 = vpop.eup %3106 }
 0xd58   : > { %v1839_v32 = vsel %vm636_vm3, %v3107_v31, 0.0 }
 0xd59   : > { %1840 = vadd.xlane.f32.xlu0 %v1839_v32 }
 0xd66   : > { %1998 = vrot.lane.b32.xlu1 %v3566_v44, %s3802_s23 }
 0xd6e   : > { %v1832_v33 = vpop.xlane.xlu1 %1831 }
 0xd6f   : > { %3108 = vrcp.f32 %v1832_v33  ;;  %1902 = vrot.lane.b32.xlu0 %v3561_v41, %s3802_s23 }
 0xd72   : > { %v1951_v8 = vpop.permute.xlu1 %1950 }
 0xd73   : > { %v1956_v37 = vsel %vm883_vm4, %v1951_v8, 0 }
 0xd7c   : > { %v3109_v34 = vpop.eup %3108 }
 0xd7d   : > { %v1846_v35 = vmul.f32 %v3109_v34, %v3101_v13 }
 0xd7f   : > { %v1850_v36 = vpack.c.bf16 %v1846_v35, %v1846_v35 }
 0xd81   : > { %2934 = vmatmul.mubr.msk.bf16.vlgmr.msra.gmra.mxu0 %vm636_vm3, %v1850_v36 }
 0xd82   : > { %2944 = vmatpush3.bf16.msra.mxu0 %v1956_v37  ;;  %2945 = vmatprep.mubr.msk.bf16.mxu0 %vm3185_vm0, %v3184_v1 }
 0xd83   : > { %2955 = vmatprep.subr.bf16.mxu0 %v3184_v1 }
 0xdd6   : > { %v1835_v38 = vpop.xlane.xlu0 %1834 }
 0xdd7   : > { %3110 = vrcp.f32 %v1835_v38  ;;  %v2658_v38 = vld [vmem:[%s3768_s6 + $0x1] ss:$0 sm:$0xff] }
 0xdde   : > { %v1838_v39 = vpop.xlane.xlu1 %1837 }
 0xddf   : > { %3112 = vrcp.f32 %v1838_v39 }
 0xde2   : > { %v1841_v40 = vpop.xlane.xlu0 %1840  ;;  %v1999_v45 = vpop.permute.xlu1 %1998 }
 0xde3   : > { %3114 = vrcp.f32 %v1841_v40  ;;  %v2004_v47 = vsel %vm883_vm4, %v1999_v45, 0 }
 0xde4   : > { %v3111_v41 = vpop.eup %3110 }
 0xde5   : > { %v1847_v42 = vmul.f32 %v3111_v41, %v3103_v26 }
 0xde6   : > { %v1903_v43 = vpop.permute.xlu0 %1902 }
 0xde7   : > { %v1908_v44 = vsel %vm883_vm4, %v1903_v43, 0  ;;  %v1851_v46 = vpack.c.bf16 %v1847_v42, %v1847_v42 }
 0xde8   : > { %2938 = vmatpush3.bf16.msra.mxu1 %v1908_v44 }
 0xde9   : > { %2949 = vmatprep.subr.bf16.mxu1 %v3184_v1 }
 0xdeb   : > { %2940 = vmatmul.mubr.msk.bf16.vlgmr.msra.gmra.mxu1 %vm636_vm3, %v1851_v46 }
 0xdec   : > { %v3113_v48 = vpop.eup %3112  ;;  %2950 = vmatpush3.bf16.msra.mxu1 %v2004_v47  ;;  %2951 = vmatprep.mubr.msk.bf16.mxu1 %vm3185_vm0, %v3184_v1 }
 0xded   : > { %v1848_v50 = vmul.f32 %v3113_v48, %v3105_v28  ;;  %2961 = vmatprep.subr.bf16.mxu1 %v3184_v1 }
 0xdef   : > { %v1852_v51 = vpack.c.bf16 %v1848_v50, %v1848_v50 }
 0xdf0   : > { %v3115_v53 = vpop.eup %3114 }
 0xdf1   : > { %2946 = vmatmul.mubr.msk.bf16.vlgmr.msra.gmra.mxu0 %vm636_vm3, %v1852_v51  ;;  %v1849_v54 = vmul.f32 %v3115_v53, %v3107_v31  ;;  %v3069_v53 = vld [vmem:[%s3771_s9 + $0x10] sm:$0xff]  }
 0xdf2   : > { %2956 = vmatpush3.bf16.msra.mxu0 %v2059_v52  ;;  %2957 = vmatprep.mubr.msk.bf16.mxu0 %vm3185_vm0, %v3184_v1  ;;  %v3068_v52 = vld [vmem:[%s3771_s9 + $0x18] sm:$0xff]  }
 0xdf3   : > { %v1853_v55 = vpack.c.bf16 %v1849_v54, %v1849_v54  ;;  %2967 = vmatprep.subr.bf16.mxu0 %v3184_v1 }
 0xdf5   : > { %2952 = vmatmul.mubr.msk.bf16.vlgmr.msra.gmra.mxu1 %vm636_vm3, %v1853_v55 }
 0xdf6   : > { %2963 = vmatprep.mubr.msk.bf16.mxu1 %vm3185_vm0, %v3184_v1  ;;  %2962 = vmatpush3.bf16.msra.mxu1 %v2105_v57  ;;  %v2661_v57 = vld [vmem:[%s3769_s7 + $0x1] ss:$0 sm:$0xff] }
 0xdf7   : > { %2973 = vmatprep.subr.bf16.mxu1 %v3184_v1 }
 0xe41   : > { %v1896_v59 = vpop.f32.mrf.mxu0 }
 0xe42   : > { %v2046_v60 = vpack.c.bf16 %v1896_v59, %v1896_v59  ;;  %v2662_v59 = vld [vmem:[%s3770_s8 + $0x1] ss:$0 sm:$0xff] }
 0xe43   : > { %v2935_v62 = vpop.f32.mrf.mxu0 }
 0xe44   : > { %2958 = vmatmul.mubr.msk.bf16.vlgmr.msra.gmra.mxu0 %vm636_vm3, %v2046_v60 }
 0xe45   : > { %v1899_v63 = vpop.f32.mrf.mxu0  ;;  %2968 = vmatpush3.bf16.msra.mxu0 %v2151_v61  ;;  %2969 = vmatprep.mubr.msk.bf16.mxu0 %vm3185_vm0, %v3184_v1 }
 0xe46   : > { %2979 = vmatprep.subr.bf16.mxu0 %v3184_v1  ;;  %v3070_v63 = vld [vmem:[%s3773_s11 + $0x78] sm:$0xff]  }
 0xe47   : > { %v2936_v0 = vpop.f32.mrf.mxu0 }
 0xe48   : > { %v3071_v0 = vld [vmem:[%s3773_s11 + $0x70] sm:$0xff]  }
 0xeab   : > { %v1944_v3 = vpop.f32.mrf.mxu1 }
 0xeac   : > { %v2047_v4 = vpack.c.bf16 %v1944_v3, %v1944_v3  ;;  %v3073_v3 = vld [vmem:[%s3773_s11 + $0x60] sm:$0xff]  }
 0xead   : > { %v2941_v6 = vpop.f32.mrf.mxu1 }
 0xeae   : > { %2964 = vmatmul.mubr.msk.bf16.vlgmr.msra.gmra.mxu1 %vm636_vm3, %v2047_v4  ;;  %v3074_v4 = vld [vmem:[%s3773_s11 + $0x58] sm:$0xff]   ;;  %v3076_v6 = vld [vmem:[%s3773_s11 + $0x48] sm:$0xff]  }
 0xeaf   : > { %v1947_v7 = vpop.f32.mrf.mxu1  ;;  %2974 = vmatpush3.bf16.msra.mxu1 %v2197_v5  ;;  %2975 = vmatprep.mubr.msk.bf16.mxu1 %vm3185_vm0, %v3184_v1  ;;  %v3075_v5 = vld [vmem:[%s3773_s11 + $0x50] sm:$0xff]  }
 0xeb0   : > { %2987 = vmatprep.subr.bf16.mxu1 %v3184_v1  ;;  %v3077_v7 = vld [vmem:[%s3773_s11 + $0x40] sm:$0xff]  }
 0xeb1   : > { %v2942_v9 = vpop.f32.mrf.mxu1  ;;  %v1992_v10 = vpop.f32.mrf.mxu0 }
 0xeb2   : > { %v2048_v11 = vpack.c.bf16 %v1992_v10, %v1992_v10  ;;  %v2668_v9 = vld [vmem:[%s3772_s10 + $0x1] ss:$0 sm:$0xff] }
 0xeb3   : > { %v2947_v12 = vpop.f32.mrf.mxu0 }
 0xeb4   : > { %2970 = vmatmul.mubr.msk.bf16.vlgmr.msra.gmra.mxu0 %vm636_vm3, %v2048_v11 }
 0xeb5   : > { %v1995_v13 = vpop.f32.mrf.mxu0  ;;  %v2040_v14 = vpop.f32.mrf.mxu1  ;;  %2983 = vmatprep.mubr.msk.bf16.mxu0 %vm3185_vm0, %v3184_v1  ;;  %2980 = vmatpush3.bf16.msra.mxu0 %v3068_v52 }
 0xeb6   : > { %v2049_v15 = vpack.c.bf16 %v2040_v14, %v2040_v14  ;;  %2981 = vmatprep.subr.bf16.mxu0 %v3184_v1 }
 0xeb7   : > { %v2948_v16 = vpop.f32.mrf.mxu0  ;;  %v2953_v17 = vpop.f32.mrf.mxu1 }
 0xeb8   : > { %2976 = vmatmul.mubr.msk.bf16.vlgmr.msra.gmra.mxu1 %vm636_vm3, %v2049_v15 }
 0xeb9   : > { %v2043_v18 = vpop.f32.mrf.mxu1  ;;  %3003 = vmatprep.mubr.msk.bf16.mxu1 %vm3185_vm0, %v3184_v1  ;;  %2982 = vmatpush3.bf16.msra.mxu0 %v3069_v53 }
 0xeba   : > { %2988 = vmatpush3.bf16.msra.mxu1 %v3070_v63 }
 0xebb   : > { %v2954_v19 = vpop.f32.mrf.mxu1  ;;  %2989 = vmatprep.subr.bf16.mxu1 %v3184_v1 }
 0xebe   : > { %2990 = vmatpush3.bf16.msra.mxu1 %v3071_v0 }
 0xebf   : > { %2991 = vmatprep.subr.bf16.mxu1 %v3184_v1 }
 0xec2   : > { %2992 = vmatpush3.bf16.msra.mxu1 %v3072_v2 }
 0xec3   : > { %2993 = vmatprep.subr.bf16.mxu1 %v3184_v1 }
 0xec6   : > { %2994 = vmatpush3.bf16.msra.mxu1 %v3073_v3 }
 0xec7   : > { %2995 = vmatprep.subr.bf16.mxu1 %v3184_v1 }
 0xeca   : > { %2996 = vmatpush3.bf16.msra.mxu1 %v3074_v4 }
 0xecb   : > { %2997 = vmatprep.subr.bf16.mxu1 %v3184_v1 }
 0xece   : > { %2998 = vmatpush3.bf16.msra.mxu1 %v3075_v5 }
 0xecf   : > { %2999 = vmatprep.subr.bf16.mxu1 %v3184_v1 }
 0xed2   : > { %3000 = vmatpush3.bf16.msra.mxu1 %v3076_v6 }
 0xed3   : > { %3001 = vmatprep.subr.bf16.mxu1 %v3184_v1 }
 0xed6   : > { %3002 = vmatpush3.bf16.msra.mxu1 %v3077_v7 }
 0xf04   : > { %v2095_v20 = vpop.f32.mrf.mxu0 }
 0xf05   : > { %v2239_v31 = vsel %vm575_vm2, %v2095_v20, 0.0 }
 0xf06   : > { %v2959_v21 = vpop.f32.mrf.mxu0 }
 0xf08   : > { %v2098_v22 = vpop.f32.mrf.mxu0 }
 0xf0a   : > { %v2960_v23 = vpop.f32.mrf.mxu0 }
 0xf6e   : > { %v2141_v24 = vpop.f32.mrf.mxu1 }
 0xf6f   : > { %v2240_v27 = vsel %vm575_vm2, %v2141_v24, 0.0  ;;  %v2689_v24 = vld [vmem:[%s3774_s12 + $0x1] ss:$0 sm:$0xff] }
 0xf70   : > { %v2965_v25 = vpop.f32.mrf.mxu1  ;;  %v2241_v33 = vadd.f32 %v2240_v27, %v2239_v31 }
 0xf72   : > { %v2144_v26 = vpop.f32.mrf.mxu1 }
 0xf74   : > { %v2966_v28 = vpop.f32.mrf.mxu1  ;;  %v2187_v29 = vpop.f32.mrf.mxu0 }
 0xf75   : > { %v2242_v32 = vsel %vm575_vm2, %v2187_v29, 0.0 }
 0xf76   : > { %v2971_v34 = vpop.f32.mrf.mxu0  ;;  %v2243_v35 = vadd.f32 %v2242_v32, %v2241_v33 }
 0xf78   : > { %v2190_v8 = vpop.f32.mrf.mxu0  ;;  %v2233_v36 = vpop.f32.mrf.mxu1 }
 0xf79   : > { %v2244_v37 = vsel %vm575_vm2, %v2233_v36, 0.0 }
 0xf7a   : > { %v2245_v39 = vadd.f32 %v2244_v37, %v2243_v35  ;;  %v2972_v40 = vpop.f32.mrf.mxu0  ;;  %v2977_v41 = vpop.f32.mrf.mxu1 }
 0xf7b   : > { %v2700_v41 = vld [vmem:[%s3775_s13 + $0x1] ss:$0 sm:$0xff] }
 0xf7c   : > { %v2254_v42 = vadd.f32 %v2658_v38, %v2245_v39  ;;  %v2236_v43 = vpop.f32.mrf.mxu1 }
 0xf7d   : > { %v2701_v43 = vld [vmem:[%s3776_s14 + $0x1] ss:$0 sm:$0xff] }
 0xf7e   : > { %v2978_v44 = vpop.f32.mrf.mxu1  ;;  %v2255_v45 = vadd.f32 %v2254_v42, %v3547_v30 }
 0xf80   : > { %v2260_v46 = vsel %vm575_vm2, %v2255_v45, 0.0 }
 0xf81   : > { %2261 = vadd.xlane.f32.xlu0 %v2260_v46 }
0x100a   : > { %v2262_v47 = vpop.xlane.xlu0 %2261 }
0x100b   : > { %v2263_v48 = vmul.f32 0.03125, %v2262_v47 }
0x100d   : > { %v2264_v49 = vsub.f32 %v2255_v45, %v2263_v48 }
0x100f   : > { %v2265_v50 = vmul.f32 %v2264_v49, %v2264_v49 }
0x1011   : > { %v2266_v51 = vsel %vm575_vm2, %v2265_v50, 0.0 }
0x1012   : > { %2267 = vadd.xlane.f32.xlu1 %v2266_v51 }
0x109b   : > { %v2268_v30 = vpop.xlane.xlu1 %2267 }
0x109c   : > { %v2269_v54 = vmul.f32 0.03125, %v2268_v30 }
0x109e   : > { %v2270_v55 = vadd.f32 1e-05, %v2269_v54 }
0x10a0   : > { %3116 = vrsqrt.f32 %v2270_v55 }
0x10ad   : > { %v3117_v56 = vpop.eup %3116 }
0x10ae   : > { %v2272_v58 = vmul.f32 %v3117_v56, %v2264_v49 }
0x10b0   : > { %v2279_v60 = vmul.f32 %v2661_v57, %v2272_v58 }
0x10b2   : > { %v2286_v61 = vadd.f32 %v2662_v59, %v2279_v60 }
0x10b4   : > { %v2292_v62 = vpack.c.bf16 %v2286_v61, %v2286_v61 }
0x10b6   : > { %2984 = vmatmul.mubr.msk.bf16.vlgmr.msra.gmra.mxu0 %vm575_vm2, %v2292_v62 }
0x1176   : > { %v2350_v10 = vpop.f32.mrf.mxu0 }
0x1177   : > { %v2351_v11 = vadd.f32 %v2668_v9, %v2350_v10 }
0x1178   : > { %v2985_v12 = vpop.f32.mrf.mxu0 }
0x1179   : > { %v2357_v13 = vmul.f32 0.044715, %v2351_v11  ;;  %v2356_v21 = vmul.f32 0.5, %v2351_v11 }
0x117a   : > { %v2353_v14 = vpop.f32.mrf.mxu0 }
0x117b   : > { %v2358_v15 = vmul.f32 %v2357_v13, %v2351_v11 }
0x117c   : > { %v2986_v16 = vpop.f32.mrf.mxu0 }
0x117d   : > { %v2359_v17 = vmul.f32 %v2358_v15, %v2351_v11 }
0x117f   : > { %v2360_v18 = vadd.f32 %v2359_v17, %v2351_v11 }
0x1181   : > { %v2361_v19 = vmul.f32 0.7978846, %v2360_v18 }
0x1183   : > { %3118 = vtanh.f32 %v2361_v19 }
0x1190   : > { %v3119_v20 = vpop.eup %3118 }
0x1191   : > { %v2363_v22 = vadd.f32 1.0, %v3119_v20 }
0x1193   : > { %v2364_v1 = vmul.f32 %v2363_v22, %v2356_v21 }
0x1195   : > { %v2382_v23 = vpack.c.bf16 %v2364_v1, %v2364_v1 }
0x1197   : > { %3004 = vmatmul.mubr.bf16.vlgmr.msra.gmra.mxu1 %v2382_v23 }
0x1257   : > { %v2473_v25 = vpop.f32.mrf.mxu1 }
0x1258   : > { %v2474_v26 = vadd.f32 %v2689_v24, %v2473_v25 }
0x1259   : > { %v3005_v27 = vpop.f32.mrf.mxu1 }
0x125a   : > { %v2479_v28 = vadd.f32 %v2474_v26, %v2286_v61 }
0x125b   : > { %v2476_v29 = vpop.f32.mrf.mxu1 }
0x125c   : > { %v2484_v31 = vsel %vm575_vm2, %v2479_v28, 0.0 }
0x125d   : > { %2485 = vadd.xlane.f32.xlu0 %v2484_v31  ;;  %v3006_v32 = vpop.f32.mrf.mxu1 }
0x12e6   : > { %v2486_v33 = vpop.xlane.xlu0 %2485 }
0x12e7   : > { %v2487_v34 = vmul.f32 0.03125, %v2486_v33 }
0x12e9   : > { %v2488_v35 = vsub.f32 %v2479_v28, %v2487_v34 }
0x12eb   : > { %v2489_v8 = vmul.f32 %v2488_v35, %v2488_v35 }
0x12ed   : > { %v2490_v36 = vsel %vm575_vm2, %v2489_v8, 0.0 }
0x12ee   : > { %2491 = vadd.xlane.f32.xlu0 %v2490_v36 }
0x1377   : > { %v2492_v37 = vpop.xlane.xlu0 %2491 }
0x1378   : > { %v2493_v38 = vmul.f32 0.03125, %v2492_v37 }
0x137a   : > { %v2494_v39 = vadd.f32 1e-05, %v2493_v38 }
0x137c   : > { %3120 = vrsqrt.f32 %v2494_v39 }
0x1389   : > { %v3121_v40 = vpop.eup %3120 }
0x138a   : > { %v2496_v42 = vmul.f32 %v3121_v40, %v2488_v35 }
0x138c   : > { %v2503_v44 = vmul.f32 %v2700_v41, %v2496_v42 }
0x138e   : > { %v2510_v45 = vadd.f32 %v2701_v43, %v2503_v44 }
0x1390   : > { %v2511_v46 = vsel %vm575_vm2, %v2510_v45, 0.0 }
0x1391   : > { %v2512_v47 = vrot.slane %v2511_v46, 4 }
0x1393   : > { %v2513_v48 = vadd.f32 %v2512_v47, %v2511_v46 }
0x1395   : > { %v2514_v49 = vrot.slane %v2513_v48, 2 }
0x1397   : > { %v2515_v50 = vadd.f32 %v2514_v49, %v2513_v48 }
0x1399   : > { %v2516_v51 = vrot.slane %v2515_v50, 1 }
0x139b   : > { %v2517_v52 = vadd.f32 %v2516_v51, %v2515_v50 }
0x139d   : > { %v2519_v53 = vmul.f32 0.125, %v2517_v52 }
0x139f   : > { %2521 = vst.msk [vmem:[%s484_s26] sm:$0x1] %vm2520_vm5, %v2519_v53 }
0x13a0   : > { %3135 = shalt.err (!%p3132_p3)
}
0x13a1   : > { %s3136_s4 = scalar_lea.hbm %s2533_s17, 16  ;;  %s3140_s26 = scalar_lea.hbm %s3777_s15, 32 }
0x13a2   : > { %p3137_p4 = scmp.ne.s32.totalorder %s2533_s17, %s3136_s4  ;;  %p3141_p9 = scmp.lt.s32.totalorder %s2533_s17, %s3777_s15 }
0x13a3   : > { %p3142_p10 = scmp.lt.s32.totalorder %s3140_s26, %s3136_s4 }
0x13a4   : > { %p3138_p7 = pnand %p3137_p4, %p3310_p5 }
0x13a5   : > { %p3143_p11 = por %p3142_p10, %p3141_p9 }
0x13a6   : > { %p3139_p8 = pneg %p3138_p7 }
0x13a8   : > { %p3144_p12 = pnand %p3143_p11, %p3139_p8 }
0x13aa   : > { %3147 = shalt.err (!%p3144_p12)
}
0x13ab   : > { %3007 = dma.vmem_to_hbm [thread:$0]  (%p3310_p5), %s2536_s25, 16, %s2533_s17, %s2523_s27  }
0x13ac PF: > { %p3013_p13 = scmp.ge.s32.totalorder %s3182_s21, 2  ;;  %s2547_s0 = sand.u32 1, %s3170_s18  }
0x13ad   : > { %s2548_s2 = scalar_lea.sflag [#allocation3], %s2547_s0 }
0x13ae   : > { %p3010_p0 = pnand %p3013_p13, %p3314_p6 }
0x13b0   : > { %p3011_p1 = pneg %p3010_p0 }
0x13b2   : > { %3165 = dma.done.wait (%p3011_p1), %s2548_s2, 16  }
0x13b3   : > { %3167 = vsyncadd (%p3011_p1), %s2548_s2, 4294967280  ;;  %s3803_s3 = sld [smem:[#allocation5_spill]]  ;;  %p25_p2 = scmp.ge.s32.totalorder %s3297_s24, 4  }
0x13b4   : > { %s3804_s18 = smov %s3174_s19  ;;  %s3805_s19 = smov %s3178_s20 }
0x13b5   : > { %s3807_s21 = smov %s3297_s24  ;;  %27 = sbr.rel (!%p25_p2) target bundleno = 9 (0x9), region = 127 }
0x13b9   : > { %s3806_s20 = smov %s3803_s3 }
0x13ba   :  { %2552 = vsyncpa [#allocation3], 1 }
0x13bb   :  { %2554 = vsyncpa [#allocation3 + $0x1], 1 }

// kernel: tpu_custom_call.1
= control target key start
LH: loop header
LB: loop body
LE: loop exit
PB: predicated region body
PF: predicated region fallthrough
CT: control target
= control target key end

     0   :  { %s3762_s0 = inlined_call_operand.vmem [shape: f32[2,8,16], index: 0, kind: input, shape index: {}]   ;;  %s3763_s1 = inlined_call_operand.vmem [shape: bf16[16,32], index: 1, kind: input, shape index: {}]   ;;  %s3764_s2 = inlined_call_operand.vmem [shape: f32[1,32], index: 2, kind: input, shape index: {}]   ;;  %s3765_s3 = inlined_call_operand.vmem [shape: bf16[2,32,96], index: 3, kind: input, shape index: {}]   ;;  %s3766_s4 = inlined_call_operand.vmem [shape: f32[2,1,96], index: 4, kind: input, shape index: {}]   ;;  %s3767_s5 = inlined_call_operand.vmem [shape: bf16[2,4,8,32], index: 5, kind: input, shape index: {}]   ;;  %s3768_s6 = inlined_call_operand.vmem [shape: f32[2,1,32], index: 6, kind: input, shape index: {}]   ;;  %s3769_s7 = inlined_call_operand.vmem [shape: f32[2,1,32], index: 7, kind: input, shape index: {}]   ;;  %s3770_s8 = inlined_call_operand.vmem [shape: f32[2,1,32], index: 8, kind: input, shape index: {}]   ;;  %s3771_s9 = inlined_call_operand.vmem [shape: bf16[2,32,128], index: 9, kind: input, shape index: {}]   ;;  %s3772_s10 = inlined_call_operand.vmem [shape: f32[2,1,128], index: 10, kind: input, shape index: {}]   ;;  %s3773_s11 = inlined_call_operand.vmem [shape: bf16[2,128,32], index: 11, kind: input, shape index: {}]   ;;  %s3774_s12 = inlined_call_operand.vmem [shape: f32[2,1,32], index: 12, kind: input, shape index: {}]   ;;  %s3775_s13 = inlined_call_operand.vmem [shape: f32[2,1,32], index: 13, kind: input, shape index: {}]   ;;  %s3776_s14 = inlined_call_operand.vmem [shape: f32[2,1,32], index: 14, kind: input, shape index: {}]   ;;  %s3777_s15 = inlined_call_operand.hbm [shape: f32[2,1,32], index: 15, kind: output, shape index: {}]  }
   0x1   :  { %3785 = sst [smem:[#allocation6_spill]] %s3762_s0 }
   0x2   :  { %3786 = sst [smem:[#allocation7_spill]] %s3763_s1 }
   0x3   :  { %3787 = sst [smem:[#allocation8_spill]] %s3764_s2 }
   0x4   :  { %3788 = sst [smem:[#allocation9_spill]] %s3765_s3 }
   0x5   :  { %3789 = sst [smem:[#allocation10_spill]] %s3766_s4 }
   0x6   :  { %20 = vsyncpa [#allocation3], 0 }
   0x7   :  { %22 = vsyncpa [#allocation3 + $0x1], 0  ;;  %s3272_s18 = smov 0   ;;  %s3274_s19 = smov 0  }
   0x8   :  { %s3276_s20 = smov 0   ;;  %s3278_s21 = smov 0  }
   0x9 LB: > { %s3293_s22 = sadd.s32 4294967295, %s3182_s21   ;;  %s2590_s23 = sadd.s32 4294967294, %s3182_s21   ;;  %s3182_s21 = sphi %s3278_s21, %s3807_s21   ;;  %s3178_s20 = sphi %s3276_s20, %s3806_s20   ;;  %s3174_s19 = sphi %s3274_s19, %s3805_s19   ;;  %s3170_s18 = sphi %s3272_s18, %s3804_s18  }
   0xa   : > { %s3297_s24 = sadd.s32 1, %s3182_s21   ;;  %s355_s25 = sadd.s32 1, %s3178_s20 }
   0xb   : > { %s352_s26 = ssub.s32 %s3182_s21, %s3297_s24  ;;  %p365_p0 = scmp.ne.s32.totalorder %s3178_s20, %s3174_s19 }
   0xc   : > { %p353_p1 = scmp.eq.s32.totalorder %s352_s26, 0  ;;  %p366_p2 = scmp.eq.s32.totalorder %s3293_s22, 1 }
   0xd   : > { %p371_p3 = scmp.ne.s32.totalorder %s3174_s19, %s3170_s18  ;;  %p372_p4 = scmp.eq.s32.totalorder %s2590_s23, 1 }
   0xe   : > { %s3308_s27 = scalar_select %p353_p1, %s3178_s20, %s355_s25  }
   0xf   : > { %p3310_p5 = por %p366_p2, %p365_p0  ;;  %p3314_p6 = por %p372_p4, %p371_p3 }
  0x10   : > { %3790 = sst [smem:[#allocation5_spill]] %s3308_s27  ;;  %p2593_p7 = scmp.ge.s32.totalorder %s3182_s21, 1 }
  0x11   : > { %p439_p8 = scmp.lt.s32.totalorder %s3182_s21, 3 }
  0x13   : > { %p440_p9 = pnand %p2593_p7, %p439_p8 }
  0x14   : > { %s3793_s1 = sld [smem:[#allocation7_spill]] (!%p440_p9)  ;;  %p485_p10 = scmp.lt.s32.totalorder (!%p440_p9), %s3293_s22, 1 }
  0x15   : > { %443 = sbr.rel (%p440_p9) target bundleno = 5036 (0x13ac), region = 80  ;;  %s3794_s3 = sld [smem:[#allocation9_spill]] (!%p440_p9) }
  0x16   : > { %s3795_s0 = sld [smem:[#allocation6_spill]] (!%p440_p9)  ;;  %s3783_s30 = smov (!%p440_p9), 120  }
  0x17   : > { %s3796_s2 = sld [smem:[#allocation8_spill]] (!%p440_p9)  ;;  %s3784_s16 = smov (!%p440_p9), 112  }
  0x18   : > { %s3797_s4 = sld [smem:[#allocation10_spill]] (!%p440_p9)  ;;  %s3778_s25 = smov (!%p440_p9), 64  }
  0x19   : > { %s3799_s26 = smov (!%p440_p9), 120  }
  0x1a   : > { %v3053_v0 = vld [vmem:[%s3793_s1] sm:$0xff]   ;;  %v3184_v1 = vmov 0.0   ;;  %vm3185_vm0 = vmmov 0   ;;  %s486_s17 = scalar_select %p485_p10, %s3293_s22, 1  ;;  %vm507_vm1 = vcmask 130048   ;;  %vm575_vm2 = vcmask 261120  }
  0x1b   : > { %2785 = vmatprep.subr.bf16.mxu0 %v3184_v1  ;;  %2817 = vmatprep.subr.bf16.mxu1 %v3184_v1  ;;  %v3054_v2 = vld [vmem:[%s3794_s3 + $0x8] sm:$0xff]   ;;  %v3055_v5 = vld [vmem:[%s3794_s3] sm:$0xff]   ;;  %vm636_vm3 = vcmask 64512   ;;  %vm883_vm4 = vcmask 1043456   ;;  %vm2520_vm5 = vcmask 253952  }
  0x1c   : > { %2786 = vmatpush3.bf16.msra.mxu0 %v3053_v0  ;;  %2787 = vmatprep.mubr.msk.bf16.mxu0 %vm3185_vm0, %v3184_v1  ;;  %s2594_s23 = sshll.u32 %s486_s17, 3  ;;  %s3780_s17 = smov 96  }
  0x1d   : > { %2791 = vmatprep.subr.bf16.mxu0 %v3184_v1  ;;  %2819 = vmatprep.mubr.msk.bf16.mxu1 %vm3185_vm0, %v3184_v1  ;;  %s488_s1 = scalar_lea.vmem %s3795_s0, %s2594_s23  ;;  %v2595_v6 = vld [vmem:[%s3796_s2] ss:$0 sm:$0xff]  ;;  %s3782_s23 = smov 104  }
  0x1e   : > { %v490_v3 = vld [vmem:[%s488_s1] sm:$0xff]  ;;  %s3801_s1 = smov 96   ;;  %s3191_s2 = smov [#allocation2]  }
  0x1f   : > { %v493_v4 = vpack.c.bf16 %v490_v3, %v490_v3  ;;  %v2598_v13 = vld [vmem:[%s3797_s4] ss:$0 sm:$0xff] }
  0x21   : > { %2788 = vmatmul.mubr.msk.bf16.vlgmr.msra.gmra.mxu0 %vm507_vm1, %v493_v4 }
  0x22   : > { %2792 = vmatpush3.bf16.msra.mxu0 %v3054_v2  ;;  %2795 = vmatprep.mubr.msk.bf16.mxu0 %vm3185_vm0, %v3184_v1 }
  0x23   : > { %2793 = vmatprep.subr.bf16.mxu0 %v3184_v1 }
  0x26   : > { %2794 = vmatpush3.bf16.msra.mxu0 %v3055_v5 }
  0x27   : > { %2799 = vmatprep.subr.bf16.mxu0 %v3184_v1 }
  0xe1   : > { %v545_v7 = vpop.f32.mrf.mxu0 }
  0xe2   : > { %v3348_v8 = vadd.f32 %v2595_v6, %v545_v7 }
  0xe3   : > { %v2789_v9 = vpop.f32.mrf.mxu0 }
  0xe4   : > { %v555_v10 = vpack.c.bf16 %v3348_v8, %v3348_v8 }
  0xe5   : > { %v548_v11 = vpop.f32.mrf.mxu0 }
  0xe6   : > { %2796 = vmatmul.mubr.msk.bf16.vlgmr.msra.gmra.mxu0 %vm575_vm2, %v555_v10 }
  0xe7   : > { %v2790_v12 = vpop.f32.mrf.mxu0  ;;  %2801 = vmatprep.mubr.msk.bf16.mxu0 %vm3185_vm0, %v3184_v1 }
 0x1a6   : > { %v613_v14 = vpop.f32.mrf.mxu0 }
 0x1a7   : > { %v614_v15 = vadd.f32 %v2598_v13, %v613_v14 }
 0x1a8   : > { %v2797_v16 = vpop.f32.mrf.mxu0 }
 0x1a9   : > { %626 = vrot.lane.b32.xlu1 %v614_v15, %s3782_s23  ;;  %620 = vrot.lane.b32.xlu0 %v614_v15, %s3783_s30  ;;  %v3360_v18 = vpack.c.bf16 %v614_v15, %v614_v15  ;;  %s3802_s23 = smov 64   ;;  %s483_s30 = sand.u32 1, %s3174_s19  }
 0x1aa   : > { %v616_v17 = vpop.f32.mrf.mxu0  ;;  %s2523_s27 = scalar_lea.sflag [#allocation3], %s483_s30 }
 0x1ac   : > { %v2798_v19 = vpop.f32.mrf.mxu0 }
 0x1ad   : > { %623 = vrot.lane.b32.xlu0 %v614_v15, %s3784_s16  ;;  %634 = vrot.lane.b32.xlu1 %v3360_v18, %s3780_s17  ;;  %s3798_s16 = smov 112  }
 0x21b   : > { %v627_v20 = vpop.permute.xlu1 %626  ;;  %v621_v21 = vpop.permute.xlu0 %620 }
 0x21c   : > { %v630_v22 = vpack.c.bf16 %v621_v21, %v621_v21  ;;  %v3366_v25 = vpack.c.bf16 %v627_v20, %v627_v20 }
 0x21e   : > { %684 = vrot.lane.b32.xlu0 %v630_v22, %s3780_s17 }
 0x21f   : > { %v624_v23 = vpop.permute.xlu0 %623  ;;  %v635_v24 = vpop.permute.xlu1 %634 }
 0x220   : > { %v3368_v26 = vpack.c.bf16 %v624_v23, %v624_v23  ;;  %v641_v27 = vsel %vm636_vm3, %v635_v24, 0 }
 0x221   : > { %2800 = vmatpush3.bf16.xpose.msra.mxu0 %v641_v27 }
 0x222   : > { %782 = vrot.lane.b32.xlu0 %v3366_v25, %s3780_s17  ;;  %733 = vrot.lane.b32.xlu1 %v3368_v26, %s3780_s17 }
 0x223   : > { %2805 = vmatprep.subr.bf16.mxu0 %v3184_v1 }
 0x228   : > { %2802 = vmatmul.mubr.msk.bf16.vlgmr.msra.gmra.mxu0 %vm636_vm3, %v3360_v18 }
 0x229   : > { %2807 = vmatprep.mubr.msk.bf16.mxu0 %vm3185_vm0, %v3184_v1 }
 0x290   : > { %v685_v28 = vpop.permute.xlu0 %684 }
 0x291   : > { %v690_v29 = vsel %vm636_vm3, %v685_v28, 0 }
 0x292   : > { %2806 = vmatpush3.bf16.xpose.msra.mxu0 %v690_v29 }
 0x293   : > { %2811 = vmatprep.subr.bf16.mxu0 %v3184_v1 }
 0x294   : > { %v783_v30 = vpop.permute.xlu0 %782  ;;  %v734_v32 = vpop.permute.xlu1 %733 }
 0x295   : > { %v788_v31 = vsel %vm636_vm3, %v783_v30, 0  ;;  %v739_v33 = vsel %vm636_vm3, %v734_v32, 0 }
 0x296   : > { %2818 = vmatpush3.bf16.xpose.msra.mxu1 %v788_v31 }
 0x297   : > { %2829 = vmatprep.subr.bf16.mxu1 %v3184_v1 }
 0x299   : > { %2808 = vmatmul.mubr.msk.bf16.vlgmr.msra.gmra.mxu0 %vm636_vm3, %v630_v22 }
 0x29a   : > { %2812 = vmatpush3.bf16.xpose.msra.mxu0 %v739_v33  ;;  %2813 = vmatprep.mubr.msk.bf16.mxu0 %vm3185_vm0, %v3184_v1  ;;  %v1075_v33 = vld [vmem:[%s3767_s5] sm:$0xf] }
 0x29b   : > { %2823 = vmatprep.subr.bf16.mxu0 %v3184_v1 }
 0x29d   : > { %2820 = vmatmul.mubr.msk.bf16.vlgmr.msra.gmra.mxu1 %vm636_vm3, %v3366_v25 }
 0x29e   : > { %2831 = vmatprep.mubr.msk.bf16.mxu1 %vm3185_vm0, %v3184_v1 }
 0x2a1   : > { %2814 = vmatmul.mubr.msk.bf16.vlgmr.msra.gmra.mxu0 %vm636_vm3, %v3368_v26 }
 0x2a2   : > { %2825 = vmatprep.mubr.msk.bf16.mxu0 %vm3185_vm0, %v3184_v1 }
 0x2e8   : > { %v677_v34 = vpop.f32.mrf.mxu0 }
 0x2e9   : > { %v830_v35 = vsel %vm636_vm3, %v677_v34, -inf }
 0x2ea   : > { %831 = vmax.xlane.f32.xlu1 %v830_v35  ;;  %v2803_v36 = vpop.f32.mrf.mxu0 }
 0x2ec   : > { %v680_v37 = vpop.f32.mrf.mxu0 }
 0x2ed   : > { %v1083_v37 = vsel %vm883_vm4, %v1075_v33, 0 }
 0x2ee   : > { %v2804_v38 = vpop.f32.mrf.mxu0 }
 0x2ef   : > { %v1076_v38 = vld [vmem:[%s3767_s5 + $0x4] sm:$0xf] }
 0x359   : > { %v726_v39 = vpop.f32.mrf.mxu0 }
 0x35a   : > { %v833_v40 = vsel %vm636_vm3, %v726_v39, -inf }
 0x35b   : > { %834 = vmax.xlane.f32.xlu0 %v833_v40  ;;  %v2809_v41 = vpop.f32.mrf.mxu0  ;;  %v1077_v40 = vld [vmem:[%s3767_s5 + $0x8] sm:$0xf] }
 0x35d   : > { %v729_v42 = vpop.f32.mrf.mxu0  ;;  %v824_v43 = vpop.f32.mrf.mxu1 }
 0x35e   : > { %v839_v44 = vsel %vm636_vm3, %v824_v43, -inf }
 0x35f   : > { %v2821_v45 = vpop.f32.mrf.mxu1  ;;  %840 = vmax.xlane.f32.xlu1 %v839_v44  ;;  %v2810_v46 = vpop.f32.mrf.mxu0 }
 0x361   : > { %v775_v47 = vpop.f32.mrf.mxu0  ;;  %v827_v48 = vpop.f32.mrf.mxu1 }
 0x362   : > { %v836_v49 = vsel %vm636_vm3, %v775_v47, -inf }
 0x363   : > { %v2822_v50 = vpop.f32.mrf.mxu1  ;;  %837 = vmax.xlane.f32.xlu0 %v836_v49  ;;  %v2815_v51 = vpop.f32.mrf.mxu0 }
 0x365   : > { %v778_v52 = vpop.f32.mrf.mxu0 }
 0x367   : > { %v2816_v53 = vpop.f32.mrf.mxu0 }
 0x370   : > { %927 = vrot.lane.b32.xlu1 %v630_v22, %s3778_s25 }
 0x373   : > { %v832_v54 = vpop.xlane.xlu1 %831 }
 0x374   : > { %v842_v55 = vsub.f32 %v677_v34, %v832_v54 }
 0x376   : > { %v846_v56 = vmul.f32 1.442695, %v842_v55 }
 0x378   : > { %3078 = vpow2.f32 %v846_v56 }
 0x385   : > { %v3079_v57 = vpop.eup %3078 }
 0x386   : > { %v854_v58 = vsel %vm636_vm3, %v3079_v57, 0.0 }
 0x387   : > { %855 = vadd.xlane.f32.xlu0 %v854_v58 }
 0x39d   : > { %878 = vrot.lane.b32.xlu0 %v3360_v18, %s3778_s25 }
 0x3e4   : > { %v835_v59 = vpop.xlane.xlu0 %834 }
 0x3e5   : > { %v843_v60 = vsub.f32 %v726_v39, %v835_v59  ;;  %v1129_v39 = vsel %vm883_vm4, %v1076_v38, 0 }
 0x3e7   : > { %v848_v61 = vmul.f32 1.442695, %v843_v60 }
 0x3e8   : > { %v841_v62 = vpop.xlane.xlu1 %840 }
 0x3e9   : > { %3080 = vpow2.f32 %v848_v61  ;;  %v845_v63 = vsub.f32 %v824_v43, %v841_v62  ;;  %v1175_v43 = vsel %vm883_vm4, %v1077_v40, 0 }
 0x3eb   : > { %v852_v0 = vmul.f32 1.442695, %v845_v63 }
 0x3ec   : > { %v928_v2 = vpop.permute.xlu1 %927  ;;  %v838_v3 = vpop.xlane.xlu0 %837 }
 0x3ed   : > { %3082 = vpow2.f32 %v852_v0  ;;  %v933_v4 = vsel %vm883_vm4, %v928_v2, 0  ;;  %v844_v5 = vsub.f32 %v775_v47, %v838_v3  ;;  %v1078_v47 = vld [vmem:[%s3767_s5 + $0xc] sm:$0xf] }
 0x3ee   : > { %2830 = vmatpush3.bf16.msra.mxu1 %v933_v4  ;;  %v1221_v50 = vsel %vm883_vm4, %v1078_v47, 0  ;;  %v3060_v47 = vld [vmem:[%s3773_s11 + $0x28] sm:$0xff]  }
 0x3ef   : > { %v850_v6 = vmul.f32 1.442695, %v844_v5  ;;  %2841 = vmatprep.subr.bf16.mxu1 %v3184_v1 }
 0x3f1   : > { %3084 = vpow2.f32 %v850_v6 }
 0x3f6   : > { %v3081_v7 = vpop.eup %3080 }
 0x3f7   : > { %v857_v9 = vsel %vm636_vm3, %v3081_v7, 0.0 }
 0x3f8   : > { %858 = vadd.xlane.f32.xlu1 %v857_v9 }
 0x3fa   : > { %v3083_v10 = vpop.eup %3082 }
 0x3fb   : > { %v863_v11 = vsel %vm636_vm3, %v3083_v10, 0.0 }
 0x3fc   : > { %864 = vadd.xlane.f32.xlu1 %v863_v11 }
 0x3fe   : > { %v3085_v12 = vpop.eup %3084 }
 0x3ff   : > { %v860_v13 = vsel %vm636_vm3, %v3085_v12, 0.0 }
 0x400   : > { %861 = vadd.xlane.f32.xlu0 %v860_v13 }
 0x40d   : > { %975 = vrot.lane.b32.xlu1 %v3368_v26, %s3778_s25 }
 0x410   : > { %v856_v14 = vpop.xlane.xlu0 %855 }
 0x411   : > { %3086 = vrcp.f32 %v856_v14 }
 0x414   : > { %v879_v15 = vpop.permute.xlu0 %878 }
 0x415   : > { %v885_v16 = vsel %vm883_vm4, %v879_v15, 0 }
 0x416   : > { %1023 = vrot.lane.b32.xlu0 %v3366_v25, %s3778_s25  ;;  %2824 = vmatpush3.bf16.msra.mxu0 %v885_v16  ;;  %s3800_s25 = smov 104  }
 0x417   : > { %2835 = vmatprep.subr.bf16.mxu0 %v3184_v1 }
 0x41e   : > { %v3087_v17 = vpop.eup %3086 }
 0x41f   : > { %v870_v18 = vmul.f32 %v3087_v17, %v3079_v57 }
 0x421   : > { %v874_v19 = vpack.c.bf16 %v870_v18, %v870_v18 }
 0x423   : > { %2826 = vmatmul.mubr.msk.bf16.vlgmr.msra.gmra.mxu0 %vm636_vm3, %v874_v19 }
 0x424   : > { %2837 = vmatprep.mubr.msk.bf16.mxu0 %vm3185_vm0, %v3184_v1 }
 0x481   : > { %v859_v20 = vpop.xlane.xlu1 %858 }
 0x482   : > { %3088 = vrcp.f32 %v859_v20  ;;  %v2614_v20 = vld [vmem:[%s3768_s6] ss:$0 sm:$0xff] }
 0x485   : > { %v865_v21 = vpop.xlane.xlu1 %864 }
 0x486   : > { %3090 = vrcp.f32 %v865_v21 }
 0x489   : > { %v976_v22 = vpop.permute.xlu1 %975  ;;  %v862_v23 = vpop.xlane.xlu0 %861 }
 0x48a   : > { %v981_v24 = vsel %vm883_vm4, %v976_v22, 0  ;;  %3092 = vrcp.f32 %v862_v23 }
 0x48b   : > { %2836 = vmatpush3.bf16.msra.mxu0 %v981_v24 }
 0x48c   : > { %2847 = vmatprep.subr.bf16.mxu0 %v3184_v1 }
 0x48d   : > { %v1024_v27 = vpop.permute.xlu0 %1023 }
 0x48e   : > { %v1029_v30 = vsel %vm883_vm4, %v1024_v27, 0 }
 0x48f   : > { %v3089_v25 = vpop.eup %3088 }
 0x490   : > { %v871_v26 = vmul.f32 %v3089_v25, %v3081_v7 }
 0x492   : > { %v875_v28 = vpack.c.bf16 %v871_v26, %v871_v26 }
 0x493   : > { %v3091_v29 = vpop.eup %3090 }
 0x494   : > { %2832 = vmatmul.mubr.msk.bf16.vlgmr.msra.gmra.mxu1 %vm636_vm3, %v875_v28  ;;  %v873_v31 = vmul.f32 %v3091_v29, %v3083_v10 }
 0x495   : > { %2842 = vmatpush3.bf16.msra.mxu1 %v1029_v30  ;;  %2843 = vmatprep.mubr.msk.bf16.mxu1 %vm3185_vm0, %v3184_v1 }
 0x496   : > { %2853 = vmatprep.subr.bf16.mxu1 %v3184_v1  ;;  %v877_v36 = vpack.c.bf16 %v873_v31, %v873_v31 }
 0x497   : > { %v3093_v32 = vpop.eup %3092 }
 0x498   : > { %v872_v34 = vmul.f32 %v3093_v32, %v3085_v12 }
 0x49a   : > { %v876_v35 = vpack.c.bf16 %v872_v34, %v872_v34  ;;  %v3056_v34 = vld [vmem:[%s3771_s9 + $0x8] sm:$0xff]  }
 0x49c   : > { %2838 = vmatmul.mubr.msk.bf16.vlgmr.msra.gmra.mxu0 %vm636_vm3, %v876_v35  ;;  %2844 = vmatmul.mubr.msk.bf16.vlgmr.msra.gmra.mxu1 %vm636_vm3, %v877_v36  ;;  %v3057_v35 = vld [vmem:[%s3771_s9] sm:$0xff]  }
 0x49d   : > { %2848 = vmatpush3.bf16.msra.mxu0 %v1083_v37  ;;  %2849 = vmatprep.mubr.msk.bf16.mxu0 %vm3185_vm0, %v3184_v1 }
 0x49e   : > { %2855 = vmatprep.mubr.msk.bf16.mxu1 %vm3185_vm0, %v3184_v1  ;;  %2859 = vmatprep.subr.bf16.mxu0 %v3184_v1 }
 0x49f   : > { %2854 = vmatpush3.bf16.msra.mxu1 %v1129_v39  ;;  %v2615_v39 = vld [vmem:[%s3769_s7] ss:$0 sm:$0xff] }
 0x4a0   : > { %2865 = vmatprep.subr.bf16.mxu1 %v3184_v1 }
 0x4e3   : > { %v921_v41 = vpop.f32.mrf.mxu0 }
 0x4e4   : > { %v1071_v42 = vpack.c.bf16 %v921_v41, %v921_v41  ;;  %v2616_v41 = vld [vmem:[%s3770_s8] ss:$0 sm:$0xff] }
 0x4e5   : > { %v2827_v44 = vpop.f32.mrf.mxu0 }
 0x4e6   : > { %2850 = vmatmul.mubr.msk.bf16.vlgmr.msra.gmra.mxu0 %vm636_vm3, %v1071_v42 }
 0x4e7   : > { %v924_v45 = vpop.f32.mrf.mxu0  ;;  %2860 = vmatpush3.bf16.msra.mxu0 %v1175_v43  ;;  %2861 = vmatprep.mubr.msk.bf16.mxu0 %vm3185_vm0, %v3184_v1 }
 0x4e8   : > { %2871 = vmatprep.subr.bf16.mxu0 %v3184_v1  ;;  %v3058_v45 = vld [vmem:[%s3773_s11 + $0x38] sm:$0xff]  }
 0x4e9   : > { %v2828_v46 = vpop.f32.mrf.mxu0 }
 0x4ea   : > { %v3059_v46 = vld [vmem:[%s3773_s11 + $0x30] sm:$0xff]  }
 0x554   : > { %v969_v48 = vpop.f32.mrf.mxu1 }
 0x555   : > { %v1072_v49 = vpack.c.bf16 %v969_v48, %v969_v48  ;;  %v3061_v48 = vld [vmem:[%s3773_s11 + $0x20] sm:$0xff]  }
 0x556   : > { %v2833_v51 = vpop.f32.mrf.mxu1 }
 0x557   : > { %2856 = vmatmul.mubr.msk.bf16.vlgmr.msra.gmra.mxu1 %vm636_vm3, %v1072_v49  ;;  %v3062_v49 = vld [vmem:[%s3773_s11 + $0x18] sm:$0xff]   ;;  %v3064_v51 = vld [vmem:[%s3773_s11 + $0x8] sm:$0xff]  }
 0x558   : > { %v972_v52 = vpop.f32.mrf.mxu1  ;;  %2866 = vmatpush3.bf16.msra.mxu1 %v1221_v50  ;;  %2867 = vmatprep.mubr.msk.bf16.mxu1 %vm3185_vm0, %v3184_v1  ;;  %v3063_v50 = vld [vmem:[%s3773_s11 + $0x10] sm:$0xff]  }
 0x559   : > { %2879 = vmatprep.subr.bf16.mxu1 %v3184_v1  ;;  %v3065_v52 = vld [vmem:[%s3773_s11] sm:$0xff]  }
 0x55a   : > { %v2834_v53 = vpop.f32.mrf.mxu1 }
 0x55b   : > { %v2617_v53 = vld [vmem:[%s3772_s10] ss:$0 sm:$0xff] }
 0x55c   : > { %v1017_v54 = vpop.f32.mrf.mxu0  ;;  %v1065_v55 = vpop.f32.mrf.mxu1 }
 0x55d   : > { %v1073_v56 = vpack.c.bf16 %v1017_v54, %v1017_v54  ;;  %v1074_v57 = vpack.c.bf16 %v1065_v55, %v1065_v55 }
 0x55e   : > { %v2839_v58 = vpop.f32.mrf.mxu0  ;;  %v2845_v59 = vpop.f32.mrf.mxu1 }
 0x55f   : > { %2862 = vmatmul.mubr.msk.bf16.vlgmr.msra.gmra.mxu0 %vm636_vm3, %v1073_v56  ;;  %2868 = vmatmul.mubr.msk.bf16.vlgmr.msra.gmra.mxu1 %vm636_vm3, %v1074_v57 }
 0x560   : > { %v1020_v60 = vpop.f32.mrf.mxu0  ;;  %v1068_v61 = vpop.f32.mrf.mxu1  ;;  %2875 = vmatprep.mubr.msk.bf16.mxu0 %vm3185_vm0, %v3184_v1  ;;  %2895 = vmatprep.mubr.msk.bf16.mxu1 %vm3185_vm0, %v3184_v1 }
 0x561   : > { %2872 = vmatpush3.bf16.msra.mxu0 %v3056_v34  ;;  %2880 = vmatpush3.bf16.msra.mxu1 %v3058_v45 }
 0x562   : > { %v2840_v62 = vpop.f32.mrf.mxu0  ;;  %v2846_v63 = vpop.f32.mrf.mxu1  ;;  %2873 = vmatprep.subr.bf16.mxu0 %v3184_v1  ;;  %2881 = vmatprep.subr.bf16.mxu1 %v3184_v1 }
 0x565   : > { %2874 = vmatpush3.bf16.msra.mxu0 %v3057_v35  ;;  %2882 = vmatpush3.bf16.msra.mxu1 %v3059_v46 }
 0x566   : > { %2899 = vmatprep.subr.bf16.mxu0 %v3184_v1  ;;  %2883 = vmatprep.subr.bf16.mxu1 %v3184_v1 }
 0x569   : > { %2884 = vmatpush3.bf16.msra.mxu1 %v3060_v47 }
 0x56a   : > { %2885 = vmatprep.subr.bf16.mxu1 %v3184_v1 }
 0x56d   : > { %2886 = vmatpush3.bf16.msra.mxu1 %v3061_v48 }
 0x56e   : > { %2887 = vmatprep.subr.bf16.mxu1 %v3184_v1 }
 0x571   : > { %2888 = vmatpush3.bf16.msra.mxu1 %v3062_v49 }
 0x572   : > { %2889 = vmatprep.subr.bf16.mxu1 %v3184_v1 }
 0x575   : > { %2890 = vmatpush3.bf16.msra.mxu1 %v3063_v50 }
 0x576   : > { %2891 = vmatprep.subr.bf16.mxu1 %v3184_v1 }
 0x579   : > { %2892 = vmatpush3.bf16.msra.mxu1 %v3064_v51 }
 0x57a   : > { %2893 = vmatprep.subr.bf16.mxu1 %v3184_v1 }
 0x57d   : > { %2894 = vmatpush3.bf16.msra.mxu1 %v3065_v52 }
 0x57e   : > { %2925 = vmatprep.subr.bf16.mxu1 %v3184_v1 }
 0x5a6   : > { %v1119_v0 = vpop.f32.mrf.mxu0 }
 0x5a7   : > { %v1263_v11 = vsel %vm575_vm2, %v1119_v0, 0.0 }
 0x5a8   : > { %v2851_v2 = vpop.f32.mrf.mxu0 }
 0x5aa   : > { %v1122_v3 = vpop.f32.mrf.mxu0 }
 0x5ac   : > { %v2852_v4 = vpop.f32.mrf.mxu0 }
 0x617   : > { %v1165_v5 = vpop.f32.mrf.mxu1 }
 0x618   : > { %v1264_v9 = vsel %vm575_vm2, %v1165_v5, 0.0 }
 0x619   : > { %v2857_v6 = vpop.f32.mrf.mxu1  ;;  %v1265_v12 = vadd.f32 %v1264_v9, %v1263_v11 }
 0x61a   : > { %v2621_v6 = vld [vmem:[%s3774_s12] ss:$0 sm:$0xff] }
 0x61b   : > { %v1168_v7 = vpop.f32.mrf.mxu1 }
 0x61d   : > { %v2858_v10 = vpop.f32.mrf.mxu1 }
 0x61f   : > { %v1211_v13 = vpop.f32.mrf.mxu0  ;;  %v1257_v14 = vpop.f32.mrf.mxu1 }
 0x620   : > { %v1266_v15 = vsel %vm575_vm2, %v1211_v13, 0.0  ;;  %v1268_v19 = vsel %vm575_vm2, %v1257_v14, 0.0 }
 0x621   : > { %v1267_v16 = vadd.f32 %v1266_v15, %v1265_v12  ;;  %v2863_v17 = vpop.f32.mrf.mxu0  ;;  %v2869_v18 = vpop.f32.mrf.mxu1 }
 0x623   : > { %v1269_v21 = vadd.f32 %v1268_v19, %v1267_v16  ;;  %v1214_v22 = vpop.f32.mrf.mxu0  ;;  %v1260_v23 = vpop.f32.mrf.mxu1 }
 0x625   : > { %v1277_v24 = vadd.f32 %v2614_v20, %v1269_v21  ;;  %v2864_v25 = vpop.f32.mrf.mxu0  ;;  %v2870_v26 = vpop.f32.mrf.mxu1  ;;  %v3066_v20 = vld [vmem:[%s3794_s3 + $0x18] sm:$0xff]   ;;  %v3067_v21 = vld [vmem:[%s3794_s3 + $0x10] sm:$0xff]   ;;  %s3126_s3 = sshll.u32 %s3191_s2, 4  ;;  %s3127_s3 = int_to_ptr.vmem [resolvable:$false] %s3126_s3 }
 0x626   : > { %v2630_v26 = vld [vmem:[%s3775_s13] ss:$0 sm:$0xff] }
 0x627   : > { %v1278_v27 = vadd.f32 %v1277_v24, %v3348_v8 }
 0x629   : > { %v1281_v28 = vsel %vm575_vm2, %v1278_v27, 0.0 }
 0x62a   : > { %1282 = vadd.xlane.f32.xlu1 %v1281_v28  ;;  %v2631_v28 = vld [vmem:[%s3776_s14] ss:$0 sm:$0xff] }
 0x6b3   : > { %v1283_v29 = vpop.xlane.xlu1 %1282 }
 0x6b4   : > { %v1285_v30 = vmul.f32 0.03125, %v1283_v29 }
 0x6b6   : > { %v1286_v31 = vsub.f32 %v1278_v27, %v1285_v30 }
 0x6b8   : > { %v1287_v32 = vmul.f32 %v1286_v31, %v1286_v31 }
 0x6ba   : > { %v1288_v33 = vsel %vm575_vm2, %v1287_v32, 0.0  ;;  %v2637_v32 = vld [vmem:[%s3797_s4 + $0x1] ss:$0 sm:$0xff] }
 0x6bb   : > { %1289 = vadd.xlane.f32.xlu0 %v1288_v33 }
 0x744   : > { %v1290_v8 = vpop.xlane.xlu0 %1289 }
 0x745   : > { %v1291_v36 = vmul.f32 0.03125, %v1290_v8 }
 0x747   : > { %v1292_v37 = vadd.f32 1e-05, %v1291_v36 }
 0x749   : > { %3094 = vrsqrt.f32 %v1292_v37 }
 0x756   : > { %v3095_v38 = vpop.eup %3094 }
 0x757   : > { %v1294_v40 = vmul.f32 %v3095_v38, %v1286_v31 }
 0x759   : > { %v1301_v42 = vmul.f32 %v2615_v39, %v1294_v40 }
 0x75b   : > { %v1308_v43 = vadd.f32 %v2616_v41, %v1301_v42 }
 0x75d   : > { %v1313_v44 = vpack.c.bf16 %v1308_v43, %v1308_v43 }
 0x75f   : > { %2876 = vmatmul.mubr.msk.bf16.vlgmr.msra.gmra.mxu0 %vm575_vm2, %v1313_v44 }
 0x760   : > { %2903 = vmatprep.mubr.msk.bf16.mxu0 %vm3185_vm0, %v3184_v1  ;;  %2900 = vmatpush3.bf16.msra.mxu0 %v3066_v20 }
 0x761   : > { %2901 = vmatprep.subr.bf16.mxu0 %v3184_v1 }
 0x764   : > { %2902 = vmatpush3.bf16.msra.mxu0 %v3067_v21 }
 0x765   : > { %2907 = vmatprep.subr.bf16.mxu0 %v3184_v1 }
 0x81f   : > { %v1370_v54 = vpop.f32.mrf.mxu0 }
 0x820   : > { %v1371_v55 = vadd.f32 %v2617_v53, %v1370_v54 }
 0x821   : > { %v2877_v56 = vpop.f32.mrf.mxu0 }
 0x822   : > { %v1377_v57 = vmul.f32 0.044715, %v1371_v55  ;;  %v1376_v2 = vmul.f32 0.5, %v1371_v55 }
 0x823   : > { %v1373_v58 = vpop.f32.mrf.mxu0 }
 0x824   : > { %v1378_v59 = vmul.f32 %v1377_v57, %v1371_v55 }
 0x825   : > { %v2878_v60 = vpop.f32.mrf.mxu0 }
 0x826   : > { %v1379_v61 = vmul.f32 %v1378_v59, %v1371_v55 }
 0x828   : > { %v1380_v62 = vadd.f32 %v1379_v61, %v1371_v55 }
 0x82a   : > { %v1381_v63 = vmul.f32 0.7978846, %v1380_v62 }
 0x82c   : > { %3096 = vtanh.f32 %v1381_v63 }
 0x839   : > { %v3097_v0 = vpop.eup %3096 }
 0x83a   : > { %v1383_v3 = vadd.f32 1.0, %v3097_v0 }
 0x83c   : > { %v1384_v4 = vmul.f32 %v1383_v3, %v1376_v2 }
 0x83e   : > { %v1401_v5 = vpack.c.bf16 %v1384_v4, %v1384_v4 }
 0x840   : > { %2896 = vmatmul.mubr.bf16.vlgmr.msra.gmra.mxu1 %v1401_v5 }
 0x841   : > { %2927 = vmatprep.mubr.msk.bf16.mxu1 %vm3185_vm0, %v3184_v1 }
 0x900   : > { %v1491_v7 = vpop.f32.mrf.mxu1 }
 0x901   : > { %v1492_v9 = vadd.f32 %v2621_v6, %v1491_v7 }
 0x902   : > { %v2897_v10 = vpop.f32.mrf.mxu1 }
 0x903   : > { %v1497_v11 = vadd.f32 %v1492_v9, %v1308_v43 }
 0x904   : > { %v1494_v12 = vpop.f32.mrf.mxu1 }
 0x905   : > { %v1500_v13 = vsel %vm575_vm2, %v1497_v11, 0.0 }
 0x906   : > { %1501 = vadd.xlane.f32.xlu0 %v1500_v13  ;;  %v2898_v14 = vpop.f32.mrf.mxu1 }
 0x98f   : > { %v1502_v15 = vpop.xlane.xlu0 %1501 }
 0x990   : > { %v1503_v16 = vmul.f32 0.03125, %v1502_v15 }
 0x992   : > { %v1504_v17 = vsub.f32 %v1497_v11, %v1503_v16 }
 0x994   : > { %v1505_v18 = vmul.f32 %v1504_v17, %v1504_v17 }
 0x996   : > { %v1506_v19 = vsel %vm575_vm2, %v1505_v18, 0.0 }
 0x997   : > { %1507 = vadd.xlane.f32.xlu1 %v1506_v19 }
 0xa20   : > { %v1508_v22 = vpop.xlane.xlu1 %1507 }
 0xa21   : > { %v1509_v23 = vmul.f32 0.03125, %v1508_v22 }
 0xa23   : > { %v1510_v24 = vadd.f32 1e-05, %v1509_v23 }
 0xa25   : > { %3098 = vrsqrt.f32 %v1510_v24 }
 0xa32   : > { %v3099_v25 = vpop.eup %3098 }
 0xa33   : > { %v1512_v27 = vmul.f32 %v3099_v25, %v1504_v17 }
 0xa35   : > { %v1519_v29 = vmul.f32 %v2630_v26, %v1512_v27 }
 0xa37   : > { %v3547_v30 = vadd.f32 %v2631_v28, %v1519_v29 }
 0xa39   : > { %v1532_v31 = vpack.c.bf16 %v3547_v30, %v3547_v30 }
 0xa3b   : > { %2904 = vmatmul.mubr.msk.bf16.vlgmr.msra.gmra.mxu0 %vm575_vm2, %v1532_v31 }
 0xa3c   : > { %2909 = vmatprep.mubr.msk.bf16.mxu0 %vm3185_vm0, %v3184_v1 }
 0xafb   : > { %v1590_v33 = vpop.f32.mrf.mxu0 }
 0xafc   : > { %v1591_v34 = vadd.f32 %v2637_v32, %v1590_v33 }
 0xafd   : > { %v2905_v35 = vpop.f32.mrf.mxu0 }
 0xafe   : > { %1600 = vrot.lane.b32.xlu1 %v1591_v34, %s3798_s16  ;;  %1597 = vrot.lane.b32.xlu0 %v1591_v34, %s3799_s26  ;;  %v1606_v36 = vpack.c.bf16 %v1591_v34, %v1591_v34  ;;  %s2702_s16 = sshll.u32 %s3293_s22, 4  ;;  %s484_s26 = scalar_lea.vmem [#allocation2], %s483_s30 }
 0xaff   : > { %v1593_v8 = vpop.f32.mrf.mxu0  ;;  %s2533_s17 = scalar_lea.hbm %s3777_s15, %s2702_s16  ;;  %s3128_s22 = scalar_lea.vmem %s3127_s3, 32 }
 0xb01   : > { %v2906_v37 = vpop.f32.mrf.mxu0 }
 0xb02   : > { %1603 = vrot.lane.b32.xlu1 %v1591_v34, %s3800_s25  ;;  %1611 = vrot.lane.b32.xlu0 %v1606_v36, %s3801_s1  ;;  %s2535_s25 = sshll.u32 %s484_s26, 4  ;;  %s2536_s25 = int_to_ptr.vmem [resolvable:$true] %s2535_s25 }
 0xb03   : > { %s3122_s0 = scalar_lea.vmem %s2536_s25, 16  ;;  %p3129_p0 = scmp.lt.s32.totalorder %s2536_s25, %s3127_s3 }
 0xb04   : > { %p3123_p11 = scmp.ne.s32.totalorder %s2536_s25, %s3122_s0  ;;  %p3130_p1 = scmp.lt.s32.totalorder %s3128_s22, %s3122_s0 }
 0xb06   : > { %p3124_p12 = pnand %p3123_p11, %p3310_p5  ;;  %p3131_p2 = por %p3130_p1, %p3129_p0 }
 0xb08   : > { %p3125_p13 = pneg %p3124_p12 }
 0xb0a   : > { %p3132_p3 = pnand %p3131_p2, %p3125_p13 }
 0xb70   : > { %v1601_v38 = vpop.permute.xlu1 %1600  ;;  %v1598_v39 = vpop.permute.xlu0 %1597 }
 0xb71   : > { %v1608_v40 = vpack.c.bf16 %v1601_v38, %v1601_v38  ;;  %v3561_v41 = vpack.c.bf16 %v1598_v39, %v1598_v39 }
 0xb73   : > { %1660 = vrot.lane.b32.xlu1 %v3561_v41, %s3801_s1  ;;  %1709 = vrot.lane.b32.xlu0 %v1608_v40, %s3801_s1 }
 0xb74   : > { %v1604_v42 = vpop.permute.xlu1 %1603  ;;  %v1612_v43 = vpop.permute.xlu0 %1611 }
 0xb75   : > { %v3566_v44 = vpack.c.bf16 %v1604_v42, %v1604_v42  ;;  %v1617_v45 = vsel %vm636_vm3, %v1612_v43, 0 }
 0xb76   : > { %2908 = vmatpush3.bf16.xpose.msra.mxu0 %v1617_v45 }
 0xb77   : > { %1758 = vrot.lane.b32.xlu1 %v3566_v44, %s3801_s1  ;;  %2913 = vmatprep.subr.bf16.mxu0 %v3184_v1 }
 0xb7d   : > { %2910 = vmatmul.mubr.msk.bf16.vlgmr.msra.gmra.mxu0 %vm636_vm3, %v1606_v36 }
 0xb7e   : > { %2915 = vmatprep.mubr.msk.bf16.mxu0 %vm3185_vm0, %v3184_v1 }
 0xbe5   : > { %v1661_v46 = vpop.permute.xlu1 %1660  ;;  %v1710_v50 = vpop.permute.xlu0 %1709 }
 0xbe6   : > { %v1666_v47 = vsel %vm636_vm3, %v1661_v46, 0  ;;  %v1715_v51 = vsel %vm636_vm3, %v1710_v50, 0 }
 0xbe7   : > { %2914 = vmatpush3.bf16.xpose.msra.mxu0 %v1666_v47 }
 0xbe8   : > { %2919 = vmatprep.subr.bf16.mxu0 %v3184_v1 }
 0xbe9   : > { %v1759_v48 = vpop.permute.xlu1 %1758 }
 0xbea   : > { %v1764_v49 = vsel %vm636_vm3, %v1759_v48, 0 }
 0xbeb   : > { %2926 = vmatpush3.bf16.xpose.msra.mxu1 %v1764_v49  ;;  %v2649_v49 = vld [vmem:[%s3767_s5 + $0x10] sm:$0xf] }
 0xbec   : > { %2937 = vmatprep.subr.bf16.mxu1 %v3184_v1 }
 0xbee   : > { %2916 = vmatmul.mubr.msk.bf16.vlgmr.msra.gmra.mxu0 %vm636_vm3, %v3561_v41 }
 0xbef   : > { %2920 = vmatpush3.bf16.xpose.msra.mxu0 %v1715_v51  ;;  %2921 = vmatprep.mubr.msk.bf16.mxu0 %vm3185_vm0, %v3184_v1 }
 0xbf0   : > { %2931 = vmatprep.subr.bf16.mxu0 %v3184_v1 }
 0xbf2   : > { %2928 = vmatmul.mubr.msk.bf16.vlgmr.msra.gmra.mxu1 %vm636_vm3, %v3566_v44 }
 0xbf3   : > { %2939 = vmatprep.mubr.msk.bf16.mxu1 %vm3185_vm0, %v3184_v1 }
 0xbf6   : > { %2922 = vmatmul.mubr.msk.bf16.vlgmr.msra.gmra.mxu0 %vm636_vm3, %v1608_v40 }
 0xbf7   : > { %2933 = vmatprep.mubr.msk.bf16.mxu0 %vm3185_vm0, %v3184_v1 }
 0xc3d   : > { %v1653_v52 = vpop.f32.mrf.mxu0 }
 0xc3e   : > { %v1806_v53 = vsel %vm636_vm3, %v1653_v52, -inf }
 0xc3f   : > { %1807 = vmax.xlane.f32.xlu0 %v1806_v53  ;;  %v2911_v54 = vpop.f32.mrf.mxu0 }
 0xc41   : > { %v1656_v55 = vpop.f32.mrf.mxu0 }
 0xc43   : > { %v2912_v56 = vpop.f32.mrf.mxu0 }
 0xc44   : > { %v2650_v56 = vld [vmem:[%s3767_s5 + $0x14] sm:$0xf] }
 0xcae   : > { %v1702_v57 = vpop.f32.mrf.mxu0 }
 0xcaf   : > { %v1809_v58 = vsel %vm636_vm3, %v1702_v57, -inf }
 0xcb0   : > { %1810 = vmax.xlane.f32.xlu1 %v1809_v58  ;;  %v2917_v59 = vpop.f32.mrf.mxu0  ;;  %v2651_v58 = vld [vmem:[%s3767_s5 + $0x18] sm:$0xf] }
 0xcb2   : > { %v1705_v60 = vpop.f32.mrf.mxu0  ;;  %v1800_v61 = vpop.f32.mrf.mxu1 }
 0xcb3   : > { %v1815_v7 = vsel %vm636_vm3, %v1800_v61, -inf }
 0xcb4   : > { %v2918_v62 = vpop.f32.mrf.mxu0  ;;  %v2929_v63 = vpop.f32.mrf.mxu1 }
 0xcb6   : > { %v1751_v0 = vpop.f32.mrf.mxu0  ;;  %v1803_v2 = vpop.f32.mrf.mxu1 }
 0xcb7   : > { %v1812_v3 = vsel %vm636_vm3, %v1751_v0, -inf  ;;  %v2652_v2 = vld [vmem:[%s3767_s5 + $0x1c] sm:$0xf] }
 0xcb8   : > { %v2930_v4 = vpop.f32.mrf.mxu1  ;;  %1813 = vmax.xlane.f32.xlu0 %v1812_v3  ;;  %v2923_v5 = vpop.f32.mrf.mxu0 }
 0xcb9   : > { %v2197_v5 = vsel %vm883_vm4, %v2652_v2, 0  ;;  %v3072_v2 = vld [vmem:[%s3773_s11 + $0x68] sm:$0xff]  }
 0xcba   : > { %v1754_v6 = vpop.f32.mrf.mxu0 }
 0xcbc   : > { %1816 = vmax.xlane.f32.xlu0 %v1815_v7  ;;  %v2924_v9 = vpop.f32.mrf.mxu0 }
 0xcc1   : > { %1854 = vrot.lane.b32.xlu1 %v1606_v36, %s3802_s23 }
 0xcc8   : > { %v1808_v10 = vpop.xlane.xlu0 %1807 }
 0xcc9   : > { %v1818_v11 = vsub.f32 %v1653_v52, %v1808_v10  ;;  %v2059_v52 = vsel %vm883_vm4, %v2649_v49, 0 }
 0xccb   : > { %v1822_v12 = vmul.f32 1.442695, %v1818_v11 }
 0xccd   : > { %3100 = vpow2.f32 %v1822_v12 }
 0xcda   : > { %v3101_v13 = vpop.eup %3100 }
 0xcdb   : > { %v1830_v14 = vsel %vm636_vm3, %v3101_v13, 0.0 }
 0xce5   : > { %1831 = vadd.xlane.f32.xlu1 %v1830_v14 }
 0xcf6   : > { %1950 = vrot.lane.b32.xlu1 %v1608_v40, %s3802_s23 }
 0xd39   : > { %v1811_v15 = vpop.xlane.xlu1 %1810 }
 0xd3a   : > { %v1819_v16 = vsub.f32 %v1702_v57, %v1811_v15  ;;  %v2105_v57 = vsel %vm883_vm4, %v2650_v56, 0 }
 0xd3c   : > { %v1824_v17 = vmul.f32 1.442695, %v1819_v16 }
 0xd3d   : > { %v1855_v18 = vpop.permute.xlu1 %1854 }
 0xd3e   : > { %3102 = vpow2.f32 %v1824_v17  ;;  %v1860_v19 = vsel %vm883_vm4, %v1855_v18, 0 }
 0xd3f   : > { %2932 = vmatpush3.bf16.msra.mxu0 %v1860_v19 }
 0xd40   : > { %2943 = vmatprep.subr.bf16.mxu0 %v3184_v1 }
 0xd41   : > { %v1814_v20 = vpop.xlane.xlu0 %1813 }
 0xd42   : > { %v1820_v21 = vsub.f32 %v1751_v0, %v1814_v20 }
 0xd44   : > { %v1826_v22 = vmul.f32 1.442695, %v1820_v21 }
 0xd45   : > { %v1817_v23 = vpop.xlane.xlu0 %1816 }
 0xd46   : > { %3104 = vpow2.f32 %v1826_v22  ;;  %v1821_v24 = vsub.f32 %v1800_v61, %v1817_v23  ;;  %v2151_v61 = vsel %vm883_vm4, %v2651_v58, 0 }
 0xd48   : > { %v1828_v25 = vmul.f32 1.442695, %v1821_v24 }
 0xd4a   : > { %3106 = vpow2.f32 %v1828_v25 }
 0xd4b   : > { %v3103_v26 = vpop.eup %3102 }
 0xd4c   : > { %v1833_v27 = vsel %vm636_vm3, %v3103_v26, 0.0 }
 0xd4d   : > { %1834 = vadd.xlane.f32.xlu0 %v1833_v27 }
 0xd53   : > { %v3105_v28 = vpop.eup %3104 }
 0xd54   : > { %v1836_v29 = vsel %vm636_vm3, %v3105_v28, 0.0 }
 0xd55   : > { %1837 = vadd.xlane.f32.xlu1 %v1836_v29 }
 0xd57   : > { %v3107_v31 = vpop.eup %3106 }
 0xd58   : > { %v1839_v32 = vsel %vm636_vm3, %v3107_v31, 0.0 }
 0xd59   : > { %1840 = vadd.xlane.f32.xlu0 %v1839_v32 }
 0xd66   : > { %1998 = vrot.lane.b32.xlu1 %v3566_v44, %s3802_s23 }
 0xd6e   : > { %v1832_v33 = vpop.xlane.xlu1 %1831 }
 0xd6f   : > { %3108 = vrcp.f32 %v1832_v33  ;;  %1902 = vrot.lane.b32.xlu0 %v3561_v41, %s3802_s23 }
 0xd72   : > { %v1951_v8 = vpop.permute.xlu1 %1950 }
 0xd73   : > { %v1956_v37 = vsel %vm883_vm4, %v1951_v8, 0 }
 0xd7c   : > { %v3109_v34 = vpop.eup %3108 }
 0xd7d   : > { %v1846_v35 = vmul.f32 %v3109_v34, %v3101_v13 }
 0xd7f   : > { %v1850_v36 = vpack.c.bf16 %v1846_v35, %v1846_v35 }
 0xd81   : > { %2934 = vmatmul.mubr.msk.bf16.vlgmr.msra.gmra.mxu0 %vm636_vm3, %v1850_v36 }
 0xd82   : > { %2944 = vmatpush3.bf16.msra.mxu0 %v1956_v37  ;;  %2945 = vmatprep.mubr.msk.bf16.mxu0 %vm3185_vm0, %v3184_v1 }
 0xd83   : > { %2955 = vmatprep.subr.bf16.mxu0 %v3184_v1 }
 0xdd6   : > { %v1835_v38 = vpop.xlane.xlu0 %1834 }
 0xdd7   : > { %3110 = vrcp.f32 %v1835_v38  ;;  %v2658_v38 = vld [vmem:[%s3768_s6 + $0x1] ss:$0 sm:$0xff] }
 0xdde   : > { %v1838_v39 = vpop.xlane.xlu1 %1837 }
 0xddf   : > { %3112 = vrcp.f32 %v1838_v39 }
 0xde2   : > { %v1841_v40 = vpop.xlane.xlu0 %1840  ;;  %v1999_v45 = vpop.permute.xlu1 %1998 }
 0xde3   : > { %3114 = vrcp.f32 %v1841_v40  ;;  %v2004_v47 = vsel %vm883_vm4, %v1999_v45, 0 }
 0xde4   : > { %v3111_v41 = vpop.eup %3110 }
 0xde5   : > { %v1847_v42 = vmul.f32 %v3111_v41, %v3103_v26 }
 0xde6   : > { %v1903_v43 = vpop.permute.xlu0 %1902 }
 0xde7   : > { %v1908_v44 = vsel %vm883_vm4, %v1903_v43, 0  ;;  %v1851_v46 = vpack.c.bf16 %v1847_v42, %v1847_v42 }
 0xde8   : > { %2938 = vmatpush3.bf16.msra.mxu1 %v1908_v44 }
 0xde9   : > { %2949 = vmatprep.subr.bf16.mxu1 %v3184_v1 }
 0xdeb   : > { %2940 = vmatmul.mubr.msk.bf16.vlgmr.msra.gmra.mxu1 %vm636_vm3, %v1851_v46 }
 0xdec   : > { %v3113_v48 = vpop.eup %3112  ;;  %2950 = vmatpush3.bf16.msra.mxu1 %v2004_v47  ;;  %2951 = vmatprep.mubr.msk.bf16.mxu1 %vm3185_vm0, %v3184_v1 }
 0xded   : > { %v1848_v50 = vmul.f32 %v3113_v48, %v3105_v28  ;;  %2961 = vmatprep.subr.bf16.mxu1 %v3184_v1 }
 0xdef   : > { %v1852_v51 = vpack.c.bf16 %v1848_v50, %v1848_v50 }
 0xdf0   : > { %v3115_v53 = vpop.eup %3114 }
 0xdf1   : > { %2946 = vmatmul.mubr.msk.bf16.vlgmr.msra.gmra.mxu0 %vm636_vm3, %v1852_v51  ;;  %v1849_v54 = vmul.f32 %v3115_v53, %v3107_v31  ;;  %v3069_v53 = vld [vmem:[%s3771_s9 + $0x10] sm:$0xff]  }
 0xdf2   : > { %2956 = vmatpush3.bf16.msra.mxu0 %v2059_v52  ;;  %2957 = vmatprep.mubr.msk.bf16.mxu0 %vm3185_vm0, %v3184_v1  ;;  %v3068_v52 = vld [vmem:[%s3771_s9 + $0x18] sm:$0xff]  }
 0xdf3   : > { %v1853_v55 = vpack.c.bf16 %v1849_v54, %v1849_v54  ;;  %2967 = vmatprep.subr.bf16.mxu0 %v3184_v1 }
 0xdf5   : > { %2952 = vmatmul.mubr.msk.bf16.vlgmr.msra.gmra.mxu1 %vm636_vm3, %v1853_v55 }
 0xdf6   : > { %2963 = vmatprep.mubr.msk.bf16.mxu1 %vm3185_vm0, %v3184_v1  ;;  %2962 = vmatpush3.bf16.msra.mxu1 %v2105_v57  ;;  %v2661_v57 = vld [vmem:[%s3769_s7 + $0x1] ss:$0 sm:$0xff] }
 0xdf7   : > { %2973 = vmatprep.subr.bf16.mxu1 %v3184_v1 }
 0xe41   : > { %v1896_v59 = vpop.f32.mrf.mxu0 }
 0xe42   : > { %v2046_v60 = vpack.c.bf16 %v1896_v59, %v1896_v59  ;;  %v2662_v59 = vld [vmem:[%s3770_s8 + $0x1] ss:$0 sm:$0xff] }
 0xe43   : > { %v2935_v62 = vpop.f32.mrf.mxu0 }
 0xe44   : > { %2958 = vmatmul.mubr.msk.bf16.vlgmr.msra.gmra.mxu0 %vm636_vm3, %v2046_v60 }
 0xe45   : > { %v1899_v63 = vpop.f32.mrf.mxu0  ;;  %2968 = vmatpush3.bf16.msra.mxu0 %v2151_v61  ;;  %2969 = vmatprep.mubr.msk.bf16.mxu0 %vm3185_vm0, %v3184_v1 }
 0xe46   : > { %2979 = vmatprep.subr.bf16.mxu0 %v3184_v1  ;;  %v3070_v63 = vld [vmem:[%s3773_s11 + $0x78] sm:$0xff]  }
 0xe47   : > { %v2936_v0 = vpop.f32.mrf.mxu0 }
 0xe48   : > { %v3071_v0 = vld [vmem:[%s3773_s11 + $0x70] sm:$0xff]  }
 0xeab   : > { %v1944_v3 = vpop.f32.mrf.mxu1 }
 0xeac   : > { %v2047_v4 = vpack.c.bf16 %v1944_v3, %v1944_v3  ;;  %v3073_v3 = vld [vmem:[%s3773_s11 + $0x60] sm:$0xff]  }
 0xead   : > { %v2941_v6 = vpop.f32.mrf.mxu1 }
 0xeae   : > { %2964 = vmatmul.mubr.msk.bf16.vlgmr.msra.gmra.mxu1 %vm636_vm3, %v2047_v4  ;;  %v3074_v4 = vld [vmem:[%s3773_s11 + $0x58] sm:$0xff]   ;;  %v3076_v6 = vld [vmem:[%s3773_s11 + $0x48] sm:$0xff]  }
 0xeaf   : > { %v1947_v7 = vpop.f32.mrf.mxu1  ;;  %2974 = vmatpush3.bf16.msra.mxu1 %v2197_v5  ;;  %2975 = vmatprep.mubr.msk.bf16.mxu1 %vm3185_vm0, %v3184_v1  ;;  %v3075_v5 = vld [vmem:[%s3773_s11 + $0x50] sm:$0xff]  }
 0xeb0   : > { %2987 = vmatprep.subr.bf16.mxu1 %v3184_v1  ;;  %v3077_v7 = vld [vmem:[%s3773_s11 + $0x40] sm:$0xff]  }
 0xeb1   : > { %v2942_v9 = vpop.f32.mrf.mxu1  ;;  %v1992_v10 = vpop.f32.mrf.mxu0 }
 0xeb2   : > { %v2048_v11 = vpack.c.bf16 %v1992_v10, %v1992_v10  ;;  %v2668_v9 = vld [vmem:[%s3772_s10 + $0x1] ss:$0 sm:$0xff] }
 0xeb3   : > { %v2947_v12 = vpop.f32.mrf.mxu0 }
 0xeb4   : > { %2970 = vmatmul.mubr.msk.bf16.vlgmr.msra.gmra.mxu0 %vm636_vm3, %v2048_v11 }
 0xeb5   : > { %v1995_v13 = vpop.f32.mrf.mxu0  ;;  %v2040_v14 = vpop.f32.mrf.mxu1  ;;  %2983 = vmatprep.mubr.msk.bf16.mxu0 %vm3185_vm0, %v3184_v1  ;;  %2980 = vmatpush3.bf16.msra.mxu0 %v3068_v52 }
 0xeb6   : > { %v2049_v15 = vpack.c.bf16 %v2040_v14, %v2040_v14  ;;  %2981 = vmatprep.subr.bf16.mxu0 %v3184_v1 }
 0xeb7   : > { %v2948_v16 = vpop.f32.mrf.mxu0  ;;  %v2953_v17 = vpop.f32.mrf.mxu1 }
 0xeb8   : > { %2976 = vmatmul.mubr.msk.bf16.vlgmr.msra.gmra.mxu1 %vm636_vm3, %v2049_v15 }
 0xeb9   : > { %v2043_v18 = vpop.f32.mrf.mxu1  ;;  %3003 = vmatprep.mubr.msk.bf16.mxu1 %vm3185_vm0, %v3184_v1  ;;  %2982 = vmatpush3.bf16.msra.mxu0 %v3069_v53 }
 0xeba   : > { %2988 = vmatpush3.bf16.msra.mxu1 %v3070_v63 }
 0xebb   : > { %v2954_v19 = vpop.f32.mrf.mxu1  ;;  %2989 = vmatprep.subr.bf16.mxu1 %v3184_v1 }
 0xebe   : > { %2990 = vmatpush3.bf16.msra.mxu1 %v3071_v0 }
 0xebf   : > { %2991 = vmatprep.subr.bf16.mxu1 %v3184_v1 }
 0xec2   : > { %2992 = vmatpush3.bf16.msra.mxu1 %v3072_v2 }
 0xec3   : > { %2993 = vmatprep.subr.bf16.mxu1 %v3184_v1 }
 0xec6   : > { %2994 = vmatpush3.bf16.msra.mxu1 %v3073_v3 }
 0xec7   : > { %2995 = vmatprep.subr.bf16.mxu1 %v3184_v1 }
 0xeca   : > { %2996 = vmatpush3.bf16.msra.mxu1 %v3074_v4 }
 0xecb   : > { %2997 = vmatprep.subr.bf16.mxu1 %v3184_v1 }
 0xece   : > { %2998 = vmatpush3.bf16.msra.mxu1 %v3075_v5 }
 0xecf   : > { %2999 = vmatprep.subr.bf16.mxu1 %v3184_v1 }
 0xed2   : > { %3000 = vmatpush3.bf16.msra.mxu1 %v3076_v6 }
 0xed3   : > { %3001 = vmatprep.subr.bf16.mxu1 %v3184_v1 }
 0xed6   : > { %3002 = vmatpush3.bf16.msra.mxu1 %v3077_v7 }
 0xf04   : > { %v2095_v20 = vpop.f32.mrf.mxu0 }
 0xf05   : > { %v2239_v31 = vsel %vm575_vm2, %v2095_v20, 0.0 }
 0xf06   : > { %v2959_v21 = vpop.f32.mrf.mxu0 }
 0xf08   : > { %v2098_v22 = vpop.f32.mrf.mxu0 }
 0xf0a   : > { %v2960_v23 = vpop.f32.mrf.mxu0 }
 0xf6e   : > { %v2141_v24 = vpop.f32.mrf.mxu1 }
 0xf6f   : > { %v2240_v27 = vsel %vm575_vm2, %v2141_v24, 0.0  ;;  %v2689_v24 = vld [vmem:[%s3774_s12 + $0x1] ss:$0 sm:$0xff] }
 0xf70   : > { %v2965_v25 = vpop.f32.mrf.mxu1  ;;  %v2241_v33 = vadd.f32 %v2240_v27, %v2239_v31 }
 0xf72   : > { %v2144_v26 = vpop.f32.mrf.mxu1 }
 0xf74   : > { %v2966_v28 = vpop.f32.mrf.mxu1  ;;  %v2187_v29 = vpop.f32.mrf.mxu0 }
 0xf75   : > { %v2242_v32 = vsel %vm575_vm2, %v2187_v29, 0.0 }
 0xf76   : > { %v2971_v34 = vpop.f32.mrf.mxu0  ;;  %v2243_v35 = vadd.f32 %v2242_v32, %v2241_v33 }
 0xf78   : > { %v2190_v8 = vpop.f32.mrf.mxu0  ;;  %v2233_v36 = vpop.f32.mrf.mxu1 }
 0xf79   : > { %v2244_v37 = vsel %vm575_vm2, %v2233_v36, 0.0 }
 0xf7a   : > { %v2245_v39 = vadd.f32 %v2244_v37, %v2243_v35  ;;  %v2972_v40 = vpop.f32.mrf.mxu0  ;;  %v2977_v41 = vpop.f32.mrf.mxu1 }
 0xf7b   : > { %v2700_v41 = vld [vmem:[%s3775_s13 + $0x1] ss:$0 sm:$0xff] }
 0xf7c   : > { %v2254_v42 = vadd.f32 %v2658_v38, %v2245_v39  ;;  %v2236_v43 = vpop.f32.mrf.mxu1 }
 0xf7d   : > { %v2701_v43 = vld [vmem:[%s3776_s14 + $0x1] ss:$0 sm:$0xff] }
 0xf7e   : > { %v2978_v44 = vpop.f32.mrf.mxu1  ;;  %v2255_v45 = vadd.f32 %v2254_v42, %v3547_v30 }
 0xf80   : > { %v2260_v46 = vsel %vm575_vm2, %v2255_v45, 0.0 }
 0xf81   : > { %2261 = vadd.xlane.f32.xlu0 %v2260_v46 }
0x100a   : > { %v2262_v47 = vpop.xlane.xlu0 %2261 }
0x100b   : > { %v2263_v48 = vmul.f32 0.03125, %v2262_v47 }
0x100d   : > { %v2264_v49 = vsub.f32 %v2255_v45, %v2263_v48 }
0x100f   : > { %v2265_v50 = vmul.f32 %v2264_v49, %v2264_v49 }
0x1011   : > { %v2266_v51 = vsel %vm575_vm2, %v2265_v50, 0.0 }
0x1012   : > { %2267 = vadd.xlane.f32.xlu1 %v2266_v51 }
0x109b   : > { %v2268_v30 = vpop.xlane.xlu1 %2267 }
0x109c   : > { %v2269_v54 = vmul.f32 0.03125, %v2268_v30 }
0x109e   : > { %v2270_v55 = vadd.f32 1e-05, %v2269_v54 }
0x10a0   : > { %3116 = vrsqrt.f32 %v2270_v55 }
0x10ad   : > { %v3117_v56 = vpop.eup %3116 }
0x10ae   : > { %v2272_v58 = vmul.f32 %v3117_v56, %v2264_v49 }
0x10b0   : > { %v2279_v60 = vmul.f32 %v2661_v57, %v2272_v58 }
0x10b2   : > { %v2286_v61 = vadd.f32 %v2662_v59, %v2279_v60 }
0x10b4   : > { %v2292_v62 = vpack.c.bf16 %v2286_v61, %v2286_v61 }
0x10b6   : > { %2984 = vmatmul.mubr.msk.bf16.vlgmr.msra.gmra.mxu0 %vm575_vm2, %v2292_v62 }
0x1176   : > { %v2350_v10 = vpop.f32.mrf.mxu0 }
0x1177   : > { %v2351_v11 = vadd.f32 %v2668_v9, %v2350_v10 }
0x1178   : > { %v2985_v12 = vpop.f32.mrf.mxu0 }
0x1179   : > { %v2357_v13 = vmul.f32 0.044715, %v2351_v11  ;;  %v2356_v21 = vmul.f32 0.5, %v2351_v11 }
0x117a   : > { %v2353_v14 = vpop.f32.mrf.mxu0 }
0x117b   : > { %v2358_v15 = vmul.f32 %v2357_v13, %v2351_v11 }
0x117c   : > { %v2986_v16 = vpop.f32.mrf.mxu0 }
0x117d   : > { %v2359_v17 = vmul.f32 %v2358_v15, %v2351_v11 }
0x117f   : > { %v2360_v18 = vadd.f32 %v2359_v17, %v2351_v11 }
0x1181   : > { %v2361_v19 = vmul.f32 0.7978846, %v2360_v18 }
0x1183   : > { %3118 = vtanh.f32 %v2361_v19 }
0x1190   : > { %v3119_v20 = vpop.eup %3118 }
0x1191   : > { %v2363_v22 = vadd.f32 1.0, %v3119_v20 }
0x1193   : > { %v2364_v1 = vmul.f32 %v2363_v22, %v2356_v21 }
0x1195   : > { %v2382_v23 = vpack.c.bf16 %v2364_v1, %v2364_v1 }
0x1197   : > { %3004 = vmatmul.mubr.bf16.vlgmr.msra.gmra.mxu1 %v2382_v23 }
0x1257   : > { %v2473_v25 = vpop.f32.mrf.mxu1 }
0x1258   : > { %v2474_v26 = vadd.f32 %v2689_v24, %v2473_v25 }
0x1259   : > { %v3005_v27 = vpop.f32.mrf.mxu1 }
0x125a   : > { %v2479_v28 = vadd.f32 %v2474_v26, %v2286_v61 }
0x125b   : > { %v2476_v29 = vpop.f32.mrf.mxu1 }
0x125c   : > { %v2484_v31 = vsel %vm575_vm2, %v2479_v28, 0.0 }
0x125d   : > { %2485 = vadd.xlane.f32.xlu0 %v2484_v31  ;;  %v3006_v32 = vpop.f32.mrf.mxu1 }
0x12e6   : > { %v2486_v33 = vpop.xlane.xlu0 %2485 }
0x12e7   : > { %v2487_v34 = vmul.f32 0.03125, %v2486_v33 }
0x12e9   : > { %v2488_v35 = vsub.f32 %v2479_v28, %v2487_v34 }
0x12eb   : > { %v2489_v8 = vmul.f32 %v2488_v35, %v2488_v35 }
0x12ed   : > { %v2490_v36 = vsel %vm575_vm2, %v2489_v8, 0.0 }
0x12ee   : > { %2491 = vadd.xlane.f32.xlu0 %v2490_v36 }
0x1377   : > { %v2492_v37 = vpop.xlane.xlu0 %2491 }
0x1378   : > { %v2493_v38 = vmul.f32 0.03125, %v2492_v37 }
0x137a   : > { %v2494_v39 = vadd.f32 1e-05, %v2493_v38 }
0x137c   : > { %3120 = vrsqrt.f32 %v2494_v39 }
0x1389   : > { %v3121_v40 = vpop.eup %3120 }
0x138a   : > { %v2496_v42 = vmul.f32 %v3121_v40, %v2488_v35 }
0x138c   : > { %v2503_v44 = vmul.f32 %v2700_v41, %v2496_v42 }
0x138e   : > { %v2510_v45 = vadd.f32 %v2701_v43, %v2503_v44 }
0x1390   : > { %v2511_v46 = vsel %vm575_vm2, %v2510_v45, 0.0 }
0x1391   : > { %v2512_v47 = vrot.slane %v2511_v46, 4 }
0x1393   : > { %v2513_v48 = vadd.f32 %v2512_v47, %v2511_v46 }
0x1395   : > { %v2514_v49 = vrot.slane %v2513_v48, 2 }
0x1397   : > { %v2515_v50 = vadd.f32 %v2514_v49, %v2513_v48 }
0x1399   : > { %v2516_v51 = vrot.slane %v2515_v50, 1 }
0x139b   : > { %v2517_v52 = vadd.f32 %v2516_v51, %v2515_v50 }
0x139d   : > { %v2519_v53 = vmul.f32 0.125, %v2517_v52 }
0x139f   : > { %2521 = vst.msk [vmem:[%s484_s26] sm:$0x1] %vm2520_vm5, %v2519_v53 }
0x13a0   : > { %3135 = shalt.err (!%p3132_p3)
}
0x13a1   : > { %s3136_s4 = scalar_lea.hbm %s2533_s17, 16  ;;  %s3140_s26 = scalar_lea.hbm %s3777_s15, 32 }
0x13a2   : > { %p3137_p4 = scmp.ne.s32.totalorder %s2533_s17, %s3136_s4  ;;  %p3141_p9 = scmp.lt.s32.totalorder %s2533_s17, %s3777_s15 }
0x13a3   : > { %p3142_p10 = scmp.lt.s32.totalorder %s3140_s26, %s3136_s4 }
0x13a4   : > { %p3138_p7 = pnand %p3137_p4, %p3310_p5 }
0x13a5   : > { %p3143_p11 = por %p3142_p10, %p3141_p9 }
0x13a6   : > { %p3139_p8 = pneg %p3138_p7 }
0x13a8   : > { %p3144_p12 = pnand %p3143_p11, %p3139_p8 }
0x13aa   : > { %3147 = shalt.err (!%p3144_p12)
}
0x13ab   : > { %3007 = dma.vmem_to_hbm [thread:$0]  (%p3310_p5), %s2536_s25, 16, %s2533_s17, %s2523_s27  }
0x13ac PF: > { %p3013_p13 = scmp.ge.s32.totalorder %s3182_s21, 2  ;;  %s2547_s0 = sand.u32 1, %s3170_s18  }
0x13ad   : > { %s2548_s2 = scalar_lea.sflag [#allocation3], %s2547_s0 }
0x13ae   : > { %p3010_p0 = pnand %p3013_p13, %p3314_p6 }
0x13b0   : > { %p3011_p1 = pneg %p3010_p0 }
0x13b2   : > { %3165 = dma.done.wait (%p3011_p1), %s2548_s2, 16  }
0x13b3   : > { %3167 = vsyncadd (%p3011_p1), %s2548_s2, 4294967280  ;;  %s3803_s3 = sld [smem:[#allocation5_spill]]  ;;  %p25_p2 = scmp.ge.s32.totalorder %s3297_s24, 4  }
0x13b4   : > { %s3804_s18 = smov %s3174_s19  ;;  %s3805_s19 = smov %s3178_s20 }
0x13b5   : > { %s3807_s21 = smov %s3297_s24  ;;  %27 = sbr.rel (!%p25_p2) target bundleno = 9 (0x9), region = 127 }
0x13b9   : > { %s3806_s20 = smov %s3803_s3 }
0x13ba   :  { %2552 = vsyncpa [#allocation3], 1 }
0x13bb   :  { %2554 = vsyncpa [#allocation3 + $0x1], 1 }

</bundles_post_ra>
